<compile_context>
chip_gen: v5e
topology: v5e:2x2
jax: 0.10.0
libtpu: 0.0.40
codegen_flags: <defaults>
</compile_context>

<pallas_src>
import functools
import math

import jax
import jax.numpy as jnp
from jax.experimental import pallas as pl
from jax.experimental.pallas import tpu as pltpu


# ----------------------------------------------------------------------------------
# Small helpers
# ----------------------------------------------------------------------------------

def _round_up(x, m):
    return ((x + m - 1) // m) * m


def _row_tile(m, max_tile=512):
    m8 = _round_up(max(m, 1), 8)
    tm = min(max_tile, m8)
    m_pad = _round_up(m8, tm)
    return tm, m_pad


def _hidden_tile(h):
    for t in (512, 256, 128):
        if h % t == 0:
            return t
    return h


def _pad_rows(x2d, m_pad):
    m = x2d.shape[0]
    if m_pad == m:
        return x2d
    return jnp.pad(x2d, ((0, m_pad - m), (0, 0)))


def _vmem_limit_bytes():
    # ~75% of physical VMEM, clamped: 96 MiB on 128 MiB parts (v5e/v6e), 48 MiB on v7x.
    try:
        cap = pltpu.get_tpu_info().vmem_capacity_bytes
        return int(min(max(cap * 3 // 4, 32 * 1024 * 1024), 112 * 1024 * 1024))
    except Exception:  # pragma: no cover - conservative fallback
        return 48 * 1024 * 1024


_VMEM_LIMIT = _vmem_limit_bytes()


def _cparams(sems):
    return pltpu.CompilerParams(dimension_semantics=sems,
                                vmem_limit_bytes=_VMEM_LIMIT)


def _ln(x, g, b, eps=1e-5):
    # f32 layernorm math; eps matches nn.LayerNorm default.
    mu = jnp.mean(x, axis=-1, keepdims=True)
    var = jnp.mean(jnp.square(x - mu), axis=-1, keepdims=True)
    return (x - mu) * jax.lax.rsqrt(var + eps) * g + b


def _gelu_exact(x):
    # exact (erf) GELU, matching torch.nn.GELU() default
    return 0.5 * x * (1.0 + jax.lax.erf(x * (1.0 / math.sqrt(2.0))))


# ----------------------------------------------------------------------------------
# Pallas kernels
# ----------------------------------------------------------------------------------

def _linear_bias_kernel(x_ref, w_ref, b_ref, o_ref):
    y = jnp.dot(x_ref[...].astype(jnp.bfloat16), w_ref[...],
                preferred_element_type=jnp.float32) + b_ref[...]
    o_ref[...] = y.astype(o_ref.dtype)


def _linear_bias_res_kernel(x_ref, r_ref, w_ref, b_ref, o_ref):
    y = jnp.dot(x_ref[...].astype(jnp.bfloat16), w_ref[...],
                preferred_element_type=jnp.float32) + b_ref[...]
    o_ref[...] = (y + r_ref[...].astype(jnp.float32)).astype(o_ref.dtype)


def _layernorm_kernel(x_ref, g_ref, b_ref, o_ref):
    o_ref[...] = _ln(x_ref[...].astype(jnp.float32),
                     g_ref[...], b_ref[...]).astype(o_ref.dtype)


def _ln_proj_split_kernel(x_ref, g_ref, b_ref, w_ref, *o_refs):
    # Fused pre-LN + packed projection; each split written to its own lane-dense output.
    xn = _ln(x_ref[...].astype(jnp.float32), g_ref[...], b_ref[...])
    y = jnp.dot(xn.astype(jnp.bfloat16), w_ref[...],
                preferred_element_type=jnp.float32)
    off = 0
    for o_ref in o_refs:
        d = o_ref.shape[-1]
        o_ref[...] = y[:, off:off + d].astype(o_ref.dtype)
        off += d


def _ln_mlp_res_kernel(x_ref, g_ref, b_ref, w1_ref, b1_ref, w2_ref, b2_ref, o_ref,
                       xn_ref, acc_ref):
    # grid = (row tiles "parallel", hidden tiles "arbitrary")
    h = pl.program_id(1)

    @pl.when(h == 0)
    def _():
        xn_ref[...] = _ln(x_ref[...].astype(jnp.float32), g_ref[...], b_ref[...])
        acc_ref[...] = jnp.zeros(acc_ref.shape, acc_ref.dtype)

    hid = jnp.dot(xn_ref[...].astype(jnp.bfloat16), w1_ref[...],
                  preferred_element_type=jnp.float32) + b1_ref[...]
    hid = _gelu_exact(hid)
    acc_ref[...] += jnp.dot(hid.astype(jnp.bfloat16), w2_ref[...],
                            preferred_element_type=jnp.float32)

    @pl.when(h == pl.num_programs(1) - 1)
    def _():
        # residual + second bias fused into the final store
        o_ref[...] = (x_ref[...].astype(jnp.float32) + acc_ref[...] + b2_ref[...]
                      ).astype(o_ref.dtype)


def _flash_attn_kernel(q_ref, k_ref, v_ref, o_ref, m_ref, l_ref, acc_ref,
                       *, heads, kv_tile, n_valid, mask):
    kv = pl.program_id(1)
    nq = q_ref.shape[1]
    d = q_ref.shape[-1]
    dh = d // heads

    @pl.when(kv == 0)
    def _():
        m_ref[...] = jnp.full(m_ref.shape, -jnp.inf, m_ref.dtype)
        l_ref[...] = jnp.zeros(l_ref.shape, l_ref.dtype)
        acc_ref[...] = jnp.zeros(acc_ref.shape, acc_ref.dtype)

    # heads stay packed on the lane axis; scale already folded into wq
    q = q_ref[0].astype(jnp.bfloat16)      # (nq, D)
    k = k_ref[0].astype(jnp.bfloat16)      # (tk, D)
    v = v_ref[0].astype(jnp.bfloat16)      # (tk, D)

    if mask:
        col = kv * kv_tile + jax.lax.broadcasted_iota(jnp.int32, (1, kv_tile), 1)
        valid = col < n_valid

    for h in range(heads):                 # static unroll; heads is small
        sl = slice(h * dh, (h + 1) * dh)
        # q @ k^T via dot_general contraction (no explicit transpose in-kernel)
        s = jax.lax.dot_general(q[:, sl], k[:, sl], (((1,), (1,)), ((), ())),
                                preferred_element_type=jnp.float32)   # (nq, tk)
        if mask:
            s = jnp.where(valid, s, -1e30)     # finite sentinel (no inf-inf NaN risk)
        m_prev = m_ref[h]                                   # (nq, 1) per-head stats
        m_new = jnp.maximum(m_prev, jnp.max(s, axis=-1, keepdims=True))
        alpha = jnp.exp(m_prev - m_new)                     # (nq, 1)
        p = jnp.exp(s - m_new)                              # (nq, tk)
        l_ref[h] = alpha * l_ref[h] + jnp.sum(p, axis=-1, keepdims=True)
        acc_ref[:, sl] = alpha * acc_ref[:, sl] + jnp.dot(
            p.astype(jnp.bfloat16), v[:, sl], preferred_element_type=jnp.float32)
        m_ref[h] = m_new

    @pl.when(kv == pl.num_programs(1) - 1)
    def _():
        # exact normalization; single lane-dense (nq, D) store of all heads
        inv = jnp.concatenate(
            [jnp.broadcast_to(1.0 / l_ref[h], (nq, dh)) for h in range(heads)],
            axis=-1)
        o_ref[0] = (acc_ref[...] * inv).astype(o_ref.dtype)


# ----------------------------------------------------------------------------------
# pallas_call wrappers
# ----------------------------------------------------------------------------------

def _row_call(kernel, row_inputs, full_inputs, out_cols, dtype, max_tile=512):
    """Row-tiled launch: row_inputs tiled over M ("parallel"), full_inputs stay resident."""
    m = row_inputs[0].shape[0]
    tm, m_pad = _row_tile(m, max_tile)
    padded = [_pad_rows(a, m_pad) for a in row_inputs]
    in_specs = ([pl.BlockSpec((tm, a.shape[1]), lambda i: (i, 0)) for a in padded]
                + [pl.BlockSpec(a.shape, lambda i: (0, 0)) for a in full_inputs])
    out = pl.pallas_call(
        kernel,
        out_shape=jax.ShapeDtypeStruct((m_pad, out_cols), dtype),
        grid=(m_pad // tm,),
        in_specs=in_specs,
        out_specs=pl.BlockSpec((tm, out_cols), lambda i: (i, 0)),
        compiler_params=_cparams(("parallel",)),
    )(*padded, *full_inputs)
    return out if m_pad == m else out[:m]


def linear_bias(x2d, w, b, max_tile=512):
    return _row_call(_linear_bias_kernel, [x2d], [w, b.reshape(1, -1)],
                     w.shape[1], x2d.dtype, max_tile)


def linear_bias_res(x2d, res2d, w, b, max_tile=512):
    return _row_call(_linear_bias_res_kernel, [x2d, res2d], [w, b.reshape(1, -1)],
                     w.shape[1], x2d.dtype, max_tile)


def layernorm(x, g, b, max_tile=1024):
    shp = x.shape
    d = shp[-1]
    out = _row_call(_layernorm_kernel, [x.reshape(-1, d)],
                    [g.reshape(1, d), b.reshape(1, d)], d, x.dtype, max_tile)
    return out.reshape(shp)


def ln_proj_split(x2d, g, bln, w, out_dims, max_tile=512):
    """Fused pre-LN + packed projection; returns one lane-dense array per split."""
    m, din = x2d.shape
    tm, m_pad = _row_tile(m, max_tile)
    xp = _pad_rows(x2d, m_pad)
    full_inputs = [g.reshape(1, -1), bln.reshape(1, -1), w]
    in_specs = ([pl.BlockSpec((tm, din), lambda i: (i, 0))]
                + [pl.BlockSpec(a.shape, lambda i: (0, 0)) for a in full_inputs])
    out_shape = tuple(jax.ShapeDtypeStruct((m_pad, dd), x2d.dtype) for dd in out_dims)
    out_specs = tuple(pl.BlockSpec((tm, dd), lambda i: (i, 0)) for dd in out_dims)
    outs = pl.pallas_call(
        _ln_proj_split_kernel,
        out_shape=out_shape,
        grid=(m_pad // tm,),
        in_specs=in_specs,
        out_specs=out_specs,
        compiler_params=_cparams(("parallel",)),
    )(xp, *full_inputs)
    outs = tuple(outs)
    if m_pad != m:
        outs = tuple(o[:m] for o in outs)
    return outs


def ln_mlp_res(x2d, g, bln, w1, b1, w2, b2, max_row_tile=256):
    """Pre-LN + MLP + residual with the 4*D hidden dim tiled on a reduction grid axis."""
    m, d = x2d.shape
    hdim = w1.shape[1]
    tm, m_pad = _row_tile(m, max_row_tile)
    th = _hidden_tile(hdim)
    xp = _pad_rows(x2d, m_pad)
    out = pl.pallas_call(
        _ln_mlp_res_kernel,
        out_shape=jax.ShapeDtypeStruct((m_pad, d), x2d.dtype),
        grid=(m_pad // tm, hdim // th),
        in_specs=[
            pl.BlockSpec((tm, d), lambda i, h: (i, 0)),    # x (residual)
            pl.BlockSpec((1, d), lambda i, h: (0, 0)),     # ln gamma
            pl.BlockSpec((1, d), lambda i, h: (0, 0)),     # ln beta
            pl.BlockSpec((d, th), lambda i, h: (0, h)),    # w1 column slab
            pl.BlockSpec((1, th), lambda i, h: (0, h)),    # b1 slab
            pl.BlockSpec((th, d), lambda i, h: (h, 0)),    # w2 row slab
            pl.BlockSpec((1, d), lambda i, h: (0, 0)),     # b2
        ],
        out_specs=pl.BlockSpec((tm, d), lambda i, h: (i, 0)),
        scratch_shapes=[pltpu.VMEM((tm, d), jnp.float32),  # cached LN(x)
                        pltpu.VMEM((tm, d), jnp.float32)], # f32 accumulator
        compiler_params=_cparams(("parallel", "arbitrary")),
    )(xp, g.reshape(1, -1), bln.reshape(1, -1),
      w1, b1.reshape(1, -1), w2, b2.reshape(1, -1))
    return out if m_pad == m else out[:m]


def flash_attention(q, k, v, heads, kv_tile=512):
    # q: (B, Nq, D) latents, k/v: (B, Nk, D) points; heads packed on the lane axis.
    B, nq, d = q.shape
    nk = k.shape[1]
    tk = min(kv_tile, _round_up(nk, 8))
    nk_pad = _round_up(nk, tk)
    if nk_pad != nk:
        pad = ((0, 0), (0, nk_pad - nk), (0, 0))
        k = jnp.pad(k, pad)
        v = jnp.pad(v, pad)
    kernel = functools.partial(_flash_attn_kernel, heads=heads, kv_tile=tk,
                               n_valid=nk, mask=(nk_pad != nk))
    return pl.pallas_call(
        kernel,
        out_shape=jax.ShapeDtypeStruct((B, nq, d), q.dtype),
        grid=(B, nk_pad // tk),
        in_specs=[pl.BlockSpec((1, nq, d), lambda b, j: (b, 0, 0)),
                  pl.BlockSpec((1, tk, d), lambda b, j: (b, j, 0)),
                  pl.BlockSpec((1, tk, d), lambda b, j: (b, j, 0))],
        out_specs=pl.BlockSpec((1, nq, d), lambda b, j: (b, 0, 0)),
        scratch_shapes=[pltpu.VMEM((heads, nq, 1), jnp.float32),  # running max, per head
                        pltpu.VMEM((heads, nq, 1), jnp.float32),  # running denom
                        pltpu.VMEM((nq, d), jnp.float32)],        # packed-head f32 acc
        compiler_params=_cparams(("parallel", "arbitrary")),
    )(q, k, v)


# ----------------------------------------------------------------------------------
# Model glue (plain JAX): layer loop; reshapes only (no slice copies)
# ----------------------------------------------------------------------------------

def transformer_block(p, x, heads, y=None):
    B, nq, d = x.shape
    x2d = x.reshape(B * nq, d)
    if y is None:
        q, k, v = ln_proj_split(x2d, p['ln1_g'], p['ln1_b'], p['wqkv'], (d, d, d))
        q = q.reshape(B, nq, d)
        k = k.reshape(B, nq, d)
        v = v.reshape(B, nq, d)
    else:
        nk = y.shape[1]
        (q,) = ln_proj_split(x2d, p['ln1_g'], p['ln1_b'], p['wq'], (d,))
        k, v = ln_proj_split(y.reshape(B * nk, d), p['ln1c_g'], p['ln1c_b'],
                             p['wkv'], (d, d))
        q = q.reshape(B, nq, d)
        k = k.reshape(B, nk, d)
        v = v.reshape(B, nk, d)
    attn = flash_attention(q, k, v, heads)                          # (B, Nq, D)
    # output projection + bias + residual fused
    x2d = linear_bias_res(attn.reshape(B * nq, d), x2d, p['wo'], p['bo'])
    # LN + MLP + residual fused (hidden dim tiled)
    x2d = ln_mlp_res(x2d, p['ln2_g'], p['ln2_b'],
                     p['w1'], p['b1'], p['w2'], p['b2'])
    return x2d.reshape(B, nq, d)


def point_encoder_fwd(params, pc, heads):
    B, N, Cin = pc.shape
    D = params['proj_in_w'].shape[1]
    pc_p = linear_bias(pc.reshape(B * N, Cin), params['proj_in_w'],
                       params['proj_in_b']).reshape(B, N, D)
    tok = jnp.broadcast_to(params['learnable_token'][None],
                           (B,) + params['learnable_token'].shape)
    latents = transformer_block(params['cross'], tok, heads, y=pc_p)
    for bp in params['selfs']:
        latents = transformer_block(bp, latents, heads)
    latents = layernorm(latents, params['norm_out_g'], params['norm_out_b'])
    return latents


# ----------------------------------------------------------------------------------
# Parameters: faithful (torch-like) init + one-time kernel-friendly preprocessing
# ----------------------------------------------------------------------------------

def init_params(key, num_latents, in_channels, heads, head_dim, num_layers):
    D = heads * head_dim
    keys = iter(jax.random.split(key, 8 + 8 * (num_layers + 1)))

    def w(shape, scale=0.02):
        return jax.random.normal(next(keys), shape, jnp.float32) * scale

    def block_params(cross=False):
        wq, wk, wv = w((D, D)), w((D, D)), w((D, D))
        p = dict(
            ln1_g=jnp.ones((D,), jnp.float32), ln1_b=jnp.zeros((D,), jnp.float32),
            wo=w((D, D)), bo=jnp.zeros((D,), jnp.float32),
            ln2_g=jnp.ones((D,), jnp.float32), ln2_b=jnp.zeros((D,), jnp.float32),
            w1=w((D, 4 * D)), b1=jnp.zeros((4 * D,), jnp.float32),
            w2=w((4 * D, D)), b2=jnp.zeros((D,), jnp.float32),
        )
        if cross:
            p['ln1c_g'] = jnp.ones((D,), jnp.float32)
            p['ln1c_b'] = jnp.zeros((D,), jnp.float32)
            p['wq'] = wq
            p['wkv'] = jnp.concatenate([wk, wv], axis=1)        # (D, 2D) packed
        else:
            p['wqkv'] = jnp.concatenate([wq, wk, wv], axis=1)   # (D, 3D) packed
        return p

    return dict(
        learnable_token=w((num_latents, D), 0.01),
        proj_in_w=w((in_channels, D)), proj_in_b=jnp.zeros((D,), jnp.float32),
        cross=block_params(cross=True),
        selfs=[block_params() for _ in range(num_layers)],
        norm_out_g=jnp.ones((D,), jnp.float32), norm_out_b=jnp.zeros((D,), jnp.float32),
    )


def prepare_params(params, heads):
    """One-time preprocessing: fold the 1/sqrt(head_dim) attention scale into the q
    projection and cast every MXU weight to bf16 (f32 accumulation in the kernels).
    LayerNorm params, biases and the learnable token stay f32."""
    D = params['proj_in_w'].shape[1]
    scale = 1.0 / math.sqrt(D // heads)
    bf16 = lambda a: a.astype(jnp.bfloat16)

    def prep_block(bp, cross):
        p = dict(bp)
        if cross:
            p['wq'] = bf16(bp['wq'] * scale)
            p['wkv'] = bf16(bp['wkv'])
        else:
            wqkv = bp['wqkv']
            p['wqkv'] = bf16(jnp.concatenate([wqkv[:, :D] * scale, wqkv[:, D:]], axis=1))
        p['wo'] = bf16(bp['wo'])
        p['w1'] = bf16(bp['w1'])
        p['w2'] = bf16(bp['w2'])
        return p

    out = dict(params)
    out['proj_in_w'] = bf16(params['proj_in_w'])
    out['cross'] = prep_block(params['cross'], cross=True)
    out['selfs'] = [prep_block(bp, cross=False) for bp in params['selfs']]
    return out


# ----------------------------------------------------------------------------------
# Driver
# ----------------------------------------------------------------------------------

if __name__ == "__main__":
    B, N, Cin = 2, 16, 4              # batch, num points, point-feature channels
    heads, head_dim = 2, 16           # inner_dim = 32
    num_latents, num_layers = 8, 2

    key = jax.random.PRNGKey(0)
    kp, kx = jax.random.split(key)
    params = prepare_params(init_params(kp, num_latents, Cin, heads, head_dim,
                                        num_layers), heads)
    pc = jax.random.normal(kx, (B, N, Cin), jnp.float32)

    fwd = jax.jit(functools.partial(point_encoder_fwd, heads=heads))
    out = jax.block_until_ready(fwd(params, pc))

    assert out.shape == (B, num_latents, heads * head_dim), out.shape
    assert bool(jnp.all(jnp.isfinite(out)))
    print("KERNEL_OK")
</pallas_src>

<mosaic_0001>
module attributes {stable_mosaic.version = 11 : i64} {
  func.func @_ln_proj_split_kernel(%arg0: i32, %arg1: memref<32x32xf32, #tpu.memory_space<vmem>>, %arg2: memref<1x32xf32, #tpu.memory_space<vmem>>, %arg3: memref<1x32xf32, #tpu.memory_space<vmem>>, %arg4: memref<32x64xbf16, #tpu.memory_space<vmem>>, %arg5: memref<32x32xf32, #tpu.memory_space<vmem>>, %arg6: memref<32x32xf32, #tpu.memory_space<vmem>>) attributes {dimension_semantics = [#tpu.dimension_semantics<parallel>], iteration_bounds = array<i64: 1>, scalar_prefetch = 0 : i64, scratch_operands = 0 : i64, tpu.core_type = #tpu.core_type<tc>, window_params = [{transform_indices = @transform_0, window_bounds = array<i64: 32, 32>}, {pipeline_mode = #tpu.pipeline_mode<synchronous>, transform_indices = @transform_1, window_bounds = array<i64: 1, 32>}, {pipeline_mode = #tpu.pipeline_mode<synchronous>, transform_indices = @transform_2, window_bounds = array<i64: 1, 32>}, {pipeline_mode = #tpu.pipeline_mode<synchronous>, transform_indices = @transform_3, window_bounds = array<i64: 32, 64>}, {transform_indices = @transform_4, window_bounds = array<i64: 32, 32>}, {transform_indices = @transform_5, window_bounds = array<i64: 32, 32>}]} {
    %c0 = arith.constant 0 : index
    %c0_0 = arith.constant 0 : index
    %0 = vector.load %arg1[%c0, %c0_0] : memref<32x32xf32, #tpu.memory_space<vmem>>, vector<32x32xf32>
    %c0_1 = arith.constant 0 : index
    %c0_2 = arith.constant 0 : index
    %1 = vector.load %arg2[%c0_1, %c0_2] : memref<1x32xf32, #tpu.memory_space<vmem>>, vector<1x32xf32>
    %c0_3 = arith.constant 0 : index
    %c0_4 = arith.constant 0 : index
    %2 = vector.load %arg3[%c0_3, %c0_4] : memref<1x32xf32, #tpu.memory_space<vmem>>, vector<1x32xf32>
    %cst = arith.constant dense<0.000000e+00> : vector<32xf32>
    %3 = vector.multi_reduction <add>, %0, %cst [1] : vector<32x32xf32> to vector<32xf32>
    %4 = vector.shape_cast %3 : vector<32xf32> to vector<32x1xf32>
    %cst_5 = arith.constant 3.200000e+01 : f32
    %5 = vector.broadcast %cst_5 : f32 to vector<32x1xf32>
    %6 = arith.divf %4, %5 : vector<32x1xf32>
    %7 = vector.broadcast %6 : vector<32x1xf32> to vector<32x32xf32>
    %8 = arith.subf %0, %7 : vector<32x32xf32>
    %9 = arith.mulf %8, %8 : vector<32x32xf32>
    %cst_6 = arith.constant dense<0.000000e+00> : vector<32xf32>
    %10 = vector.multi_reduction <add>, %9, %cst_6 [1] : vector<32x32xf32> to vector<32xf32>
    %11 = vector.shape_cast %10 : vector<32xf32> to vector<32x1xf32>
    %cst_7 = arith.constant 3.200000e+01 : f32
    %12 = vector.broadcast %cst_7 : f32 to vector<32x1xf32>
    %13 = arith.divf %11, %12 : vector<32x1xf32>
    %14 = vector.broadcast %6 : vector<32x1xf32> to vector<32x32xf32>
    %15 = arith.subf %0, %14 : vector<32x32xf32>
    %cst_8 = arith.constant 9.99999974E-6 : f32
    %16 = vector.broadcast %cst_8 : f32 to vector<32x1xf32>
    %17 = arith.addf %13, %16 : vector<32x1xf32>
    %18 = math.rsqrt %17 : vector<32x1xf32>
    %19 = vector.broadcast %18 : vector<32x1xf32> to vector<32x32xf32>
    %20 = arith.mulf %15, %19 : vector<32x32xf32>
    %21 = vector.broadcast %1 : vector<1x32xf32> to vector<32x32xf32>
    %22 = arith.mulf %20, %21 : vector<32x32xf32>
    %23 = vector.broadcast %2 : vector<1x32xf32> to vector<32x32xf32>
    %24 = arith.addf %22, %23 : vector<32x32xf32>
    %25 = arith.truncf %24 : vector<32x32xf32> to vector<32x32xbf16>
    %c0_9 = arith.constant 0 : index
    %c0_10 = arith.constant 0 : index
    %26 = vector.load %arg4[%c0_9, %c0_10] : memref<32x64xbf16, #tpu.memory_space<vmem>>, vector<32x64xbf16>
    %cst_11 = arith.constant dense<0.000000e+00> : vector<32x64xf32>
    %27 = tpu.matmul %25, %26, %cst_11 {dimension_numbers = #tpu.dot_dimension_numbers<[1], [0], [0], [1], [0, 0, 1, 1], [], []>} : vector<32x32xbf16>, vector<32x64xbf16>, vector<32x64xf32> -> vector<32x64xf32>
    %28 = vector.extract_strided_slice %27 {offsets = [0, 0], sizes = [32, 32], strides = [1, 1]} : vector<32x64xf32> to vector<32x32xf32>
    %c0_12 = arith.constant 0 : index
    %c0_13 = arith.constant 0 : index
    %29 = vector.load %arg5[%c0_12, %c0_13] : memref<32x32xf32, #tpu.memory_space<vmem>>, vector<32x32xf32>
    tpu.vector_store %arg5[%c0_12, %c0_13], %28 {strides = array<i32>} : memref<32x32xf32, #tpu.memory_space<vmem>>, vector<32x32xf32>,
    %30 = vector.extract_strided_slice %27 {offsets = [0, 32], sizes = [32, 32], strides = [1, 1]} : vector<32x64xf32> to vector<32x32xf32>
    %c0_14 = arith.constant 0 : index
    %c0_15 = arith.constant 0 : index
    %31 = vector.load %arg6[%c0_14, %c0_15] : memref<32x32xf32, #tpu.memory_space<vmem>>, vector<32x32xf32>
    tpu.vector_store %arg6[%c0_14, %c0_15], %30 {strides = array<i32>} : memref<32x32xf32, #tpu.memory_space<vmem>>, vector<32x32xf32>,
    return
  }
  func.func @transform_0(%arg0: i32) -> (i32, i32) {
    %c0_i32 = arith.constant 0 : i32
    %c0_i32_0 = arith.constant 0 : i32
    return %arg0, %c0_i32 : i32, i32
  }
  func.func @transform_1(%arg0: i32) -> (i32, i32) {
    %c0_i32 = arith.constant 0 : i32
    %c0_i32_0 = arith.constant 0 : i32
    %c0_i32_1 = arith.constant 0 : i32
    return %c0_i32, %c0_i32_0 : i32, i32
  }
  func.func @transform_2(%arg0: i32) -> (i32, i32) {
    %c0_i32 = arith.constant 0 : i32
    %c0_i32_0 = arith.constant 0 : i32
    %c0_i32_1 = arith.constant 0 : i32
    return %c0_i32, %c0_i32_0 : i32, i32
  }
  func.func @transform_3(%arg0: i32) -> (i32, i32) {
    %c0_i32 = arith.constant 0 : i32
    %c0_i32_0 = arith.constant 0 : i32
    %c0_i32_1 = arith.constant 0 : i32
    return %c0_i32, %c0_i32_0 : i32, i32
  }
  func.func @transform_4(%arg0: i32) -> (i32, i32) {
    %c0_i32 = arith.constant 0 : i32
    %c0_i32_0 = arith.constant 0 : i32
    return %arg0, %c0_i32 : i32, i32
  }
  func.func @transform_5(%arg0: i32) -> (i32, i32) {
    %c0_i32 = arith.constant 0 : i32
    %c0_i32_0 = arith.constant 0 : i32
    return %arg0, %c0_i32 : i32, i32
  }
}

module attributes {stable_mosaic.version = 11 : i64} {
  func.func @_linear_bias_kernel(%arg0: i32, %arg1: memref<32x4xf32, #tpu.memory_space<vmem>>, %arg2: memref<4x32xbf16, #tpu.memory_space<vmem>>, %arg3: memref<1x32xf32, #tpu.memory_space<vmem>>, %arg4: memref<32x32xf32, #tpu.memory_space<vmem>>) attributes {dimension_semantics = [#tpu.dimension_semantics<parallel>], iteration_bounds = array<i64: 1>, scalar_prefetch = 0 : i64, scratch_operands = 0 : i64, tpu.core_type = #tpu.core_type<tc>, window_params = [{transform_indices = @transform_0, window_bounds = array<i64: 32, 4>}, {pipeline_mode = #tpu.pipeline_mode<synchronous>, transform_indices = @transform_1, window_bounds = array<i64: 4, 32>}, {pipeline_mode = #tpu.pipeline_mode<synchronous>, transform_indices = @transform_2, window_bounds = array<i64: 1, 32>}, {transform_indices = @transform_3, window_bounds = array<i64: 32, 32>}]} {
    %c0 = arith.constant 0 : index
    %c0_0 = arith.constant 0 : index
    %0 = vector.load %arg1[%c0, %c0_0] : memref<32x4xf32, #tpu.memory_space<vmem>>, vector<32x4xf32>
    %1 = arith.truncf %0 : vector<32x4xf32> to vector<32x4xbf16>
    %c0_1 = arith.constant 0 : index
    %c0_2 = arith.constant 0 : index
    %2 = vector.load %arg2[%c0_1, %c0_2] : memref<4x32xbf16, #tpu.memory_space<vmem>>, vector<4x32xbf16>
    %cst = arith.constant dense<0.000000e+00> : vector<32x32xf32>
    %3 = tpu.matmul %1, %2, %cst {dimension_numbers = #tpu.dot_dimension_numbers<[1], [0], [0], [1], [0, 0, 1, 1], [], []>} : vector<32x4xbf16>, vector<4x32xbf16>, vector<32x32xf32> -> vector<32x32xf32>
    %c0_3 = arith.constant 0 : index
    %c0_4 = arith.constant 0 : index
    %4 = vector.load %arg3[%c0_3, %c0_4] : memref<1x32xf32, #tpu.memory_space<vmem>>, vector<1x32xf32>
    %5 = vector.broadcast %4 : vector<1x32xf32> to vector<32x32xf32>
    %6 = arith.addf %3, %5 : vector<32x32xf32>
    %c0_5 = arith.constant 0 : index
    %c0_6 = arith.constant 0 : index
    %7 = vector.load %arg4[%c0_5, %c0_6] : memref<32x32xf32, #tpu.memory_space<vmem>>, vector<32x32xf32>
    tpu.vector_store %arg4[%c0_5, %c0_6], %6 {strides = array<i32>} : memref<32x32xf32, #tpu.memory_space<vmem>>, vector<32x32xf32>,
    return
  }
  func.func @transform_0(%arg0: i32) -> (i32, i32) {
    %c0_i32 = arith.constant 0 : i32
    %c0_i32_0 = arith.constant 0 : i32
    return %arg0, %c0_i32 : i32, i32
  }
  func.func @transform_1(%arg0: i32) -> (i32, i32) {
    %c0_i32 = arith.constant 0 : i32
    %c0_i32_0 = arith.constant 0 : i32
    %c0_i32_1 = arith.constant 0 : i32
    return %c0_i32, %c0_i32_0 : i32, i32
  }
  func.func @transform_2(%arg0: i32) -> (i32, i32) {
    %c0_i32 = arith.constant 0 : i32
    %c0_i32_0 = arith.constant 0 : i32
    %c0_i32_1 = arith.constant 0 : i32
    return %c0_i32, %c0_i32_0 : i32, i32
  }
  func.func @transform_3(%arg0: i32) -> (i32, i32) {
    %c0_i32 = arith.constant 0 : i32
    %c0_i32_0 = arith.constant 0 : i32
    return %arg0, %c0_i32 : i32, i32
  }
}

module attributes {stable_mosaic.version = 11 : i64} {
  func.func @_ln_proj_split_kernel(%arg0: i32, %arg1: memref<16x32xf32, #tpu.memory_space<vmem>>, %arg2: memref<1x32xf32, #tpu.memory_space<vmem>>, %arg3: memref<1x32xf32, #tpu.memory_space<vmem>>, %arg4: memref<32x32xbf16, #tpu.memory_space<vmem>>, %arg5: memref<16x32xf32, #tpu.memory_space<vmem>>) attributes {dimension_semantics = [#tpu.dimension_semantics<parallel>], iteration_bounds = array<i64: 1>, scalar_prefetch = 0 : i64, scratch_operands = 0 : i64, tpu.core_type = #tpu.core_type<tc>, window_params = [{transform_indices = @transform_0, window_bounds = array<i64: 16, 32>}, {pipeline_mode = #tpu.pipeline_mode<synchronous>, transform_indices = @transform_1, window_bounds = array<i64: 1, 32>}, {pipeline_mode = #tpu.pipeline_mode<synchronous>, transform_indices = @transform_2, window_bounds = array<i64: 1, 32>}, {pipeline_mode = #tpu.pipeline_mode<synchronous>, transform_indices = @transform_3, window_bounds = array<i64: 32, 32>}, {transform_indices = @transform_4, window_bounds = array<i64: 16, 32>}]} {
    %c0 = arith.constant 0 : index
    %c0_0 = arith.constant 0 : index
    %0 = vector.load %arg1[%c0, %c0_0] : memref<16x32xf32, #tpu.memory_space<vmem>>, vector<16x32xf32>
    %c0_1 = arith.constant 0 : index
    %c0_2 = arith.constant 0 : index
    %1 = vector.load %arg2[%c0_1, %c0_2] : memref<1x32xf32, #tpu.memory_space<vmem>>, vector<1x32xf32>
    %c0_3 = arith.constant 0 : index
    %c0_4 = arith.constant 0 : index
    %2 = vector.load %arg3[%c0_3, %c0_4] : memref<1x32xf32, #tpu.memory_space<vmem>>, vector<1x32xf32>
    %cst = arith.constant dense<0.000000e+00> : vector<16xf32>
    %3 = vector.multi_reduction <add>, %0, %cst [1] : vector<16x32xf32> to vector<16xf32>
    %4 = vector.shape_cast %3 : vector<16xf32> to vector<16x1xf32>
    %cst_5 = arith.constant 3.200000e+01 : f32
    %5 = vector.broadcast %cst_5 : f32 to vector<16x1xf32>
    %6 = arith.divf %4, %5 : vector<16x1xf32>
    %7 = vector.broadcast %6 : vector<16x1xf32> to vector<16x32xf32>
    %8 = arith.subf %0, %7 : vector<16x32xf32>
    %9 = arith.mulf %8, %8 : vector<16x32xf32>
    %cst_6 = arith.constant dense<0.000000e+00> : vector<16xf32>
    %10 = vector.multi_reduction <add>, %9, %cst_6 [1] : vector<16x32xf32> to vector<16xf32>
    %11 = vector.shape_cast %10 : vector<16xf32> to vector<16x1xf32>
    %cst_7 = arith.constant 3.200000e+01 : f32
    %12 = vector.broadcast %cst_7 : f32 to vector<16x1xf32>
    %13 = arith.divf %11, %12 : vector<16x1xf32>
    %14 = vector.broadcast %6 : vector<16x1xf32> to vector<16x32xf32>
    %15 = arith.subf %0, %14 : vector<16x32xf32>
    %cst_8 = arith.constant 9.99999974E-6 : f32
    %16 = vector.broadcast %cst_8 : f32 to vector<16x1xf32>
    %17 = arith.addf %13, %16 : vector<16x1xf32>
    %18 = math.rsqrt %17 : vector<16x1xf32>
    %19 = vector.broadcast %18 : vector<16x1xf32> to vector<16x32xf32>
    %20 = arith.mulf %15, %19 : vector<16x32xf32>
    %21 = vector.broadcast %1 : vector<1x32xf32> to vector<16x32xf32>
    %22 = arith.mulf %20, %21 : vector<16x32xf32>
    %23 = vector.broadcast %2 : vector<1x32xf32> to vector<16x32xf32>
    %24 = arith.addf %22, %23 : vector<16x32xf32>
    %25 = arith.truncf %24 : vector<16x32xf32> to vector<16x32xbf16>
    %c0_9 = arith.constant 0 : index
    %c0_10 = arith.constant 0 : index
    %26 = vector.load %arg4[%c0_9, %c0_10] : memref<32x32xbf16, #tpu.memory_space<vmem>>, vector<32x32xbf16>
    %cst_11 = arith.constant dense<0.000000e+00> : vector<16x32xf32>
    %27 = tpu.matmul %25, %26, %cst_11 {dimension_numbers = #tpu.dot_dimension_numbers<[1], [0], [0], [1], [0, 0, 1, 1], [], []>} : vector<16x32xbf16>, vector<32x32xbf16>, vector<16x32xf32> -> vector<16x32xf32>
    %c0_12 = arith.constant 0 : index
    %c0_13 = arith.constant 0 : index
    %28 = vector.load %arg5[%c0_12, %c0_13] : memref<16x32xf32, #tpu.memory_space<vmem>>, vector<16x32xf32>
    tpu.vector_store %arg5[%c0_12, %c0_13], %27 {strides = array<i32>} : memref<16x32xf32, #tpu.memory_space<vmem>>, vector<16x32xf32>,
    return
  }
  func.func @transform_0(%arg0: i32) -> (i32, i32) {
    %c0_i32 = arith.constant 0 : i32
    %c0_i32_0 = arith.constant 0 : i32
    return %arg0, %c0_i32 : i32, i32
  }
  func.func @transform_1(%arg0: i32) -> (i32, i32) {
    %c0_i32 = arith.constant 0 : i32
    %c0_i32_0 = arith.constant 0 : i32
    %c0_i32_1 = arith.constant 0 : i32
    return %c0_i32, %c0_i32_0 : i32, i32
  }
  func.func @transform_2(%arg0: i32) -> (i32, i32) {
    %c0_i32 = arith.constant 0 : i32
    %c0_i32_0 = arith.constant 0 : i32
    %c0_i32_1 = arith.constant 0 : i32
    return %c0_i32, %c0_i32_0 : i32, i32
  }
  func.func @transform_3(%arg0: i32) -> (i32, i32) {
    %c0_i32 = arith.constant 0 : i32
    %c0_i32_0 = arith.constant 0 : i32
    %c0_i32_1 = arith.constant 0 : i32
    return %c0_i32, %c0_i32_0 : i32, i32
  }
  func.func @transform_4(%arg0: i32) -> (i32, i32) {
    %c0_i32 = arith.constant 0 : i32
    %c0_i32_0 = arith.constant 0 : i32
    return %arg0, %c0_i32 : i32, i32
  }
}

module attributes {stable_mosaic.version = 11 : i64} {
  func.func @_flash_attn_kernel(%arg0: i32, %arg1: i32, %arg2: memref<1x8x32xf32, #tpu.memory_space<vmem>>, %arg3: memref<1x16x32xf32, #tpu.memory_space<vmem>>, %arg4: memref<1x16x32xf32, #tpu.memory_space<vmem>>, %arg5: memref<1x8x32xf32, #tpu.memory_space<vmem>>, %arg6: memref<2x8x1xf32, #tpu.memory_space<vmem>>, %arg7: memref<2x8x1xf32, #tpu.memory_space<vmem>>, %arg8: memref<8x32xf32, #tpu.memory_space<vmem>>) attributes {dimension_semantics = [#tpu.dimension_semantics<parallel>, #tpu.dimension_semantics<arbitrary>], iteration_bounds = array<i64: 2, 1>, scalar_prefetch = 0 : i64, scratch_operands = 3 : i64, tpu.core_type = #tpu.core_type<tc>, window_params = [{transform_indices = @transform_0, window_bounds = array<i64: 1, 8, 32>}, {transform_indices = @transform_1, window_bounds = array<i64: 1, 16, 32>}, {transform_indices = @transform_2, window_bounds = array<i64: 1, 16, 32>}, {transform_indices = @transform_3, window_bounds = array<i64: 1, 8, 32>}]} {
    %c0_i32 = arith.constant 0 : i32
    %0 = arith.cmpi eq, %arg1, %c0_i32 : i32
    %1 = arith.extui %0 : i1 to i32
    %c0_i32_0 = arith.constant 0 : i32
    %2 = arith.cmpi ne, %1, %c0_i32_0 : i32
    scf.if %2 {
      %cst_48 = arith.constant 0xFF800000 : f32
      %81 = vector.broadcast %cst_48 : f32 to vector<2x8x1xf32>
      %c0_49 = arith.constant 0 : index
      %c0_50 = arith.constant 0 : index
      %c0_51 = arith.constant 0 : index
      %82 = vector.load %arg6[%c0_49, %c0_50, %c0_51] : memref<2x8x1xf32, #tpu.memory_space<vmem>>, vector<2x8x1xf32>
      tpu.vector_store %arg6[%c0_49, %c0_50, %c0_51], %81 {strides = array<i32>} : memref<2x8x1xf32, #tpu.memory_space<vmem>>, vector<2x8x1xf32>,
      %cst_52 = arith.constant 0.000000e+00 : f32
      %83 = vector.broadcast %cst_52 : f32 to vector<2x8x1xf32>
      %c0_53 = arith.constant 0 : index
      %c0_54 = arith.constant 0 : index
      %c0_55 = arith.constant 0 : index
      %84 = vector.load %arg7[%c0_53, %c0_54, %c0_55] : memref<2x8x1xf32, #tpu.memory_space<vmem>>, vector<2x8x1xf32>
      tpu.vector_store %arg7[%c0_53, %c0_54, %c0_55], %83 {strides = array<i32>} : memref<2x8x1xf32, #tpu.memory_space<vmem>>, vector<2x8x1xf32>,
      %cst_56 = arith.constant 0.000000e+00 : f32
      %85 = vector.broadcast %cst_56 : f32 to vector<8x32xf32>
      %c0_57 = arith.constant 0 : index
      %c0_58 = arith.constant 0 : index
      %86 = vector.load %arg8[%c0_57, %c0_58] : memref<8x32xf32, #tpu.memory_space<vmem>>, vector<8x32xf32>
      tpu.vector_store %arg8[%c0_57, %c0_58], %85 {strides = array<i32>} : memref<8x32xf32, #tpu.memory_space<vmem>>, vector<8x32xf32>,
    } else {
    }
    %c0 = arith.constant 0 : index
    %c0_1 = arith.constant 0 : index
    %c0_2 = arith.constant 0 : index
    %3 = vector.load %arg2[%c0, %c0_1, %c0_2] : memref<1x8x32xf32, #tpu.memory_space<vmem>>, vector<1x8x32xf32>
    %4 = vector.shape_cast %3 : vector<1x8x32xf32> to vector<8x32xf32>
    %5 = arith.truncf %4 : vector<8x32xf32> to vector<8x32xbf16>
    %c0_3 = arith.constant 0 : index
    %c0_4 = arith.constant 0 : index
    %c0_5 = arith.constant 0 : index
    %6 = vector.load %arg3[%c0_3, %c0_4, %c0_5] : memref<1x16x32xf32, #tpu.memory_space<vmem>>, vector<1x16x32xf32>
    %7 = vector.shape_cast %6 : vector<1x16x32xf32> to vector<16x32xf32>
    %8 = arith.truncf %7 : vector<16x32xf32> to vector<16x32xbf16>
    %c0_6 = arith.constant 0 : index
    %c0_7 = arith.constant 0 : index
    %c0_8 = arith.constant 0 : index
    %9 = vector.load %arg4[%c0_6, %c0_7, %c0_8] : memref<1x16x32xf32, #tpu.memory_space<vmem>>, vector<1x16x32xf32>
    %10 = vector.shape_cast %9 : vector<1x16x32xf32> to vector<16x32xf32>
    %11 = arith.truncf %10 : vector<16x32xf32> to vector<16x32xbf16>
    %12 = vector.extract_strided_slice %5 {offsets = [0, 0], sizes = [8, 16], strides = [1, 1]} : vector<8x32xbf16> to vector<8x16xbf16>
    %13 = vector.extract_strided_slice %8 {offsets = [0, 0], sizes = [16, 16], strides = [1, 1]} : vector<16x32xbf16> to vector<16x16xbf16>
    %cst = arith.constant dense<0.000000e+00> : vector<8x16xf32>
    %14 = tpu.matmul %12, %13, %cst {dimension_numbers = #tpu.dot_dimension_numbers<[1], [1], [0], [0], [0, 0, 1, 0], [], []>} : vector<8x16xbf16>, vector<16x16xbf16>, vector<8x16xf32> -> vector<8x16xf32>
    %c0_9 = arith.constant 0 : index
    %c0_10 = arith.constant 0 : index
    %c0_11 = arith.constant 0 : index
    %15 = vector.load %arg6[%c0_9, %c0_10, %c0_11] : memref<2x8x1xf32, #tpu.memory_space<vmem>>, vector<1x8x1xf32>
    %16 = vector.shape_cast %15 : vector<1x8x1xf32> to vector<8x1xf32>
    %cst_12 = arith.constant dense<0xFF800000> : vector<8xf32>
    %17 = vector.multi_reduction <maximumf>, %14, %cst_12 [1] : vector<8x16xf32> to vector<8xf32>
    %18 = vector.shape_cast %17 : vector<8xf32> to vector<8x1xf32>
    %19 = arith.maximumf %16, %18 : vector<8x1xf32>
    %20 = arith.subf %16, %19 : vector<8x1xf32>
    %21 = math.exp %20 : vector<8x1xf32>
    %22 = vector.broadcast %19 : vector<8x1xf32> to vector<8x16xf32>
    %23 = arith.subf %14, %22 : vector<8x16xf32>
    %24 = math.exp %23 : vector<8x16xf32>
    %c0_13 = arith.constant 0 : index
    %c0_14 = arith.constant 0 : index
    %c0_15 = arith.constant 0 : index
    %25 = vector.load %arg7[%c0_13, %c0_14, %c0_15] : memref<2x8x1xf32, #tpu.memory_space<vmem>>, vector<1x8x1xf32>
    %26 = vector.shape_cast %25 : vector<1x8x1xf32> to vector<8x1xf32>
    %27 = arith.mulf %21, %26 : vector<8x1xf32>
    %cst_16 = arith.constant dense<0.000000e+00> : vector<8xf32>
    %28 = vector.multi_reduction <add>, %24, %cst_16 [1] : vector<8x16xf32> to vector<8xf32>
    %29 = vector.shape_cast %28 : vector<8xf32> to vector<8x1xf32>
    %30 = arith.addf %27, %29 : vector<8x1xf32>
    %c0_17 = arith.constant 0 : index
    %c0_18 = arith.constant 0 : index
    %c0_19 = arith.constant 0 : index
    %31 = vector.load %arg7[%c0_17, %c0_18, %c0_19] : memref<2x8x1xf32, #tpu.memory_space<vmem>>, vector<1x8x1xf32>
    %32 = vector.shape_cast %31 : vector<1x8x1xf32> to vector<8x1xf32>
    %33 = vector.shape_cast %30 : vector<8x1xf32> to vector<1x8x1xf32>
    tpu.vector_store %arg7[%c0_17, %c0_18, %c0_19], %33 {strides = array<i32>} : memref<2x8x1xf32, #tpu.memory_space<vmem>>, vector<1x8x1xf32>,
    %c0_20 = arith.constant 0 : index
    %c0_21 = arith.constant 0 : index
    %34 = vector.load %arg8[%c0_20, %c0_21] : memref<8x32xf32, #tpu.memory_space<vmem>>, vector<8x16xf32>
    %35 = vector.broadcast %21 : vector<8x1xf32> to vector<8x16xf32>
    %36 = arith.mulf %35, %34 : vector<8x16xf32>
    %37 = arith.truncf %24 : vector<8x16xf32> to vector<8x16xbf16>
    %38 = vector.extract_strided_slice %11 {offsets = [0, 0], sizes = [16, 16], strides = [1, 1]} : vector<16x32xbf16> to vector<16x16xbf16>
    %cst_22 = arith.constant dense<0.000000e+00> : vector<8x16xf32>
    %39 = tpu.matmul %37, %38, %cst_22 {dimension_numbers = #tpu.dot_dimension_numbers<[1], [0], [0], [1], [0, 0, 1, 1], [], []>} : vector<8x16xbf16>, vector<16x16xbf16>, vector<8x16xf32> -> vector<8x16xf32>
    %40 = arith.addf %36, %39 : vector<8x16xf32>
    %c0_23 = arith.constant 0 : index
    %c0_24 = arith.constant 0 : index
    %41 = vector.load %arg8[%c0_23, %c0_24] : memref<8x32xf32, #tpu.memory_space<vmem>>, vector<8x16xf32>
    tpu.vector_store %arg8[%c0_23, %c0_24], %40 {strides = array<i32>} : memref<8x32xf32, #tpu.memory_space<vmem>>, vector<8x16xf32>,
    %c0_25 = arith.constant 0 : index
    %c0_26 = arith.constant 0 : index
    %c0_27 = arith.constant 0 : index
    %42 = vector.load %arg6[%c0_25, %c0_26, %c0_27] : memref<2x8x1xf32, #tpu.memory_space<vmem>>, vector<1x8x1xf32>
    %43 = vector.shape_cast %42 : vector<1x8x1xf32> to vector<8x1xf32>
    %44 = vector.shape_cast %19 : vector<8x1xf32> to vector<1x8x1xf32>
    tpu.vector_store %arg6[%c0_25, %c0_26, %c0_27], %44 {strides = array<i32>} : memref<2x8x1xf32, #tpu.memory_space<vmem>>, vector<1x8x1xf32>,
    %45 = vector.extract_strided_slice %5 {offsets = [0, 16], sizes = [8, 16], strides = [1, 1]} : vector<8x32xbf16> to vector<8x16xbf16>
    %46 = vector.extract_strided_slice %8 {offsets = [0, 16], sizes = [16, 16], strides = [1, 1]} : vector<16x32xbf16> to vector<16x16xbf16>
    %cst_28 = arith.constant dense<0.000000e+00> : vector<8x16xf32>
    %47 = tpu.matmul %45, %46, %cst_28 {dimension_numbers = #tpu.dot_dimension_numbers<[1], [1], [0], [0], [0, 0, 1, 0], [], []>} : vector<8x16xbf16>, vector<16x16xbf16>, vector<8x16xf32> -> vector<8x16xf32>
    %c1 = arith.constant 1 : index
    %c0_29 = arith.constant 0 : index
    %c0_30 = arith.constant 0 : index
    %48 = vector.load %arg6[%c1, %c0_29, %c0_30] : memref<2x8x1xf32, #tpu.memory_space<vmem>>, vector<1x8x1xf32>
    %49 = vector.shape_cast %48 : vector<1x8x1xf32> to vector<8x1xf32>
    %cst_31 = arith.constant dense<0xFF800000> : vector<8xf32>
    %50 = vector.multi_reduction <maximumf>, %47, %cst_31 [1] : vector<8x16xf32> to vector<8xf32>
    %51 = vector.shape_cast %50 : vector<8xf32> to vector<8x1xf32>
    %52 = arith.maximumf %49, %51 : vector<8x1xf32>
    %53 = arith.subf %49, %52 : vector<8x1xf32>
    %54 = math.exp %53 : vector<8x1xf32>
    %55 = vector.broadcast %52 : vector<8x1xf32> to vector<8x16xf32>
    %56 = arith.subf %47, %55 : vector<8x16xf32>
    %57 = math.exp %56 : vector<8x16xf32>
    %c1_32 = arith.constant 1 : index
    %c0_33 = arith.constant 0 : index
    %c0_34 = arith.constant 0 : index
    %58 = vector.load %arg7[%c1_32, %c0_33, %c0_34] : memref<2x8x1xf32, #tpu.memory_space<vmem>>, vector<1x8x1xf32>
    %59 = vector.shape_cast %58 : vector<1x8x1xf32> to vector<8x1xf32>
    %60 = arith.mulf %54, %59 : vector<8x1xf32>
    %cst_35 = arith.constant dense<0.000000e+00> : vector<8xf32>
    %61 = vector.multi_reduction <add>, %57, %cst_35 [1] : vector<8x16xf32> to vector<8xf32>
    %62 = vector.shape_cast %61 : vector<8xf32> to vector<8x1xf32>
    %63 = arith.addf %60, %62 : vector<8x1xf32>
    %c1_36 = arith.constant 1 : index
    %c0_37 = arith.constant 0 : index
    %c0_38 = arith.constant 0 : index
    %64 = vector.load %arg7[%c1_36, %c0_37, %c0_38] : memref<2x8x1xf32, #tpu.memory_space<vmem>>, vector<1x8x1xf32>
    %65 = vector.shape_cast %64 : vector<1x8x1xf32> to vector<8x1xf32>
    %66 = vector.shape_cast %63 : vector<8x1xf32> to vector<1x8x1xf32>
    tpu.vector_store %arg7[%c1_36, %c0_37, %c0_38], %66 {strides = array<i32>} : memref<2x8x1xf32, #tpu.memory_space<vmem>>, vector<1x8x1xf32>,
    %c0_39 = arith.constant 0 : index
    %c16 = arith.constant 16 : index
    %67 = vector.load %arg8[%c0_39, %c16] : memref<8x32xf32, #tpu.memory_space<vmem>>, vector<8x16xf32>
    %68 = vector.broadcast %54 : vector<8x1xf32> to vector<8x16xf32>
    %69 = arith.mulf %68, %67 : vector<8x16xf32>
    %70 = arith.truncf %57 : vector<8x16xf32> to vector<8x16xbf16>
    %71 = vector.extract_strided_slice %11 {offsets = [0, 16], sizes = [16, 16], strides = [1, 1]} : vector<16x32xbf16> to vector<16x16xbf16>
    %cst_40 = arith.constant dense<0.000000e+00> : vector<8x16xf32>
    %72 = tpu.matmul %70, %71, %cst_40 {dimension_numbers = #tpu.dot_dimension_numbers<[1], [0], [0], [1], [0, 0, 1, 1], [], []>} : vector<8x16xbf16>, vector<16x16xbf16>, vector<8x16xf32> -> vector<8x16xf32>
    %73 = arith.addf %69, %72 : vector<8x16xf32>
    %c0_41 = arith.constant 0 : index
    %c16_42 = arith.constant 16 : index
    %74 = vector.load %arg8[%c0_41, %c16_42] : memref<8x32xf32, #tpu.memory_space<vmem>>, vector<8x16xf32>
    tpu.vector_store %arg8[%c0_41, %c16_42], %73 {strides = array<i32>} : memref<8x32xf32, #tpu.memory_space<vmem>>, vector<8x16xf32>,
    %c1_43 = arith.constant 1 : index
    %c0_44 = arith.constant 0 : index
    %c0_45 = arith.constant 0 : index
    %75 = vector.load %arg6[%c1_43, %c0_44, %c0_45] : memref<2x8x1xf32, #tpu.memory_space<vmem>>, vector<1x8x1xf32>
    %76 = vector.shape_cast %75 : vector<1x8x1xf32> to vector<8x1xf32>
    %77 = vector.shape_cast %52 : vector<8x1xf32> to vector<1x8x1xf32>
    tpu.vector_store %arg6[%c1_43, %c0_44, %c0_45], %77 {strides = array<i32>} : memref<2x8x1xf32, #tpu.memory_space<vmem>>, vector<1x8x1xf32>,
    %c0_i32_46 = arith.constant 0 : i32
    %78 = arith.cmpi eq, %arg1, %c0_i32_46 : i32
    %79 = arith.extui %78 : i1 to i32
    %c0_i32_47 = arith.constant 0 : i32
    %80 = arith.cmpi ne, %79, %c0_i32_47 : i32
    scf.if %80 {
      %c0_48 = arith.constant 0 : index
      %c0_49 = arith.constant 0 : index
      %c0_50 = arith.constant 0 : index
      %81 = vector.load %arg7[%c0_48, %c0_49, %c0_50] : memref<2x8x1xf32, #tpu.memory_space<vmem>>, vector<1x8x1xf32>
      %82 = vector.shape_cast %81 : vector<1x8x1xf32> to vector<8x1xf32>
      %cst_51 = arith.constant 1.000000e+00 : f32
      %83 = vector.broadcast %cst_51 : f32 to vector<8x1xf32>
      %84 = arith.divf %83, %82 : vector<8x1xf32>
      %85 = vector.shape_cast %84 : vector<8x1xf32> to vector<8x1xf32>
      %86 = vector.broadcast %85 : vector<8x1xf32> to vector<8x16xf32>
      %c1_52 = arith.constant 1 : index
      %c0_53 = arith.constant 0 : index
      %c0_54 = arith.constant 0 : index
      %87 = vector.load %arg7[%c1_52, %c0_53, %c0_54] : memref<2x8x1xf32, #tpu.memory_space<vmem>>, vector<1x8x1xf32>
      %88 = vector.shape_cast %87 : vector<1x8x1xf32> to vector<8x1xf32>
      %cst_55 = arith.constant 1.000000e+00 : f32
      %89 = vector.broadcast %cst_55 : f32 to vector<8x1xf32>
      %90 = arith.divf %89, %88 : vector<8x1xf32>
      %91 = vector.shape_cast %90 : vector<8x1xf32> to vector<8x1xf32>
      %92 = vector.broadcast %91 : vector<8x1xf32> to vector<8x16xf32>
      %93 = tpu.concatenate %86, %92 in 1 : vector<8x16xf32>, vector<8x16xf32> -> vector<8x32xf32>
      %c0_56 = arith.constant 0 : index
      %c0_57 = arith.constant 0 : index
      %94 = vector.load %arg8[%c0_56, %c0_57] : memref<8x32xf32, #tpu.memory_space<vmem>>, vector<8x32xf32>
      %95 = arith.mulf %94, %93 : vector<8x32xf32>
      %c0_58 = arith.constant 0 : index
      %c0_59 = arith.constant 0 : index
      %c0_60 = arith.constant 0 : index
      %96 = vector.load %arg5[%c0_58, %c0_59, %c0_60] : memref<1x8x32xf32, #tpu.memory_space<vmem>>, vector<1x8x32xf32>
      %97 = vector.shape_cast %96 : vector<1x8x32xf32> to vector<8x32xf32>
      %98 = vector.shape_cast %95 : vector<8x32xf32> to vector<1x8x32xf32>
      tpu.vector_store %arg5[%c0_58, %c0_59, %c0_60], %98 {strides = array<i32>} : memref<1x8x32xf32, #tpu.memory_space<vmem>>, vector<1x8x32xf32>,
    } else {
    }
    return
  }
  func.func @transform_0(%arg0: i32, %arg1: i32) -> (i32, i32, i32) {
    %c0_i32 = arith.constant 0 : i32
    %c0_i32_0 = arith.constant 0 : i32
    %c0_i32_1 = arith.constant 0 : i32
    return %arg0, %c0_i32, %c0_i32_0 : i32, i32, i32
  }
  func.func @transform_1(%arg0: i32, %arg1: i32) -> (i32, i32, i32) {
    %c0_i32 = arith.constant 0 : i32
    %c0_i32_0 = arith.constant 0 : i32
    return %arg0, %arg1, %c0_i32 : i32, i32, i32
  }
  func.func @transform_2(%arg0: i32, %arg1: i32) -> (i32, i32, i32) {
    %c0_i32 = arith.constant 0 : i32
    %c0_i32_0 = arith.constant 0 : i32
    return %arg0, %arg1, %c0_i32 : i32, i32, i32
  }
  func.func @transform_3(%arg0: i32, %arg1: i32) -> (i32, i32, i32) {
    %c0_i32 = arith.constant 0 : i32
    %c0_i32_0 = arith.constant 0 : i32
    %c0_i32_1 = arith.constant 0 : i32
    return %arg0, %c0_i32, %c0_i32_0 : i32, i32, i32
  }
}

module attributes {stable_mosaic.version = 11 : i64} {
  func.func @_ln_mlp_res_kernel(%arg0: i32, %arg1: i32, %arg2: memref<16x32xf32, #tpu.memory_space<vmem>>, %arg3: memref<1x32xf32, #tpu.memory_space<vmem>>, %arg4: memref<1x32xf32, #tpu.memory_space<vmem>>, %arg5: memref<32x128xbf16, #tpu.memory_space<vmem>>, %arg6: memref<1x128xf32, #tpu.memory_space<vmem>>, %arg7: memref<128x32xbf16, #tpu.memory_space<vmem>>, %arg8: memref<1x32xf32, #tpu.memory_space<vmem>>, %arg9: memref<16x32xf32, #tpu.memory_space<vmem>>, %arg10: memref<16x32xf32, #tpu.memory_space<vmem>>, %arg11: memref<16x32xf32, #tpu.memory_space<vmem>>) attributes {dimension_semantics = [#tpu.dimension_semantics<parallel>, #tpu.dimension_semantics<arbitrary>], iteration_bounds = array<i64: 1, 1>, scalar_prefetch = 0 : i64, scratch_operands = 2 : i64, tpu.core_type = #tpu.core_type<tc>, window_params = [{transform_indices = @transform_0, window_bounds = array<i64: 16, 32>}, {pipeline_mode = #tpu.pipeline_mode<synchronous>, transform_indices = @transform_1, window_bounds = array<i64: 1, 32>}, {pipeline_mode = #tpu.pipeline_mode<synchronous>, transform_indices = @transform_2, window_bounds = array<i64: 1, 32>}, {transform_indices = @transform_3, window_bounds = array<i64: 32, 128>}, {transform_indices = @transform_4, window_bounds = array<i64: 1, 128>}, {transform_indices = @transform_5, window_bounds = array<i64: 128, 32>}, {pipeline_mode = #tpu.pipeline_mode<synchronous>, transform_indices = @transform_6, window_bounds = array<i64: 1, 32>}, {transform_indices = @transform_7, window_bounds = array<i64: 16, 32>}]} {
    %c0_i32 = arith.constant 0 : i32
    %0 = arith.cmpi eq, %arg1, %c0_i32 : i32
    %1 = arith.extui %0 : i1 to i32
    %c0_i32_0 = arith.constant 0 : i32
    %2 = arith.cmpi ne, %1, %c0_i32_0 : i32
    scf.if %2 {
      %c0_18 = arith.constant 0 : index
      %c0_19 = arith.constant 0 : index
      %27 = vector.load %arg2[%c0_18, %c0_19] : memref<16x32xf32, #tpu.memory_space<vmem>>, vector<16x32xf32>
      %c0_20 = arith.constant 0 : index
      %c0_21 = arith.constant 0 : index
      %28 = vector.load %arg3[%c0_20, %c0_21] : memref<1x32xf32, #tpu.memory_space<vmem>>, vector<1x32xf32>
      %c0_22 = arith.constant 0 : index
      %c0_23 = arith.constant 0 : index
      %29 = vector.load %arg4[%c0_22, %c0_23] : memref<1x32xf32, #tpu.memory_space<vmem>>, vector<1x32xf32>
      %cst_24 = arith.constant dense<0.000000e+00> : vector<16xf32>
      %30 = vector.multi_reduction <add>, %27, %cst_24 [1] : vector<16x32xf32> to vector<16xf32>
      %31 = vector.shape_cast %30 : vector<16xf32> to vector<16x1xf32>
      %cst_25 = arith.constant 3.200000e+01 : f32
      %32 = vector.broadcast %cst_25 : f32 to vector<16x1xf32>
      %33 = arith.divf %31, %32 : vector<16x1xf32>
      %34 = vector.broadcast %33 : vector<16x1xf32> to vector<16x32xf32>
      %35 = arith.subf %27, %34 : vector<16x32xf32>
      %36 = arith.mulf %35, %35 : vector<16x32xf32>
      %cst_26 = arith.constant dense<0.000000e+00> : vector<16xf32>
      %37 = vector.multi_reduction <add>, %36, %cst_26 [1] : vector<16x32xf32> to vector<16xf32>
      %38 = vector.shape_cast %37 : vector<16xf32> to vector<16x1xf32>
      %cst_27 = arith.constant 3.200000e+01 : f32
      %39 = vector.broadcast %cst_27 : f32 to vector<16x1xf32>
      %40 = arith.divf %38, %39 : vector<16x1xf32>
      %41 = vector.broadcast %33 : vector<16x1xf32> to vector<16x32xf32>
      %42 = arith.subf %27, %41 : vector<16x32xf32>
      %cst_28 = arith.constant 9.99999974E-6 : f32
      %43 = vector.broadcast %cst_28 : f32 to vector<16x1xf32>
      %44 = arith.addf %40, %43 : vector<16x1xf32>
      %45 = math.rsqrt %44 : vector<16x1xf32>
      %46 = vector.broadcast %45 : vector<16x1xf32> to vector<16x32xf32>
      %47 = arith.mulf %42, %46 : vector<16x32xf32>
      %48 = vector.broadcast %28 : vector<1x32xf32> to vector<16x32xf32>
      %49 = arith.mulf %47, %48 : vector<16x32xf32>
      %50 = vector.broadcast %29 : vector<1x32xf32> to vector<16x32xf32>
      %51 = arith.addf %49, %50 : vector<16x32xf32>
      %c0_29 = arith.constant 0 : index
      %c0_30 = arith.constant 0 : index
      %52 = vector.load %arg10[%c0_29, %c0_30] : memref<16x32xf32, #tpu.memory_space<vmem>>, vector<16x32xf32>
      tpu.vector_store %arg10[%c0_29, %c0_30], %51 {strides = array<i32>} : memref<16x32xf32, #tpu.memory_space<vmem>>, vector<16x32xf32>,
      %cst_31 = arith.constant 0.000000e+00 : f32
      %53 = vector.broadcast %cst_31 : f32 to vector<16x32xf32>
      %c0_32 = arith.constant 0 : index
      %c0_33 = arith.constant 0 : index
      %54 = vector.load %arg11[%c0_32, %c0_33] : memref<16x32xf32, #tpu.memory_space<vmem>>, vector<16x32xf32>
      tpu.vector_store %arg11[%c0_32, %c0_33], %53 {strides = array<i32>} : memref<16x32xf32, #tpu.memory_space<vmem>>, vector<16x32xf32>,
    } else {
    }
    %c0 = arith.constant 0 : index
    %c0_1 = arith.constant 0 : index
    %3 = vector.load %arg10[%c0, %c0_1] : memref<16x32xf32, #tpu.memory_space<vmem>>, vector<16x32xf32>
    %4 = arith.truncf %3 : vector<16x32xf32> to vector<16x32xbf16>
    %c0_2 = arith.constant 0 : index
    %c0_3 = arith.constant 0 : index
    %5 = vector.load %arg5[%c0_2, %c0_3] : memref<32x128xbf16, #tpu.memory_space<vmem>>, vector<32x128xbf16>
    %cst = arith.constant dense<0.000000e+00> : vector<16x128xf32>
    %6 = tpu.matmul %4, %5, %cst {dimension_numbers = #tpu.dot_dimension_numbers<[1], [0], [0], [1], [0, 0, 1, 1], [], []>} : vector<16x32xbf16>, vector<32x128xbf16>, vector<16x128xf32> -> vector<16x128xf32>
    %c0_4 = arith.constant 0 : index
    %c0_5 = arith.constant 0 : index
    %7 = vector.load %arg6[%c0_4, %c0_5] : memref<1x128xf32, #tpu.memory_space<vmem>>, vector<1x128xf32>
    %8 = vector.broadcast %7 : vector<1x128xf32> to vector<16x128xf32>
    %9 = arith.addf %6, %8 : vector<16x128xf32>
    %cst_6 = arith.constant 5.000000e-01 : f32
    %10 = vector.broadcast %cst_6 : f32 to vector<16x128xf32>
    %11 = arith.mulf %10, %9 : vector<16x128xf32>
    %cst_7 = arith.constant 0.707106769 : f32
    %12 = vector.broadcast %cst_7 : f32 to vector<16x128xf32>
    %13 = arith.mulf %9, %12 : vector<16x128xf32>
    %14 = math.erf %13 : vector<16x128xf32>
    %cst_8 = arith.constant 1.000000e+00 : f32
    %15 = vector.broadcast %cst_8 : f32 to vector<16x128xf32>
    %16 = arith.addf %15, %14 : vector<16x128xf32>
    %17 = arith.mulf %11, %16 : vector<16x128xf32>
    %c0_9 = arith.constant 0 : index
    %c0_10 = arith.constant 0 : index
    %18 = vector.load %arg11[%c0_9, %c0_10] : memref<16x32xf32, #tpu.memory_space<vmem>>, vector<16x32xf32>
    %19 = arith.truncf %17 : vector<16x128xf32> to vector<16x128xbf16>
    %c0_11 = arith.constant 0 : index
    %c0_12 = arith.constant 0 : index
    %20 = vector.load %arg7[%c0_11, %c0_12] : memref<128x32xbf16, #tpu.memory_space<vmem>>, vector<128x32xbf16>
    %cst_13 = arith.constant dense<0.000000e+00> : vector<16x32xf32>
    %21 = tpu.matmul %19, %20, %cst_13 {dimension_numbers = #tpu.dot_dimension_numbers<[1], [0], [0], [1], [0, 0, 1, 1], [], []>} : vector<16x128xbf16>, vector<128x32xbf16>, vector<16x32xf32> -> vector<16x32xf32>
    %22 = arith.addf %18, %21 : vector<16x32xf32>
    %c0_14 = arith.constant 0 : index
    %c0_15 = arith.constant 0 : index
    %23 = vector.load %arg11[%c0_14, %c0_15] : memref<16x32xf32, #tpu.memory_space<vmem>>, vector<16x32xf32>
    tpu.vector_store %arg11[%c0_14, %c0_15], %22 {strides = array<i32>} : memref<16x32xf32, #tpu.memory_space<vmem>>, vector<16x32xf32>,
    %c0_i32_16 = arith.constant 0 : i32
    %24 = arith.cmpi eq, %arg1, %c0_i32_16 : i32
    %25 = arith.extui %24 : i1 to i32
    %c0_i32_17 = arith.constant 0 : i32
    %26 = arith.cmpi ne, %25, %c0_i32_17 : i32
    scf.if %26 {
      %c0_18 = arith.constant 0 : index
      %c0_19 = arith.constant 0 : index
      %27 = vector.load %arg2[%c0_18, %c0_19] : memref<16x32xf32, #tpu.memory_space<vmem>>, vector<16x32xf32>
      %c0_20 = arith.constant 0 : index
      %c0_21 = arith.constant 0 : index
      %28 = vector.load %arg11[%c0_20, %c0_21] : memref<16x32xf32, #tpu.memory_space<vmem>>, vector<16x32xf32>
      %29 = arith.addf %27, %28 : vector<16x32xf32>
      %c0_22 = arith.constant 0 : index
      %c0_23 = arith.constant 0 : index
      %30 = vector.load %arg8[%c0_22, %c0_23] : memref<1x32xf32, #tpu.memory_space<vmem>>, vector<1x32xf32>
      %31 = vector.broadcast %30 : vector<1x32xf32> to vector<16x32xf32>
      %32 = arith.addf %29, %31 : vector<16x32xf32>
      %c0_24 = arith.constant 0 : index
      %c0_25 = arith.constant 0 : index
      %33 = vector.load %arg9[%c0_24, %c0_25] : memref<16x32xf32, #tpu.memory_space<vmem>>, vector<16x32xf32>
      tpu.vector_store %arg9[%c0_24, %c0_25], %32 {strides = array<i32>} : memref<16x32xf32, #tpu.memory_space<vmem>>, vector<16x32xf32>,
    } else {
    }
    return
  }
  func.func @transform_0(%arg0: i32, %arg1: i32) -> (i32, i32) {
    %c0_i32 = arith.constant 0 : i32
    %c0_i32_0 = arith.constant 0 : i32
    return %arg0, %c0_i32 : i32, i32
  }
  func.func @transform_1(%arg0: i32, %arg1: i32) -> (i32, i32) {
    %c0_i32 = arith.constant 0 : i32
    %c0_i32_0 = arith.constant 0 : i32
    %c0_i32_1 = arith.constant 0 : i32
    return %c0_i32, %c0_i32_0 : i32, i32
  }
  func.func @transform_2(%arg0: i32, %arg1: i32) -> (i32, i32) {
    %c0_i32 = arith.constant 0 : i32
    %c0_i32_0 = arith.constant 0 : i32
    %c0_i32_1 = arith.constant 0 : i32
    return %c0_i32, %c0_i32_0 : i32, i32
  }
  func.func @transform_3(%arg0: i32, %arg1: i32) -> (i32, i32) {
    %c0_i32 = arith.constant 0 : i32
    %c0_i32_0 = arith.constant 0 : i32
    return %c0_i32, %arg1 : i32, i32
  }
  func.func @transform_4(%arg0: i32, %arg1: i32) -> (i32, i32) {
    %c0_i32 = arith.constant 0 : i32
    %c0_i32_0 = arith.constant 0 : i32
    return %c0_i32, %arg1 : i32, i32
  }
  func.func @transform_5(%arg0: i32, %arg1: i32) -> (i32, i32) {
    %c0_i32 = arith.constant 0 : i32
    %c0_i32_0 = arith.constant 0 : i32
    return %arg1, %c0_i32 : i32, i32
  }
  func.func @transform_6(%arg0: i32, %arg1: i32) -> (i32, i32) {
    %c0_i32 = arith.constant 0 : i32
    %c0_i32_0 = arith.constant 0 : i32
    %c0_i32_1 = arith.constant 0 : i32
    return %c0_i32, %c0_i32_0 : i32, i32
  }
  func.func @transform_7(%arg0: i32, %arg1: i32) -> (i32, i32) {
    %c0_i32 = arith.constant 0 : i32
    %c0_i32_0 = arith.constant 0 : i32
    return %arg0, %c0_i32 : i32, i32
  }
}

module attributes {stable_mosaic.version = 11 : i64} {
  func.func @_ln_proj_split_kernel(%arg0: i32, %arg1: memref<16x32xf32, #tpu.memory_space<vmem>>, %arg2: memref<1x32xf32, #tpu.memory_space<vmem>>, %arg3: memref<1x32xf32, #tpu.memory_space<vmem>>, %arg4: memref<32x96xbf16, #tpu.memory_space<vmem>>, %arg5: memref<16x32xf32, #tpu.memory_space<vmem>>, %arg6: memref<16x32xf32, #tpu.memory_space<vmem>>, %arg7: memref<16x32xf32, #tpu.memory_space<vmem>>) attributes {dimension_semantics = [#tpu.dimension_semantics<parallel>], iteration_bounds = array<i64: 1>, scalar_prefetch = 0 : i64, scratch_operands = 0 : i64, tpu.core_type = #tpu.core_type<tc>, window_params = [{transform_indices = @transform_0, window_bounds = array<i64: 16, 32>}, {pipeline_mode = #tpu.pipeline_mode<synchronous>, transform_indices = @transform_1, window_bounds = array<i64: 1, 32>}, {pipeline_mode = #tpu.pipeline_mode<synchronous>, transform_indices = @transform_2, window_bounds = array<i64: 1, 32>}, {pipeline_mode = #tpu.pipeline_mode<synchronous>, transform_indices = @transform_3, window_bounds = array<i64: 32, 96>}, {transform_indices = @transform_4, window_bounds = array<i64: 16, 32>}, {transform_indices = @transform_5, window_bounds = array<i64: 16, 32>}, {transform_indices = @transform_6, window_bounds = array<i64: 16, 32>}]} {
    %c0 = arith.constant 0 : index
    %c0_0 = arith.constant 0 : index
    %0 = vector.load %arg1[%c0, %c0_0] : memref<16x32xf32, #tpu.memory_space<vmem>>, vector<16x32xf32>
    %c0_1 = arith.constant 0 : index
    %c0_2 = arith.constant 0 : index
    %1 = vector.load %arg2[%c0_1, %c0_2] : memref<1x32xf32, #tpu.memory_space<vmem>>, vector<1x32xf32>
    %c0_3 = arith.constant 0 : index
    %c0_4 = arith.constant 0 : index
    %2 = vector.load %arg3[%c0_3, %c0_4] : memref<1x32xf32, #tpu.memory_space<vmem>>, vector<1x32xf32>
    %cst = arith.constant dense<0.000000e+00> : vector<16xf32>
    %3 = vector.multi_reduction <add>, %0, %cst [1] : vector<16x32xf32> to vector<16xf32>
    %4 = vector.shape_cast %3 : vector<16xf32> to vector<16x1xf32>
    %cst_5 = arith.constant 3.200000e+01 : f32
    %5 = vector.broadcast %cst_5 : f32 to vector<16x1xf32>
    %6 = arith.divf %4, %5 : vector<16x1xf32>
    %7 = vector.broadcast %6 : vector<16x1xf32> to vector<16x32xf32>
    %8 = arith.subf %0, %7 : vector<16x32xf32>
    %9 = arith.mulf %8, %8 : vector<16x32xf32>
    %cst_6 = arith.constant dense<0.000000e+00> : vector<16xf32>
    %10 = vector.multi_reduction <add>, %9, %cst_6 [1] : vector<16x32xf32> to vector<16xf32>
    %11 = vector.shape_cast %10 : vector<16xf32> to vector<16x1xf32>
    %cst_7 = arith.constant 3.200000e+01 : f32
    %12 = vector.broadcast %cst_7 : f32 to vector<16x1xf32>
    %13 = arith.divf %11, %12 : vector<16x1xf32>
    %14 = vector.broadcast %6 : vector<16x1xf32> to vector<16x32xf32>
    %15 = arith.subf %0, %14 : vector<16x32xf32>
    %cst_8 = arith.constant 9.99999974E-6 : f32
    %16 = vector.broadcast %cst_8 : f32 to vector<16x1xf32>
    %17 = arith.addf %13, %16 : vector<16x1xf32>
    %18 = math.rsqrt %17 : vector<16x1xf32>
    %19 = vector.broadcast %18 : vector<16x1xf32> to vector<16x32xf32>
    %20 = arith.mulf %15, %19 : vector<16x32xf32>
    %21 = vector.broadcast %1 : vector<1x32xf32> to vector<16x32xf32>
    %22 = arith.mulf %20, %21 : vector<16x32xf32>
    %23 = vector.broadcast %2 : vector<1x32xf32> to vector<16x32xf32>
    %24 = arith.addf %22, %23 : vector<16x32xf32>
    %25 = arith.truncf %24 : vector<16x32xf32> to vector<16x32xbf16>
    %c0_9 = arith.constant 0 : index
    %c0_10 = arith.constant 0 : index
    %26 = vector.load %arg4[%c0_9, %c0_10] : memref<32x96xbf16, #tpu.memory_space<vmem>>, vector<32x96xbf16>
    %cst_11 = arith.constant dense<0.000000e+00> : vector<16x96xf32>
    %27 = tpu.matmul %25, %26, %cst_11 {dimension_numbers = #tpu.dot_dimension_numbers<[1], [0], [0], [1], [0, 0, 1, 1], [], []>} : vector<16x32xbf16>, vector<32x96xbf16>, vector<16x96xf32> -> vector<16x96xf32>
    %28 = vector.extract_strided_slice %27 {offsets = [0, 0], sizes = [16, 32], strides = [1, 1]} : vector<16x96xf32> to vector<16x32xf32>
    %c0_12 = arith.constant 0 : index
    %c0_13 = arith.constant 0 : index
    %29 = vector.load %arg5[%c0_12, %c0_13] : memref<16x32xf32, #tpu.memory_space<vmem>>, vector<16x32xf32>
    tpu.vector_store %arg5[%c0_12, %c0_13], %28 {strides = array<i32>} : memref<16x32xf32, #tpu.memory_space<vmem>>, vector<16x32xf32>,
    %30 = vector.extract_strided_slice %27 {offsets = [0, 32], sizes = [16, 32], strides = [1, 1]} : vector<16x96xf32> to vector<16x32xf32>
    %c0_14 = arith.constant 0 : index
    %c0_15 = arith.constant 0 : index
    %31 = vector.load %arg6[%c0_14, %c0_15] : memref<16x32xf32, #tpu.memory_space<vmem>>, vector<16x32xf32>
    tpu.vector_store %arg6[%c0_14, %c0_15], %30 {strides = array<i32>} : memref<16x32xf32, #tpu.memory_space<vmem>>, vector<16x32xf32>,
    %32 = vector.extract_strided_slice %27 {offsets = [0, 64], sizes = [16, 32], strides = [1, 1]} : vector<16x96xf32> to vector<16x32xf32>
    %c0_16 = arith.constant 0 : index
    %c0_17 = arith.constant 0 : index
    %33 = vector.load %arg7[%c0_16, %c0_17] : memref<16x32xf32, #tpu.memory_space<vmem>>, vector<16x32xf32>
    tpu.vector_store %arg7[%c0_16, %c0_17], %32 {strides = array<i32>} : memref<16x32xf32, #tpu.memory_space<vmem>>, vector<16x32xf32>,
    return
  }
  func.func @transform_0(%arg0: i32) -> (i32, i32) {
    %c0_i32 = arith.constant 0 : i32
    %c0_i32_0 = arith.constant 0 : i32
    return %arg0, %c0_i32 : i32, i32
  }
  func.func @transform_1(%arg0: i32) -> (i32, i32) {
    %c0_i32 = arith.constant 0 : i32
    %c0_i32_0 = arith.constant 0 : i32
    %c0_i32_1 = arith.constant 0 : i32
    return %c0_i32, %c0_i32_0 : i32, i32
  }
  func.func @transform_2(%arg0: i32) -> (i32, i32) {
    %c0_i32 = arith.constant 0 : i32
    %c0_i32_0 = arith.constant 0 : i32
    %c0_i32_1 = arith.constant 0 : i32
    return %c0_i32, %c0_i32_0 : i32, i32
  }
  func.func @transform_3(%arg0: i32) -> (i32, i32) {
    %c0_i32 = arith.constant 0 : i32
    %c0_i32_0 = arith.constant 0 : i32
    %c0_i32_1 = arith.constant 0 : i32
    return %c0_i32, %c0_i32_0 : i32, i32
  }
  func.func @transform_4(%arg0: i32) -> (i32, i32) {
    %c0_i32 = arith.constant 0 : i32
    %c0_i32_0 = arith.constant 0 : i32
    return %arg0, %c0_i32 : i32, i32
  }
  func.func @transform_5(%arg0: i32) -> (i32, i32) {
    %c0_i32 = arith.constant 0 : i32
    %c0_i32_0 = arith.constant 0 : i32
    return %arg0, %c0_i32 : i32, i32
  }
  func.func @transform_6(%arg0: i32) -> (i32, i32) {
    %c0_i32 = arith.constant 0 : i32
    %c0_i32_0 = arith.constant 0 : i32
    return %arg0, %c0_i32 : i32, i32
  }
}

module attributes {stable_mosaic.version = 11 : i64} {
  func.func @_linear_bias_res_kernel(%arg0: i32, %arg1: memref<16x32xf32, #tpu.memory_space<vmem>>, %arg2: memref<16x32xf32, #tpu.memory_space<vmem>>, %arg3: memref<32x32xbf16, #tpu.memory_space<vmem>>, %arg4: memref<1x32xf32, #tpu.memory_space<vmem>>, %arg5: memref<16x32xf32, #tpu.memory_space<vmem>>) attributes {dimension_semantics = [#tpu.dimension_semantics<parallel>], iteration_bounds = array<i64: 1>, scalar_prefetch = 0 : i64, scratch_operands = 0 : i64, tpu.core_type = #tpu.core_type<tc>, window_params = [{transform_indices = @transform_0, window_bounds = array<i64: 16, 32>}, {transform_indices = @transform_1, window_bounds = array<i64: 16, 32>}, {pipeline_mode = #tpu.pipeline_mode<synchronous>, transform_indices = @transform_2, window_bounds = array<i64: 32, 32>}, {pipeline_mode = #tpu.pipeline_mode<synchronous>, transform_indices = @transform_3, window_bounds = array<i64: 1, 32>}, {transform_indices = @transform_4, window_bounds = array<i64: 16, 32>}]} {
    %c0 = arith.constant 0 : index
    %c0_0 = arith.constant 0 : index
    %0 = vector.load %arg1[%c0, %c0_0] : memref<16x32xf32, #tpu.memory_space<vmem>>, vector<16x32xf32>
    %1 = arith.truncf %0 : vector<16x32xf32> to vector<16x32xbf16>
    %c0_1 = arith.constant 0 : index
    %c0_2 = arith.constant 0 : index
    %2 = vector.load %arg3[%c0_1, %c0_2] : memref<32x32xbf16, #tpu.memory_space<vmem>>, vector<32x32xbf16>
    %cst = arith.constant dense<0.000000e+00> : vector<16x32xf32>
    %3 = tpu.matmul %1, %2, %cst {dimension_numbers = #tpu.dot_dimension_numbers<[1], [0], [0], [1], [0, 0, 1, 1], [], []>} : vector<16x32xbf16>, vector<32x32xbf16>, vector<16x32xf32> -> vector<16x32xf32>
    %c0_3 = arith.constant 0 : index
    %c0_4 = arith.constant 0 : index
    %4 = vector.load %arg4[%c0_3, %c0_4] : memref<1x32xf32, #tpu.memory_space<vmem>>, vector<1x32xf32>
    %5 = vector.broadcast %4 : vector<1x32xf32> to vector<16x32xf32>
    %6 = arith.addf %3, %5 : vector<16x32xf32>
    %c0_5 = arith.constant 0 : index
    %c0_6 = arith.constant 0 : index
    %7 = vector.load %arg2[%c0_5, %c0_6] : memref<16x32xf32, #tpu.memory_space<vmem>>, vector<16x32xf32>
    %8 = arith.addf %6, %7 : vector<16x32xf32>
    %c0_7 = arith.constant 0 : index
    %c0_8 = arith.constant 0 : index
    %9 = vector.load %arg5[%c0_7, %c0_8] : memref<16x32xf32, #tpu.memory_space<vmem>>, vector<16x32xf32>
    tpu.vector_store %arg5[%c0_7, %c0_8], %8 {strides = array<i32>} : memref<16x32xf32, #tpu.memory_space<vmem>>, vector<16x32xf32>,
    return
  }
  func.func @transform_0(%arg0: i32) -> (i32, i32) {
    %c0_i32 = arith.constant 0 : i32
    %c0_i32_0 = arith.constant 0 : i32
    return %arg0, %c0_i32 : i32, i32
  }
  func.func @transform_1(%arg0: i32) -> (i32, i32) {
    %c0_i32 = arith.constant 0 : i32
    %c0_i32_0 = arith.constant 0 : i32
    return %arg0, %c0_i32 : i32, i32
  }
  func.func @transform_2(%arg0: i32) -> (i32, i32) {
    %c0_i32 = arith.constant 0 : i32
    %c0_i32_0 = arith.constant 0 : i32
    %c0_i32_1 = arith.constant 0 : i32
    return %c0_i32, %c0_i32_0 : i32, i32
  }
  func.func @transform_3(%arg0: i32) -> (i32, i32) {
    %c0_i32 = arith.constant 0 : i32
    %c0_i32_0 = arith.constant 0 : i32
    %c0_i32_1 = arith.constant 0 : i32
    return %c0_i32, %c0_i32_0 : i32, i32
  }
  func.func @transform_4(%arg0: i32) -> (i32, i32) {
    %c0_i32 = arith.constant 0 : i32
    %c0_i32_0 = arith.constant 0 : i32
    return %arg0, %c0_i32 : i32, i32
  }
}

module attributes {stable_mosaic.version = 11 : i64} {
  func.func @_flash_attn_kernel(%arg0: i32, %arg1: i32, %arg2: memref<1x8x32xf32, #tpu.memory_space<vmem>>, %arg3: memref<1x8x32xf32, #tpu.memory_space<vmem>>, %arg4: memref<1x8x32xf32, #tpu.memory_space<vmem>>, %arg5: memref<1x8x32xf32, #tpu.memory_space<vmem>>, %arg6: memref<2x8x1xf32, #tpu.memory_space<vmem>>, %arg7: memref<2x8x1xf32, #tpu.memory_space<vmem>>, %arg8: memref<8x32xf32, #tpu.memory_space<vmem>>) attributes {dimension_semantics = [#tpu.dimension_semantics<parallel>, #tpu.dimension_semantics<arbitrary>], iteration_bounds = array<i64: 2, 1>, scalar_prefetch = 0 : i64, scratch_operands = 3 : i64, tpu.core_type = #tpu.core_type<tc>, window_params = [{transform_indices = @transform_0, window_bounds = array<i64: 1, 8, 32>}, {transform_indices = @transform_1, window_bounds = array<i64: 1, 8, 32>}, {transform_indices = @transform_2, window_bounds = array<i64: 1, 8, 32>}, {transform_indices = @transform_3, window_bounds = array<i64: 1, 8, 32>}]} {
    %c0_i32 = arith.constant 0 : i32
    %0 = arith.cmpi eq, %arg1, %c0_i32 : i32
    %1 = arith.extui %0 : i1 to i32
    %c0_i32_0 = arith.constant 0 : i32
    %2 = arith.cmpi ne, %1, %c0_i32_0 : i32
    scf.if %2 {
      %cst_48 = arith.constant 0xFF800000 : f32
      %81 = vector.broadcast %cst_48 : f32 to vector<2x8x1xf32>
      %c0_49 = arith.constant 0 : index
      %c0_50 = arith.constant 0 : index
      %c0_51 = arith.constant 0 : index
      %82 = vector.load %arg6[%c0_49, %c0_50, %c0_51] : memref<2x8x1xf32, #tpu.memory_space<vmem>>, vector<2x8x1xf32>
      tpu.vector_store %arg6[%c0_49, %c0_50, %c0_51], %81 {strides = array<i32>} : memref<2x8x1xf32, #tpu.memory_space<vmem>>, vector<2x8x1xf32>,
      %cst_52 = arith.constant 0.000000e+00 : f32
      %83 = vector.broadcast %cst_52 : f32 to vector<2x8x1xf32>
      %c0_53 = arith.constant 0 : index
      %c0_54 = arith.constant 0 : index
      %c0_55 = arith.constant 0 : index
      %84 = vector.load %arg7[%c0_53, %c0_54, %c0_55] : memref<2x8x1xf32, #tpu.memory_space<vmem>>, vector<2x8x1xf32>
      tpu.vector_store %arg7[%c0_53, %c0_54, %c0_55], %83 {strides = array<i32>} : memref<2x8x1xf32, #tpu.memory_space<vmem>>, vector<2x8x1xf32>,
      %cst_56 = arith.constant 0.000000e+00 : f32
      %85 = vector.broadcast %cst_56 : f32 to vector<8x32xf32>
      %c0_57 = arith.constant 0 : index
      %c0_58 = arith.constant 0 : index
      %86 = vector.load %arg8[%c0_57, %c0_58] : memref<8x32xf32, #tpu.memory_space<vmem>>, vector<8x32xf32>
      tpu.vector_store %arg8[%c0_57, %c0_58], %85 {strides = array<i32>} : memref<8x32xf32, #tpu.memory_space<vmem>>, vector<8x32xf32>,
    } else {
    }
    %c0 = arith.constant 0 : index
    %c0_1 = arith.constant 0 : index
    %c0_2 = arith.constant 0 : index
    %3 = vector.load %arg2[%c0, %c0_1, %c0_2] : memref<1x8x32xf32, #tpu.memory_space<vmem>>, vector<1x8x32xf32>
    %4 = vector.shape_cast %3 : vector<1x8x32xf32> to vector<8x32xf32>
    %5 = arith.truncf %4 : vector<8x32xf32> to vector<8x32xbf16>
    %c0_3 = arith.constant 0 : index
    %c0_4 = arith.constant 0 : index
    %c0_5 = arith.constant 0 : index
    %6 = vector.load %arg3[%c0_3, %c0_4, %c0_5] : memref<1x8x32xf32, #tpu.memory_space<vmem>>, vector<1x8x32xf32>
    %7 = vector.shape_cast %6 : vector<1x8x32xf32> to vector<8x32xf32>
    %8 = arith.truncf %7 : vector<8x32xf32> to vector<8x32xbf16>
    %c0_6 = arith.constant 0 : index
    %c0_7 = arith.constant 0 : index
    %c0_8 = arith.constant 0 : index
    %9 = vector.load %arg4[%c0_6, %c0_7, %c0_8] : memref<1x8x32xf32, #tpu.memory_space<vmem>>, vector<1x8x32xf32>
    %10 = vector.shape_cast %9 : vector<1x8x32xf32> to vector<8x32xf32>
    %11 = arith.truncf %10 : vector<8x32xf32> to vector<8x32xbf16>
    %12 = vector.extract_strided_slice %5 {offsets = [0, 0], sizes = [8, 16], strides = [1, 1]} : vector<8x32xbf16> to vector<8x16xbf16>
    %13 = vector.extract_strided_slice %8 {offsets = [0, 0], sizes = [8, 16], strides = [1, 1]} : vector<8x32xbf16> to vector<8x16xbf16>
    %cst = arith.constant dense<0.000000e+00> : vector<8x8xf32>
    %14 = tpu.matmul %12, %13, %cst {dimension_numbers = #tpu.dot_dimension_numbers<[1], [1], [0], [0], [0, 0, 1, 0], [], []>} : vector<8x16xbf16>, vector<8x16xbf16>, vector<8x8xf32> -> vector<8x8xf32>
    %c0_9 = arith.constant 0 : index
    %c0_10 = arith.constant 0 : index
    %c0_11 = arith.constant 0 : index
    %15 = vector.load %arg6[%c0_9, %c0_10, %c0_11] : memref<2x8x1xf32, #tpu.memory_space<vmem>>, vector<1x8x1xf32>
    %16 = vector.shape_cast %15 : vector<1x8x1xf32> to vector<8x1xf32>
    %cst_12 = arith.constant dense<0xFF800000> : vector<8xf32>
    %17 = vector.multi_reduction <maximumf>, %14, %cst_12 [1] : vector<8x8xf32> to vector<8xf32>
    %18 = vector.shape_cast %17 : vector<8xf32> to vector<8x1xf32>
    %19 = arith.maximumf %16, %18 : vector<8x1xf32>
    %20 = arith.subf %16, %19 : vector<8x1xf32>
    %21 = math.exp %20 : vector<8x1xf32>
    %22 = vector.broadcast %19 : vector<8x1xf32> to vector<8x8xf32>
    %23 = arith.subf %14, %22 : vector<8x8xf32>
    %24 = math.exp %23 : vector<8x8xf32>
    %c0_13 = arith.constant 0 : index
    %c0_14 = arith.constant 0 : index
    %c0_15 = arith.constant 0 : index
    %25 = vector.load %arg7[%c0_13, %c0_14, %c0_15] : memref<2x8x1xf32, #tpu.memory_space<vmem>>, vector<1x8x1xf32>
    %26 = vector.shape_cast %25 : vector<1x8x1xf32> to vector<8x1xf32>
    %27 = arith.mulf %21, %26 : vector<8x1xf32>
    %cst_16 = arith.constant dense<0.000000e+00> : vector<8xf32>
    %28 = vector.multi_reduction <add>, %24, %cst_16 [1] : vector<8x8xf32> to vector<8xf32>
    %29 = vector.shape_cast %28 : vector<8xf32> to vector<8x1xf32>
    %30 = arith.addf %27, %29 : vector<8x1xf32>
    %c0_17 = arith.constant 0 : index
    %c0_18 = arith.constant 0 : index
    %c0_19 = arith.constant 0 : index
    %31 = vector.load %arg7[%c0_17, %c0_18, %c0_19] : memref<2x8x1xf32, #tpu.memory_space<vmem>>, vector<1x8x1xf32>
    %32 = vector.shape_cast %31 : vector<1x8x1xf32> to vector<8x1xf32>
    %33 = vector.shape_cast %30 : vector<8x1xf32> to vector<1x8x1xf32>
    tpu.vector_store %arg7[%c0_17, %c0_18, %c0_19], %33 {strides = array<i32>} : memref<2x8x1xf32, #tpu.memory_space<vmem>>, vector<1x8x1xf32>,
    %c0_20 = arith.constant 0 : index
    %c0_21 = arith.constant 0 : index
    %34 = vector.load %arg8[%c0_20, %c0_21] : memref<8x32xf32, #tpu.memory_space<vmem>>, vector<8x16xf32>
    %35 = vector.broadcast %21 : vector<8x1xf32> to vector<8x16xf32>
    %36 = arith.mulf %35, %34 : vector<8x16xf32>
    %37 = arith.truncf %24 : vector<8x8xf32> to vector<8x8xbf16>
    %38 = vector.extract_strided_slice %11 {offsets = [0, 0], sizes = [8, 16], strides = [1, 1]} : vector<8x32xbf16> to vector<8x16xbf16>
    %cst_22 = arith.constant dense<0.000000e+00> : vector<8x16xf32>
    %39 = tpu.matmul %37, %38, %cst_22 {dimension_numbers = #tpu.dot_dimension_numbers<[1], [0], [0], [1], [0, 0, 1, 1], [], []>} : vector<8x8xbf16>, vector<8x16xbf16>, vector<8x16xf32> -> vector<8x16xf32>
    %40 = arith.addf %36, %39 : vector<8x16xf32>
    %c0_23 = arith.constant 0 : index
    %c0_24 = arith.constant 0 : index
    %41 = vector.load %arg8[%c0_23, %c0_24] : memref<8x32xf32, #tpu.memory_space<vmem>>, vector<8x16xf32>
    tpu.vector_store %arg8[%c0_23, %c0_24], %40 {strides = array<i32>} : memref<8x32xf32, #tpu.memory_space<vmem>>, vector<8x16xf32>,
    %c0_25 = arith.constant 0 : index
    %c0_26 = arith.constant 0 : index
    %c0_27 = arith.constant 0 : index
    %42 = vector.load %arg6[%c0_25, %c0_26, %c0_27] : memref<2x8x1xf32, #tpu.memory_space<vmem>>, vector<1x8x1xf32>
    %43 = vector.shape_cast %42 : vector<1x8x1xf32> to vector<8x1xf32>
    %44 = vector.shape_cast %19 : vector<8x1xf32> to vector<1x8x1xf32>
    tpu.vector_store %arg6[%c0_25, %c0_26, %c0_27], %44 {strides = array<i32>} : memref<2x8x1xf32, #tpu.memory_space<vmem>>, vector<1x8x1xf32>,
    %45 = vector.extract_strided_slice %5 {offsets = [0, 16], sizes = [8, 16], strides = [1, 1]} : vector<8x32xbf16> to vector<8x16xbf16>
    %46 = vector.extract_strided_slice %8 {offsets = [0, 16], sizes = [8, 16], strides = [1, 1]} : vector<8x32xbf16> to vector<8x16xbf16>
    %cst_28 = arith.constant dense<0.000000e+00> : vector<8x8xf32>
    %47 = tpu.matmul %45, %46, %cst_28 {dimension_numbers = #tpu.dot_dimension_numbers<[1], [1], [0], [0], [0, 0, 1, 0], [], []>} : vector<8x16xbf16>, vector<8x16xbf16>, vector<8x8xf32> -> vector<8x8xf32>
    %c1 = arith.constant 1 : index
    %c0_29 = arith.constant 0 : index
    %c0_30 = arith.constant 0 : index
    %48 = vector.load %arg6[%c1, %c0_29, %c0_30] : memref<2x8x1xf32, #tpu.memory_space<vmem>>, vector<1x8x1xf32>
    %49 = vector.shape_cast %48 : vector<1x8x1xf32> to vector<8x1xf32>
    %cst_31 = arith.constant dense<0xFF800000> : vector<8xf32>
    %50 = vector.multi_reduction <maximumf>, %47, %cst_31 [1] : vector<8x8xf32> to vector<8xf32>
    %51 = vector.shape_cast %50 : vector<8xf32> to vector<8x1xf32>
    %52 = arith.maximumf %49, %51 : vector<8x1xf32>
    %53 = arith.subf %49, %52 : vector<8x1xf32>
    %54 = math.exp %53 : vector<8x1xf32>
    %55 = vector.broadcast %52 : vector<8x1xf32> to vector<8x8xf32>
    %56 = arith.subf %47, %55 : vector<8x8xf32>
    %57 = math.exp %56 : vector<8x8xf32>
    %c1_32 = arith.constant 1 : index
    %c0_33 = arith.constant 0 : index
    %c0_34 = arith.constant 0 : index
    %58 = vector.load %arg7[%c1_32, %c0_33, %c0_34] : memref<2x8x1xf32, #tpu.memory_space<vmem>>, vector<1x8x1xf32>
    %59 = vector.shape_cast %58 : vector<1x8x1xf32> to vector<8x1xf32>
    %60 = arith.mulf %54, %59 : vector<8x1xf32>
    %cst_35 = arith.constant dense<0.000000e+00> : vector<8xf32>
    %61 = vector.multi_reduction <add>, %57, %cst_35 [1] : vector<8x8xf32> to vector<8xf32>
    %62 = vector.shape_cast %61 : vector<8xf32> to vector<8x1xf32>
    %63 = arith.addf %60, %62 : vector<8x1xf32>
    %c1_36 = arith.constant 1 : index
    %c0_37 = arith.constant 0 : index
    %c0_38 = arith.constant 0 : index
    %64 = vector.load %arg7[%c1_36, %c0_37, %c0_38] : memref<2x8x1xf32, #tpu.memory_space<vmem>>, vector<1x8x1xf32>
    %65 = vector.shape_cast %64 : vector<1x8x1xf32> to vector<8x1xf32>
    %66 = vector.shape_cast %63 : vector<8x1xf32> to vector<1x8x1xf32>
    tpu.vector_store %arg7[%c1_36, %c0_37, %c0_38], %66 {strides = array<i32>} : memref<2x8x1xf32, #tpu.memory_space<vmem>>, vector<1x8x1xf32>,
    %c0_39 = arith.constant 0 : index
    %c16 = arith.constant 16 : index
    %67 = vector.load %arg8[%c0_39, %c16] : memref<8x32xf32, #tpu.memory_space<vmem>>, vector<8x16xf32>
    %68 = vector.broadcast %54 : vector<8x1xf32> to vector<8x16xf32>
    %69 = arith.mulf %68, %67 : vector<8x16xf32>
    %70 = arith.truncf %57 : vector<8x8xf32> to vector<8x8xbf16>
    %71 = vector.extract_strided_slice %11 {offsets = [0, 16], sizes = [8, 16], strides = [1, 1]} : vector<8x32xbf16> to vector<8x16xbf16>
    %cst_40 = arith.constant dense<0.000000e+00> : vector<8x16xf32>
    %72 = tpu.matmul %70, %71, %cst_40 {dimension_numbers = #tpu.dot_dimension_numbers<[1], [0], [0], [1], [0, 0, 1, 1], [], []>} : vector<8x8xbf16>, vector<8x16xbf16>, vector<8x16xf32> -> vector<8x16xf32>
    %73 = arith.addf %69, %72 : vector<8x16xf32>
    %c0_41 = arith.constant 0 : index
    %c16_42 = arith.constant 16 : index
    %74 = vector.load %arg8[%c0_41, %c16_42] : memref<8x32xf32, #tpu.memory_space<vmem>>, vector<8x16xf32>
    tpu.vector_store %arg8[%c0_41, %c16_42], %73 {strides = array<i32>} : memref<8x32xf32, #tpu.memory_space<vmem>>, vector<8x16xf32>,
    %c1_43 = arith.constant 1 : index
    %c0_44 = arith.constant 0 : index
    %c0_45 = arith.constant 0 : index
    %75 = vector.load %arg6[%c1_43, %c0_44, %c0_45] : memref<2x8x1xf32, #tpu.memory_space<vmem>>, vector<1x8x1xf32>
    %76 = vector.shape_cast %75 : vector<1x8x1xf32> to vector<8x1xf32>
    %77 = vector.shape_cast %52 : vector<8x1xf32> to vector<1x8x1xf32>
    tpu.vector_store %arg6[%c1_43, %c0_44, %c0_45], %77 {strides = array<i32>} : memref<2x8x1xf32, #tpu.memory_space<vmem>>, vector<1x8x1xf32>,
    %c0_i32_46 = arith.constant 0 : i32
    %78 = arith.cmpi eq, %arg1, %c0_i32_46 : i32
    %79 = arith.extui %78 : i1 to i32
    %c0_i32_47 = arith.constant 0 : i32
    %80 = arith.cmpi ne, %79, %c0_i32_47 : i32
    scf.if %80 {
      %c0_48 = arith.constant 0 : index
      %c0_49 = arith.constant 0 : index
      %c0_50 = arith.constant 0 : index
      %81 = vector.load %arg7[%c0_48, %c0_49, %c0_50] : memref<2x8x1xf32, #tpu.memory_space<vmem>>, vector<1x8x1xf32>
      %82 = vector.shape_cast %81 : vector<1x8x1xf32> to vector<8x1xf32>
      %cst_51 = arith.constant 1.000000e+00 : f32
      %83 = vector.broadcast %cst_51 : f32 to vector<8x1xf32>
      %84 = arith.divf %83, %82 : vector<8x1xf32>
      %85 = vector.shape_cast %84 : vector<8x1xf32> to vector<8x1xf32>
      %86 = vector.broadcast %85 : vector<8x1xf32> to vector<8x16xf32>
      %c1_52 = arith.constant 1 : index
      %c0_53 = arith.constant 0 : index
      %c0_54 = arith.constant 0 : index
      %87 = vector.load %arg7[%c1_52, %c0_53, %c0_54] : memref<2x8x1xf32, #tpu.memory_space<vmem>>, vector<1x8x1xf32>
      %88 = vector.shape_cast %87 : vector<1x8x1xf32> to vector<8x1xf32>
      %cst_55 = arith.constant 1.000000e+00 : f32
      %89 = vector.broadcast %cst_55 : f32 to vector<8x1xf32>
      %90 = arith.divf %89, %88 : vector<8x1xf32>
      %91 = vector.shape_cast %90 : vector<8x1xf32> to vector<8x1xf32>
      %92 = vector.broadcast %91 : vector<8x1xf32> to vector<8x16xf32>
      %93 = tpu.concatenate %86, %92 in 1 : vector<8x16xf32>, vector<8x16xf32> -> vector<8x32xf32>
      %c0_56 = arith.constant 0 : index
      %c0_57 = arith.constant 0 : index
      %94 = vector.load %arg8[%c0_56, %c0_57] : memref<8x32xf32, #tpu.memory_space<vmem>>, vector<8x32xf32>
      %95 = arith.mulf %94, %93 : vector<8x32xf32>
      %c0_58 = arith.constant 0 : index
      %c0_59 = arith.constant 0 : index
      %c0_60 = arith.constant 0 : index
      %96 = vector.load %arg5[%c0_58, %c0_59, %c0_60] : memref<1x8x32xf32, #tpu.memory_space<vmem>>, vector<1x8x32xf32>
      %97 = vector.shape_cast %96 : vector<1x8x32xf32> to vector<8x32xf32>
      %98 = vector.shape_cast %95 : vector<8x32xf32> to vector<1x8x32xf32>
      tpu.vector_store %arg5[%c0_58, %c0_59, %c0_60], %98 {strides = array<i32>} : memref<1x8x32xf32, #tpu.memory_space<vmem>>, vector<1x8x32xf32>,
    } else {
    }
    return
  }
  func.func @transform_0(%arg0: i32, %arg1: i32) -> (i32, i32, i32) {
    %c0_i32 = arith.constant 0 : i32
    %c0_i32_0 = arith.constant 0 : i32
    %c0_i32_1 = arith.constant 0 : i32
    return %arg0, %c0_i32, %c0_i32_0 : i32, i32, i32
  }
  func.func @transform_1(%arg0: i32, %arg1: i32) -> (i32, i32, i32) {
    %c0_i32 = arith.constant 0 : i32
    %c0_i32_0 = arith.constant 0 : i32
    return %arg0, %arg1, %c0_i32 : i32, i32, i32
  }
  func.func @transform_2(%arg0: i32, %arg1: i32) -> (i32, i32, i32) {
    %c0_i32 = arith.constant 0 : i32
    %c0_i32_0 = arith.constant 0 : i32
    return %arg0, %arg1, %c0_i32 : i32, i32, i32
  }
  func.func @transform_3(%arg0: i32, %arg1: i32) -> (i32, i32, i32) {
    %c0_i32 = arith.constant 0 : i32
    %c0_i32_0 = arith.constant 0 : i32
    %c0_i32_1 = arith.constant 0 : i32
    return %arg0, %c0_i32, %c0_i32_0 : i32, i32, i32
  }
}

module attributes {stable_mosaic.version = 11 : i64} {
  func.func @_layernorm_kernel(%arg0: i32, %arg1: memref<16x32xf32, #tpu.memory_space<vmem>>, %arg2: memref<1x32xf32, #tpu.memory_space<vmem>>, %arg3: memref<1x32xf32, #tpu.memory_space<vmem>>, %arg4: memref<16x32xf32, #tpu.memory_space<vmem>>) attributes {dimension_semantics = [#tpu.dimension_semantics<parallel>], iteration_bounds = array<i64: 1>, scalar_prefetch = 0 : i64, scratch_operands = 0 : i64, tpu.core_type = #tpu.core_type<tc>, window_params = [{transform_indices = @transform_0, window_bounds = array<i64: 16, 32>}, {pipeline_mode = #tpu.pipeline_mode<synchronous>, transform_indices = @transform_1, window_bounds = array<i64: 1, 32>}, {pipeline_mode = #tpu.pipeline_mode<synchronous>, transform_indices = @transform_2, window_bounds = array<i64: 1, 32>}, {transform_indices = @transform_3, window_bounds = array<i64: 16, 32>}]} {
    %c0 = arith.constant 0 : index
    %c0_0 = arith.constant 0 : index
    %0 = vector.load %arg1[%c0, %c0_0] : memref<16x32xf32, #tpu.memory_space<vmem>>, vector<16x32xf32>
    %c0_1 = arith.constant 0 : index
    %c0_2 = arith.constant 0 : index
    %1 = vector.load %arg2[%c0_1, %c0_2] : memref<1x32xf32, #tpu.memory_space<vmem>>, vector<1x32xf32>
    %c0_3 = arith.constant 0 : index
    %c0_4 = arith.constant 0 : index
    %2 = vector.load %arg3[%c0_3, %c0_4] : memref<1x32xf32, #tpu.memory_space<vmem>>, vector<1x32xf32>
    %cst = arith.constant dense<0.000000e+00> : vector<16xf32>
    %3 = vector.multi_reduction <add>, %0, %cst [1] : vector<16x32xf32> to vector<16xf32>
    %4 = vector.shape_cast %3 : vector<16xf32> to vector<16x1xf32>
    %cst_5 = arith.constant 3.200000e+01 : f32
    %5 = vector.broadcast %cst_5 : f32 to vector<16x1xf32>
    %6 = arith.divf %4, %5 : vector<16x1xf32>
    %7 = vector.broadcast %6 : vector<16x1xf32> to vector<16x32xf32>
    %8 = arith.subf %0, %7 : vector<16x32xf32>
    %9 = arith.mulf %8, %8 : vector<16x32xf32>
    %cst_6 = arith.constant dense<0.000000e+00> : vector<16xf32>
    %10 = vector.multi_reduction <add>, %9, %cst_6 [1] : vector<16x32xf32> to vector<16xf32>
    %11 = vector.shape_cast %10 : vector<16xf32> to vector<16x1xf32>
    %cst_7 = arith.constant 3.200000e+01 : f32
    %12 = vector.broadcast %cst_7 : f32 to vector<16x1xf32>
    %13 = arith.divf %11, %12 : vector<16x1xf32>
    %14 = vector.broadcast %6 : vector<16x1xf32> to vector<16x32xf32>
    %15 = arith.subf %0, %14 : vector<16x32xf32>
    %cst_8 = arith.constant 9.99999974E-6 : f32
    %16 = vector.broadcast %cst_8 : f32 to vector<16x1xf32>
    %17 = arith.addf %13, %16 : vector<16x1xf32>
    %18 = math.rsqrt %17 : vector<16x1xf32>
    %19 = vector.broadcast %18 : vector<16x1xf32> to vector<16x32xf32>
    %20 = arith.mulf %15, %19 : vector<16x32xf32>
    %21 = vector.broadcast %1 : vector<1x32xf32> to vector<16x32xf32>
    %22 = arith.mulf %20, %21 : vector<16x32xf32>
    %23 = vector.broadcast %2 : vector<1x32xf32> to vector<16x32xf32>
    %24 = arith.addf %22, %23 : vector<16x32xf32>
    %c0_9 = arith.constant 0 : index
    %c0_10 = arith.constant 0 : index
    %25 = vector.load %arg4[%c0_9, %c0_10] : memref<16x32xf32, #tpu.memory_space<vmem>>, vector<16x32xf32>
    tpu.vector_store %arg4[%c0_9, %c0_10], %24 {strides = array<i32>} : memref<16x32xf32, #tpu.memory_space<vmem>>, vector<16x32xf32>,
    return
  }
  func.func @transform_0(%arg0: i32) -> (i32, i32) {
    %c0_i32 = arith.constant 0 : i32
    %c0_i32_0 = arith.constant 0 : i32
    return %arg0, %c0_i32 : i32, i32
  }
  func.func @transform_1(%arg0: i32) -> (i32, i32) {
    %c0_i32 = arith.constant 0 : i32
    %c0_i32_0 = arith.constant 0 : i32
    %c0_i32_1 = arith.constant 0 : i32
    return %c0_i32, %c0_i32_0 : i32, i32
  }
  func.func @transform_2(%arg0: i32) -> (i32, i32) {
    %c0_i32 = arith.constant 0 : i32
    %c0_i32_0 = arith.constant 0 : i32
    %c0_i32_1 = arith.constant 0 : i32
    return %c0_i32, %c0_i32_0 : i32, i32
  }
  func.func @transform_3(%arg0: i32) -> (i32, i32) {
    %c0_i32 = arith.constant 0 : i32
    %c0_i32_0 = arith.constant 0 : i32
    return %arg0, %c0_i32 : i32, i32
  }
}

</mosaic_0001>

<bundles_post_ra>
// kernel: point_encoder_fwd.15
= control target key start
LH: loop header
LB: loop body
LE: loop exit
PB: predicated region body
PF: predicated region fallthrough
CT: control target
= control target key end

     0   :  { %vm33_vm0 = vcmask 1041408   ;;  %vm26_vm1 = vcmask 31744   ;;  %vm56_vm2 = vcmask 261120   ;;  %s119_s1 = inlined_call_operand.vmem [shape: bf16[4,32], index: 1, kind: input, shape index: {}]   ;;  %s120_s0 = inlined_call_operand.vmem [shape: f32[32,4], index: 0, kind: input, shape index: {}]   ;;  %s121_s2 = inlined_call_operand.vmem [shape: f32[1,32], index: 2, kind: input, shape index: {}]   ;;  %s122_s3 = inlined_call_operand.vmem [shape: f32[32,32], index: 3, kind: output, shape index: {}]  }
   0x1   :  { %v21_v0 = vld [vmem:[%s119_s1] sm:$0x3]  ;;  %v16_v2 = vld [vmem:[%s120_s0 + $0x8] sm:$0xff]  ;;  %v17_v5 = vld [vmem:[%s120_s0 + $0x10] sm:$0xff] }
   0x2   :  { %v15_v1 = vld [vmem:[%s120_s0] sm:$0xff]  ;;  %v35_v3 = vsel %vm33_vm0, %v21_v0, 0  ;;  %v18_v6 = vld [vmem:[%s120_s0 + $0x18] sm:$0xff] }
   0x3   :  { %v19_v4 = vpack.c.bf16 %v16_v2, %v15_v1  ;;  %44 = vmatpush.bf16.msra.mxu0 %v35_v3  ;;  %67 = vmatpush.bf16.msra.mxu1 %v35_v3  ;;  %v20_v7 = vpack.c.bf16 %v18_v6, %v17_v5  ;;  %v68_v8 = vld [vmem:[%s121_s2] ss:$0 sm:$0xff] }
   0x6   :  { %65 = vmatmul.msk.bf16.vlgmr.msra.gmra.mxu0 %vm26_vm1, %v19_v4  ;;  %66 = vmatmul.msk.bf16.vlgmr.msra.gmra.mxu1 %vm26_vm1, %v20_v7 }
  0x83   :  { %v46_v9 = vpop.f32.mrf.mxu0  ;;  %v51_v10 = vpop.f32.mrf.mxu1 }
  0x84   :  { %v47_v11 = vadd.f32 %v68_v8, %v46_v9  ;;  %v52_v12 = vadd.f32 %v68_v8, %v51_v10 }
  0x86   :  { %57 = vst.msk [vmem:[%s122_s3] sm:$0xff] %vm56_vm2, %v47_v11 }
  0x87   :  { %59 = vst.msk [vmem:[%s122_s3 + $0x10] sm:$0xff] %vm56_vm2, %v52_v12 }
  0x8b   :  { %v48_v13 = vpop.f32.mrf.mxu0  ;;  %v53_v14 = vpop.f32.mrf.mxu1 }
  0x8c   :  { %v49_v15 = vadd.f32 %v68_v8, %v48_v13  ;;  %v54_v16 = vadd.f32 %v68_v8, %v53_v14 }
  0x8e   :  { %58 = vst.msk [vmem:[%s122_s3 + $0x8] sm:$0xff] %vm56_vm2, %v49_v15 }
  0x8f   :  { %60 = vst.msk [vmem:[%s122_s3 + $0x18] sm:$0xff] %vm56_vm2, %v54_v16 }

// kernel: point_encoder_fwd.16
= control target key start
LH: loop header
LB: loop body
LE: loop exit
PB: predicated region body
PF: predicated region fallthrough
CT: control target
= control target key end

     0   :  { %vm22_vm0 = vcmask 261120   ;;  %v144_v4 = vmov 32.0   ;;  %s201_s0 = inlined_call_operand.vmem [shape: f32[16,32], index: 0, kind: input, shape index: {}]   ;;  %s202_s1 = inlined_call_operand.vmem [shape: f32[1,32], index: 1, kind: input, shape index: {}]   ;;  %s203_s2 = inlined_call_operand.vmem [shape: f32[1,32], index: 2, kind: input, shape index: {}]   ;;  %s204_s3 = inlined_call_operand.vmem [shape: bf16[32,32], index: 3, kind: input, shape index: {}]   ;;  %s205_s4 = inlined_call_operand.vmem [shape: f32[16,32], index: 4, kind: output, shape index: {}]  }
   0x1   :  { %v18_v0 = vld [vmem:[%s201_s0] sm:$0xff]  ;;  %v19_v2 = vld [vmem:[%s201_s0 + $0x8] sm:$0xff]  ;;  %138 = vrcp.f32 %v144_v4 }
   0x2   :  { %v23_v1 = vsel %vm22_vm0, %v18_v0, 0.0  ;;  %v26_v3 = vsel %vm22_vm0, %v19_v2, 0.0  ;;  %v134_v21 = vld [vmem:[%s204_s3 + $0x8] sm:$0xff]  ;;  %v133_v23 = vld [vmem:[%s204_s3] sm:$0xff] }
   0x3   :  { %24 = vadd.xlane.f32.xlu0 %v23_v1  ;;  %110 = vmatpush.bf16.msra.mxu0 %v134_v21  ;;  %v136_v42 = vld [vmem:[%s202_s1] ss:$0 sm:$0xff] }
   0x4   :  { %v137_v47 = vld [vmem:[%s203_s2] ss:$0 sm:$0xff] }
   0x7   :  { %v139_v5 = vpop.eup %138  ;;  %111 = vmatpush.bf16.msra.mxu0 %v133_v23 }
   0x8   :  { %v30_v6 = vmul.f32 32.0, %v139_v5  ;;  %vm34_vm1 = vweird.f32 %v139_v5 }
   0xa   :  { %v31_v7 = vsub.f32 1.0, %v30_v6 }
   0xb   :  { %27 = vadd.xlane.f32.xlu0 %v26_v3 }
   0xc   :  { %v32_v8 = vmul.f32 %v139_v5, %v31_v7 }
   0xe   :  { %v33_v9 = vadd.f32 %v139_v5, %v32_v8 }
  0x10   :  { %v35_v10 = vsel %vm34_vm1, %v139_v5, %v33_v9 }
  0x76   :  { %v25_v11 = vpop.xlane.xlu0 %24 }
  0x77   :  { %v36_v12 = vmul.f32 %v35_v10, %v25_v11 }
  0x79   :  { %v38_v13 = vsub.f32 %v18_v0, %v36_v12 }
  0x7b   :  { %v40_v14 = vmul.f32 %v38_v13, %v38_v13 }
  0x7d   :  { %v42_v15 = vsel %vm22_vm0, %v40_v14, 0.0 }
  0x7e   :  { %43 = vadd.xlane.f32.xlu1 %v42_v15  ;;  %v28_v16 = vpop.xlane.xlu0 %27 }
  0x7f   :  { %v37_v17 = vmul.f32 %v35_v10, %v28_v16 }
  0x81   :  { %v39_v18 = vsub.f32 %v19_v2, %v37_v17 }
  0x83   :  { %v41_v19 = vmul.f32 %v39_v18, %v39_v18 }
  0x85   :  { %v45_v20 = vsel %vm22_vm0, %v41_v19, 0.0 }
  0x86   :  { %46 = vadd.xlane.f32.xlu1 %v45_v20 }
  0xf1   :  { %v44_v22 = vpop.xlane.xlu1 %43 }
  0xf2   :  { %v48_v24 = vmul.f32 %v44_v22, %v35_v10 }
  0xf4   :  { %v50_v25 = vadd.f32 1e-05, %v48_v24 }
  0xf6   :  { %140 = vrsqrt.f32 %v50_v25  ;;  %vm58_vm3 = vweird.f32 %v50_v25 }
  0xf9   :  { %v47_v26 = vpop.xlane.xlu1 %46 }
  0xfa   :  { %v49_v27 = vmul.f32 %v47_v26, %v35_v10 }
  0xfc   :  { %v141_v28 = vpop.eup %140  ;;  %v51_v29 = vadd.f32 1e-05, %v49_v27 }
  0xfd   :  { %v53_v30 = vmul.f32 %v141_v28, %v50_v25  ;;  %vm59_vm2 = vweird.f32 %v141_v28 }
  0xfe   :  { %142 = vrsqrt.f32 %v51_v29  ;;  %vm60_vm4 = vmor %vm58_vm3, %vm59_vm2  ;;  %vm68_vm6 = vweird.f32 %v51_v29 }
  0xff   :  { %v54_v31 = vmul.f32 %v141_v28, %v53_v30 }
 0x101   :  { %v55_v32 = vmul.f32 0.5, %v54_v31 }
 0x103   :  { %v56_v33 = vsub.f32 1.5, %v55_v32 }
 0x104   :  { %v143_v34 = vpop.eup %142 }
 0x105   :  { %v57_v35 = vmul.f32 %v141_v28, %v56_v33  ;;  %v63_v36 = vmul.f32 %v143_v34, %v51_v29  ;;  %vm69_vm5 = vweird.f32 %v143_v34 }
 0x106   :  { %vm70_vm7 = vmor %vm68_vm6, %vm69_vm5 }
 0x107   :  { %v64_v37 = vmul.f32 %v143_v34, %v63_v36  ;;  %v61_v38 = vsel %vm60_vm4, %v141_v28, %v57_v35 }
 0x108   :  { %v72_v41 = vmul.f32 %v61_v38, %v38_v13 }
 0x109   :  { %v65_v39 = vmul.f32 0.5, %v64_v37 }
 0x10a   :  { %v77_v46 = vmul.f32 %v136_v42, %v72_v41 }
 0x10b   :  { %v66_v40 = vsub.f32 1.5, %v65_v39 }
 0x10c   :  { %v82_v49 = vadd.f32 %v137_v47, %v77_v46 }
 0x10d   :  { %v67_v43 = vmul.f32 %v143_v34, %v66_v40 }
 0x10f   :  { %v71_v44 = vsel %vm70_vm7, %v143_v34, %v67_v43 }
 0x110   :  { %v73_v45 = vmul.f32 %v71_v44, %v39_v18 }
 0x112   :  { %v78_v48 = vmul.f32 %v136_v42, %v73_v45 }
 0x114   :  { %v83_v50 = vadd.f32 %v137_v47, %v78_v48 }
 0x116   :  { %v84_v51 = vpack.c.bf16 %v83_v50, %v82_v49 }
 0x118   :  { %132 = vmatmul.msk.bf16.vlgmr.msra.gmra.mxu0 %vm22_vm0, %v84_v51 }
 0x195   :  { %v113_v52 = vpop.f32.mrf.mxu0 }
 0x196   :  { %118 = vst.msk [vmem:[%s205_s4] sm:$0xff] %vm22_vm0, %v113_v52 }
 0x19d   :  { %v115_v53 = vpop.f32.mrf.mxu0 }
 0x19e   :  { %119 = vst.msk [vmem:[%s205_s4 + $0x8] sm:$0xff] %vm22_vm0, %v115_v53 }

// kernel: point_encoder_fwd.17
= control target key start
LH: loop header
LB: loop body
LE: loop exit
PB: predicated region body
PF: predicated region fallthrough
CT: control target
= control target key end

     0   :  { %vm26_vm0 = vcmask 261120   ;;  %v239_v8 = vmov 32.0   ;;  %s240_s7 = smov 96   ;;  %s357_s0 = inlined_call_operand.vmem [shape: f32[32,32], index: 0, kind: input, shape index: {}]   ;;  %s358_s1 = inlined_call_operand.vmem [shape: f32[1,32], index: 1, kind: input, shape index: {}]   ;;  %s359_s2 = inlined_call_operand.vmem [shape: f32[1,32], index: 2, kind: input, shape index: {}]   ;;  %s360_s3 = inlined_call_operand.vmem [shape: bf16[32,64], index: 3, kind: input, shape index: {}]   ;;  %s361_s4 = inlined_call_operand.vmem [shape: f32[32,32], index: 4, kind: output, shape index: {0}]   ;;  %s362_s5 = inlined_call_operand.vmem [shape: f32[32,32], index: 5, kind: output, shape index: {1}]  }
   0x1   :  { %v22_v0 = vld [vmem:[%s357_s0 + $0x10] sm:$0xff]  ;;  %v20_v1 = vld [vmem:[%s357_s0] sm:$0xff]  ;;  %v23_v4 = vld [vmem:[%s357_s0 + $0x18] sm:$0xff]  ;;  %229 = vrcp.f32 %v239_v8 }
   0x2   :  { %v33_v2 = vsel %vm26_vm0, %v22_v0, 0.0  ;;  %v27_v3 = vsel %vm26_vm0, %v20_v1, 0.0  ;;  %v21_v5 = vld [vmem:[%s357_s0 + $0x8] sm:$0xff]  ;;  %v36_v6 = vsel %vm26_vm0, %v23_v4, 0.0  ;;  %v221_v40 = vld [vmem:[%s360_s3] sm:$0xff] }
   0x3   :  { %34 = vadd.xlane.f32.xlu1 %v33_v2  ;;  %28 = vadd.xlane.f32.xlu0 %v27_v3  ;;  %v30_v7 = vsel %vm26_vm0, %v21_v5, 0.0  ;;  %v222_v35 = vld [vmem:[%s360_s3 + $0x8] sm:$0xff] }
   0x4   :  { %166 = vmatpush.bf16.msra.mxu0 %v222_v35  ;;  %223 = vmatpush.bf16.msra.mxu1 %v222_v35 }
   0x7   :  { %v230_v9 = vpop.eup %229 }
   0x8   :  { %v40_v10 = vmul.f32 32.0, %v230_v9  ;;  %vm44_vm1 = vweird.f32 %v230_v9  ;;  %167 = vmatpush.bf16.msra.mxu0 %v221_v40  ;;  %224 = vmatpush.bf16.msra.mxu1 %v221_v40 }
   0xa   :  { %v41_v11 = vsub.f32 1.0, %v40_v10  ;;  %v227_v10 = vld [vmem:[%s358_s1] ss:$0 sm:$0xff] }
   0xb   :  { %37 = vadd.xlane.f32.xlu1 %v36_v6  ;;  %31 = vadd.xlane.f32.xlu0 %v30_v7 }
   0xc   :  { %v42_v12 = vmul.f32 %v230_v9, %v41_v11 }
   0xe   :  { %v43_v13 = vadd.f32 %v230_v9, %v42_v12 }
  0x10   :  { %v45_v14 = vsel %vm44_vm1, %v230_v9, %v43_v13 }
  0x76   :  { %v35_v15 = vpop.xlane.xlu1 %34  ;;  %v29_v16 = vpop.xlane.xlu0 %28 }
  0x77   :  { %v48_v17 = vmul.f32 %v45_v14, %v35_v15  ;;  %v46_v18 = vmul.f32 %v45_v14, %v29_v16 }
  0x79   :  { %v287_v19 = vsub.f32 %v22_v0, %v48_v17  ;;  %v289_v20 = vsub.f32 %v20_v1, %v46_v18  ;;  %v228_v17 = vld [vmem:[%s359_s2] ss:$0 sm:$0xff] }
  0x7b   :  { %v56_v21 = vmul.f32 %v287_v19, %v287_v19  ;;  %v54_v22 = vmul.f32 %v289_v20, %v289_v20 }
  0x7d   :  { %v64_v23 = vsel %vm26_vm0, %v56_v21, 0.0  ;;  %v58_v24 = vsel %vm26_vm0, %v54_v22, 0.0 }
  0x7e   :  { %v38_v25 = vpop.xlane.xlu1 %37  ;;  %65 = vadd.xlane.f32.xlu0 %v64_v23  ;;  %59 = vadd.xlane.f32.xlu2 %v58_v24  ;;  %v32_v26 = vpop.xlane.xlu0 %31 }
  0x7f   :  { %v49_v27 = vmul.f32 %v45_v14, %v38_v25  ;;  %v47_v28 = vmul.f32 %v45_v14, %v32_v26 }
  0x81   :  { %v297_v29 = vsub.f32 %v23_v4, %v49_v27  ;;  %v299_v30 = vsub.f32 %v21_v5, %v47_v28 }
  0x83   :  { %v57_v31 = vmul.f32 %v297_v29, %v297_v29  ;;  %v55_v32 = vmul.f32 %v299_v30, %v299_v30 }
  0x85   :  { %v67_v33 = vsel %vm26_vm0, %v57_v31, 0.0  ;;  %v61_v34 = vsel %vm26_vm0, %v55_v32, 0.0 }
  0x86   :  { %68 = vadd.xlane.f32.xlu1 %v67_v33  ;;  %62 = vadd.xlane.f32.xlu2 %v61_v34 }
  0xf1   :  { %v60_v36 = vpop.xlane.xlu2 %59  ;;  %v66_v37 = vpop.xlane.xlu0 %65 }
  0xf2   :  { %v70_v38 = vmul.f32 %v60_v36, %v45_v14  ;;  %v72_v39 = vmul.f32 %v66_v37, %v45_v14 }
  0xf4   :  { %v74_v41 = vadd.f32 1e-05, %v70_v38  ;;  %v76_v42 = vadd.f32 1e-05, %v72_v39 }
  0xf6   :  { %231 = vrsqrt.f32 %v74_v41  ;;  %vm104_vm2 = vweird.f32 %v76_v42  ;;  %vm84_vm5 = vweird.f32 %v74_v41 }
  0xf7   :  { %233 = vrsqrt.f32 %v76_v42 }
  0xf9   :  { %v69_v43 = vpop.xlane.xlu1 %68  ;;  %v63_v44 = vpop.xlane.xlu2 %62 }
  0xfa   :  { %v73_v45 = vmul.f32 %v69_v43, %v45_v14  ;;  %v71_v46 = vmul.f32 %v63_v44, %v45_v14 }
  0xfc   :  { %v232_v47 = vpop.eup %231  ;;  %v77_v48 = vadd.f32 1e-05, %v73_v45  ;;  %v75_v49 = vadd.f32 1e-05, %v71_v46 }
  0xfd   :  { %v234_v50 = vpop.eup %233  ;;  %v79_v51 = vmul.f32 %v232_v47, %v74_v41  ;;  %vm85_vm4 = vweird.f32 %v232_v47 }
  0xfe   :  { %v99_v52 = vmul.f32 %v234_v50, %v76_v42  ;;  %235 = vrsqrt.f32 %v77_v48  ;;  %vm105_vm3 = vweird.f32 %v234_v50  ;;  %vm86_vm7 = vmor %vm84_vm5, %vm85_vm4  ;;  %vm114_vm8 = vweird.f32 %v77_v48 }
  0xff   :  { %v80_v53 = vmul.f32 %v232_v47, %v79_v51  ;;  %237 = vrsqrt.f32 %v75_v49  ;;  %vm106_vm6 = vmor %vm104_vm2, %vm105_vm3  ;;  %vm94_vm12 = vweird.f32 %v75_v49 }
 0x100   :  { %v100_v54 = vmul.f32 %v234_v50, %v99_v52 }
 0x101   :  { %v81_v55 = vmul.f32 0.5, %v80_v53 }
 0x102   :  { %v101_v56 = vmul.f32 0.5, %v100_v54 }
 0x103   :  { %v82_v57 = vsub.f32 1.5, %v81_v55 }
 0x104   :  { %v236_v58 = vpop.eup %235  ;;  %v102_v59 = vsub.f32 1.5, %v101_v56 }
 0x105   :  { %v238_v60 = vpop.eup %237  ;;  %v109_v61 = vmul.f32 %v236_v58, %v77_v48  ;;  %v83_v62 = vmul.f32 %v232_v47, %v82_v57  ;;  %vm115_vm9 = vweird.f32 %v236_v58 }
 0x106   :  { %v103_v63 = vmul.f32 %v234_v50, %v102_v59  ;;  %v89_v0 = vmul.f32 %v238_v60, %v75_v49  ;;  %vm95_vm10 = vweird.f32 %v238_v60  ;;  %vm116_vm11 = vmor %vm114_vm8, %vm115_vm9 }
 0x107   :  { %v110_v1 = vmul.f32 %v236_v58, %v109_v61  ;;  %v87_v5 = vsel %vm86_vm7, %v232_v47, %v83_v62  ;;  %vm96_vm13 = vmor %vm94_vm12, %vm95_vm10 }
 0x108   :  { %v90_v2 = vmul.f32 %v238_v60, %v89_v0  ;;  %v107_v3 = vsel %vm106_vm6, %v234_v50, %v103_v63  ;;  %v118_v11 = vmul.f32 %v87_v5, %v289_v20 }
 0x109   :  { %v111_v4 = vmul.f32 0.5, %v110_v1  ;;  %v120_v8 = vmul.f32 %v107_v3, %v287_v19 }
 0x10a   :  { %v91_v6 = vmul.f32 0.5, %v90_v2  ;;  %v125_v21 = vmul.f32 %v227_v10, %v118_v11 }
 0x10b   :  { %v112_v7 = vsub.f32 1.5, %v111_v4  ;;  %v127_v18 = vmul.f32 %v227_v10, %v120_v8 }
 0x10c   :  { %v92_v9 = vsub.f32 1.5, %v91_v6  ;;  %v132_v25 = vadd.f32 %v228_v17, %v125_v21 }
 0x10d   :  { %v113_v12 = vmul.f32 %v236_v58, %v112_v7  ;;  %v134_v20 = vadd.f32 %v228_v17, %v127_v18 }
 0x10e   :  { %v93_v13 = vmul.f32 %v238_v60, %v92_v9 }
 0x10f   :  { %v117_v14 = vsel %vm116_vm11, %v236_v58, %v113_v12 }
 0x110   :  { %v121_v15 = vmul.f32 %v117_v14, %v297_v29  ;;  %v97_v16 = vsel %vm96_vm13, %v238_v60, %v93_v13 }
 0x111   :  { %v119_v19 = vmul.f32 %v97_v16, %v299_v30 }
 0x112   :  { %v128_v22 = vmul.f32 %v227_v10, %v121_v15 }
 0x113   :  { %v126_v23 = vmul.f32 %v227_v10, %v119_v19 }
 0x114   :  { %v135_v24 = vadd.f32 %v228_v17, %v128_v22 }
 0x115   :  { %v133_v26 = vadd.f32 %v228_v17, %v126_v23 }
 0x116   :  { %v137_v27 = vpack.c.bf16 %v135_v24, %v134_v20 }
 0x117   :  { %v136_v28 = vpack.c.bf16 %v133_v26, %v132_v25 }
 0x118   :  { %220 = vmatmul.msk.bf16.vlgmr.msra.gmra.mxu1 %vm26_vm0, %v137_v27 }
 0x119   :  { %219 = vmatmul.msk.bf16.vlgmr.msra.gmra.mxu0 %vm26_vm0, %v136_v28 }
 0x195   :  { %v174_v29 = vpop.f32.mrf.mxu1 }
 0x196   :  { %v169_v31 = vpop.f32.mrf.mxu0  ;;  %181 = vst.msk [vmem:[%s361_s4 + $0x10] sm:$0xff] %vm26_vm0, %v174_v29  ;;  %191 = vrot.lane.b32.xlu1 %v174_v29, %s240_s7 }
 0x197   :  { %179 = vst.msk [vmem:[%s361_s4] sm:$0xff] %vm26_vm0, %v169_v31  ;;  %187 = vrot.lane.b32.xlu2 %v169_v31, %s240_s7 }
 0x19d   :  { %v176_v30 = vpop.f32.mrf.mxu1 }
 0x19e   :  { %v171_v32 = vpop.f32.mrf.mxu0  ;;  %182 = vst.msk [vmem:[%s361_s4 + $0x18] sm:$0xff] %vm26_vm0, %v176_v30 }
 0x19f   :  { %180 = vst.msk [vmem:[%s361_s4 + $0x8] sm:$0xff] %vm26_vm0, %v171_v32  ;;  %189 = vrot.lane.b32.xlu0 %v171_v32, %s240_s7  ;;  %193 = vrot.lane.b32.xlu2 %v176_v30, %s240_s7 }
 0x1f1   :  { %v188_v33 = vpop.permute.xlu2 %187 }
 0x1f2   :  { %199 = vst.msk [vmem:[%s362_s5] sm:$0xff] %vm26_vm0, %v188_v33 }
 0x1f9   :  { %v194_v34 = vpop.permute.xlu2 %193 }
 0x1fa   :  { %202 = vst.msk [vmem:[%s362_s5 + $0x18] sm:$0xff] %vm26_vm0, %v194_v34 }
 0x208   :  { %v192_v35 = vpop.permute.xlu1 %191 }
 0x209   :  { %201 = vst.msk [vmem:[%s362_s5 + $0x10] sm:$0xff] %vm26_vm0, %v192_v35 }
 0x211   :  { %v190_v36 = vpop.permute.xlu0 %189 }
 0x212   :  { %200 = vst.msk [vmem:[%s362_s5 + $0x8] sm:$0xff] %vm26_vm0, %v190_v36 }

// kernel: point_encoder_fwd.18
= control target key start
LH: loop header
LB: loop body
LE: loop exit
PB: predicated region body
PF: predicated region fallthrough
CT: control target
= control target key end

     0   :  { %s699_s12 = smov 0   ;;  %s701_s13 = smov 0   ;;  %s775_s0 = inlined_call_operand.vmem [shape: f32[2,8,32], index: 0, kind: input, shape index: {}]   ;;  %s776_s1 = inlined_call_operand.vmem [shape: f32[2,16,32], index: 1, kind: input, shape index: {}]   ;;  %s777_s2 = inlined_call_operand.vmem [shape: f32[2,16,32], index: 2, kind: input, shape index: {}]   ;;  %s778_s3 = inlined_call_operand.vmem [shape: f32[2,8,32], index: 3, kind: output, shape index: {}]  }
   0x1   :  { %s703_s14 = smov 0  }
   0x2 LB: > { %s25_s15 = sadd.s32 1, %s668_s13  ;;  %p591_p0 = scmp.ge.s32.totalorder %s672_s14, 1  ;;  %s672_s14 = sphi %s703_s14, %s13_s14   ;;  %s668_s13 = sphi %s701_s13, %s780_s13   ;;  %s664_s12 = sphi %s699_s12, %s779_s12  }
   0x3   : > { %p27_p1 = scmp.ge.s32.totalorder %s25_s15, 2  ;;  %p182_p2 = scmp.lt.s32.totalorder %s672_s14, 3 }
   0x5   : > { %s782_s15 = smov (%p27_p1, %s25_s15), 0  ;;  %p183_p3 = pnand %p591_p0, %p182_p2 }
   0x6   : > { %p222_p4 = scmp.lt.s32.totalorder (!%p183_p3), %s664_s12, 1  ;;  %s674_s24 = smov (!%p183_p3), 112  }
   0x7   : > { %186 = sbr.rel (%p183_p3) target bundleno = 793 (0x319), region = 32  ;;  %s678_s28 = smov (!%p183_p3), 16  }
   0xc   : > { %s784_s12 = smov (!%p222_p4, %s664_s12), 1  ;;  %vm277_vm0 = vcmask 130048   ;;  %vm255_vm1 = vcmask 7168   ;;  %v675_v17 = vmov -inf   ;;  %v676_v22 = vmov 0  }
   0xd   : > { %s604_s16 = sshll.u32 %s784_s12, 4  ;;  %s592_s17 = sshll.u32 %s784_s12, 3  ;;  %257 = vst.msk [vmem:[#allocation2 + $0x8] sm:$0xff] %vm255_vm1, %v675_v17  ;;  %635 = vset.pattern.permute.xlu2 %v676_v22  ;;  %636 = vset.pattern.permute.xlu0 %v676_v22  ;;  %v677_v25 = vmov 0.0   ;;  %vm260_vm2 = vcmask 261120   ;;  %vm437_vm11 = vcmask 261248  }
   0xe   : > { %s234_s20 = scalar_lea.vmem %s776_s1, %s604_s16  ;;  %s225_s23 = scalar_lea.vmem %s775_s0, %s592_s17  ;;  %256 = vst.msk [vmem:[#allocation2] sm:$0xff] %vm255_vm1, %v675_v17  ;;  %637 = vset.pattern.permute.xlu1 %v676_v22 }
   0xf   : > { %v264_v0 = vld [vmem:[%s234_s20] sm:$0xff]  ;;  %v265_v1 = vld [vmem:[%s234_s20 + $0x8] sm:$0xff]  ;;  %s244_s27 = scalar_lea.vmem %s777_s2, %s604_s16  ;;  %259 = vst.msk [vmem:[#allocation3 + $0x8] sm:$0xff] %vm255_vm1, %v677_v25  ;;  %s249_s4 = scalar_lea.vmem %s778_s3, %s592_s17 }
  0x10   : > { %v266_v2 = vpack.c.bf16 %v264_v0, %v264_v0  ;;  %v267_v3 = vpack.c.bf16 %v265_v1, %v265_v1  ;;  %v262_v4 = vld [vmem:[%s225_s23] sm:$0xff]  ;;  %v269_v24 = vld [vmem:[%s244_s27 + $0x8] sm:$0xff]  ;;  %258 = vst.msk [vmem:[#allocation3] sm:$0xff] %vm255_vm1, %v677_v25 }
  0x11   : > { %v263_v7 = vpack.c.bf16 %v262_v4, %v262_v4  ;;  %v268_v23 = vld [vmem:[%s244_s27] sm:$0xff]  ;;  %v271_v27 = vpack.c.bf16 %v269_v24, %v269_v24  ;;  %261 = vst.msk [vmem:[#allocation4] sm:$0xff] %vm260_vm2, %v677_v25 }
  0x12   : > { %v274_v5 = vunpack.c.l.b16 %v266_v2  ;;  %v275_v6 = vunpack.c.l.b16 %v267_v3  ;;  %v270_v26 = vpack.c.bf16 %v268_v23, %v268_v23 }
  0x13   : > { %v355_v9 = vunpack.c.l.b16 %v263_v7  ;;  %v332_v29 = vunpack.c.l.b16 %v271_v27 }
  0x14   : > { %v276_v8 = vpack.c.b16 %v275_v6, %v274_v5  ;;  %v331_v28 = vunpack.c.l.b16 %v270_v26  ;;  %v381_v31 = vld [vmem:[#allocation2 + $0x8] sm:$0xff] }
  0x15   : > { %v356_v10 = vpack.c.b16 %v355_v9, %v355_v9  ;;  %v297_v35 = vld [vmem:[#allocation2] sm:$0xff] }
  0x16   : > { %359 = vrot.lane.b32.xlu0 %v276_v8, %s674_s24  ;;  %v282_v11 = vsel %vm277_vm0, %v276_v8, 0  ;;  %v333_v30 = vpack.c.b16 %v332_v29, %v331_v28  ;;  %v398_v56 = vld [vmem:[#allocation3 + $0x8] sm:$0xff] }
  0x17   : > { %291 = vmatpush.bf16.xpose.msra.mxu0 %v282_v11  ;;  %v313_v9 = vld [vmem:[#allocation3] sm:$0xff] }
  0x18   : > { %345 = vmatpush.bf16.msra.mxu1 %v333_v30 }
  0x1e   : > { %357 = vrot.lane.b32.xlu0 %v356_v10, %s674_s24  ;;  %598 = vmatmul.msk.bf16.vlgmr.msra.gmra.mxu0 %vm277_vm0, %v263_v7 }
  0x88   : > { %v360_v12 = vpop.permute.xlu0 %359 }
  0x89   : > { %v365_v13 = vsel %vm277_vm0, %v360_v12, 0 }
  0x8a   : > { %374 = vmatpush.bf16.xpose.msra.mxu2 %v365_v13 }
  0x90   : > { %v358_v14 = vpop.permute.xlu0 %357 }
  0x91   : > { %600 = vmatmul.msk.bf16.vlgmr.msra.gmra.mxu2 %vm277_vm0, %v358_v14 }
  0x9b   : > { %v293_v15 = vpop.f32.mrf.mxu0 }
  0x9c   : > { %v298_v20 = vsel %vm277_vm0, %v293_v15, -inf }
  0xa3   : > { %v295_v16 = vpop.f32.mrf.mxu0 }
 0x114   : > { %v376_v18 = vpop.f32.mrf.mxu2 }
 0x115   : > { %v382_v19 = vsel %vm277_vm0, %v376_v18, -inf }
 0x116   : > { %383 = vmax.xlane.f32.xlu1 %v382_v19 }
 0x11c   : > { %v378_v21 = vpop.f32.mrf.mxu2 }
 0x11e   : > { %299 = vmax.xlane.f32.xlu1 %v298_v20  ;;  %v321_v20 = vld [vmem:[#allocation4] sm:$0xff] }
 0x189   : > { %v384_v32 = vpop.xlane.xlu1 %383 }
 0x18a   : > { %v385_v33 = vmax.f32 %v381_v31, %v384_v32 }
 0x18c   : > { %439 = vst.msk [vmem:[#allocation2 + $0x8] sm:$0xff] %vm255_vm1, %v385_v33  ;;  %391 = vperm.xlu2 %635, %v385_v33   ;;  %v386_v34 = vsub.f32 %v381_v31, %v385_v33 }
 0x18e   : > { %v387_v36 = vmul.f32 1.442695, %v386_v34 }
 0x190   : > { %638 = vpow2.f32 %v387_v36 }
 0x191   : > { %v300_v37 = vpop.xlane.xlu1 %299 }
 0x192   : > { %v301_v38 = vmax.f32 %v297_v35, %v300_v37 }
 0x194   : > { %v302_v39 = vsub.f32 %v297_v35, %v301_v38  ;;  %353 = vst.msk [vmem:[#allocation2] sm:$0xff] %vm255_vm1, %v301_v38  ;;  %307 = vperm.xlu0 %636, %v301_v38   ;;  %413 = vrot.lane.b32.xlu2 %v333_v30, %s674_s24 }
 0x196   : > { %v639_v40 = vpop.eup %638  ;;  %v303_v54 = vmul.f32 1.442695, %v302_v39 }
 0x197   : > { %v399_v57 = vmul.f32 %v639_v40, %v398_v56 }
 0x19c   : > { %408 = vperm.xlu0 %636, %v639_v40  }
 0x1e6   : > { %v392_v41 = vpop.permute.xlu2 %391 }
 0x1e7   : > { %v394_v42 = vsub.f32 %v376_v18, %v392_v41 }
 0x1e9   : > { %v395_v43 = vmul.f32 1.442695, %v394_v42 }
 0x1eb   : > { %640 = vpow2.f32 %v395_v43 }
 0x1ee   : > { %v414_v44 = vpop.permute.xlu2 %413 }
 0x1ef   : > { %426 = vmatpush.bf16.msra.mxu3 %v414_v44 }
 0x1f1   : > { %v641_v45 = vpop.eup %640 }
 0x1f2   : > { %v400_v46 = vsel %vm277_vm0, %v641_v45, 0.0  ;;  %v412_v47 = vpack.c.bf16 %v641_v45, %v641_v45 }
 0x1f3   : > { %401 = vadd.xlane.f32.xlu2 %v400_v46 }
 0x1f4   : > { %601 = vmatmul.msk.bf16.vlgmr.msra.gmra.mxu3 %vm277_vm0, %v412_v47 }
 0x206   : > { %v308_v48 = vpop.permute.xlu0 %307 }
 0x207   : > { %v310_v49 = vsub.f32 %v293_v15, %v308_v48 }
 0x209   : > { %v311_v50 = vmul.f32 1.442695, %v310_v49 }
 0x20b   : > { %642 = vpow2.f32 %v311_v50 }
 0x20c   : > { %644 = vpow2.f32 %v303_v54 }
 0x20e   : > { %v409_v30 = vpop.permute.xlu0 %408 }
 0x211   : > { %v643_v51 = vpop.eup %642 }
 0x212   : > { %v315_v52 = vsel %vm277_vm0, %v643_v51, 0.0  ;;  %v328_v53 = vpack.c.bf16 %v643_v51, %v643_v51  ;;  %v645_v55 = vpop.eup %644 }
 0x213   : > { %316 = vadd.xlane.f32.xlu1 %v315_v52  ;;  %v314_v10 = vmul.f32 %v645_v55, %v313_v9 }
 0x214   : > { %599 = vmatmul.msk.bf16.vlgmr.msra.gmra.mxu1 %vm277_vm0, %v328_v53 }
 0x22c   : > { %324 = vperm.xlu1 %637, %v645_v55  }
 0x266   : > { %v402_v58 = vpop.xlane.xlu2 %401 }
 0x267   : > { %v403_v59 = vadd.f32 %v402_v58, %v399_v57 }
 0x269   : > { %404 = vst.msk [vmem:[#allocation3 + $0x8] sm:$0xff] %vm255_vm1, %v403_v59 }
 0x270   : > { %v464_v60 = vld [vmem:[#allocation3 + $0x8] sm:$0xff] }
 0x271   : > { %646 = vrcp.f32 %v464_v60  ;;  %v476_v1 = vand.u32 2147483648, %v464_v60  ;;  %v474_v3 = vand.u32 2147483647, %v464_v60  ;;  %vm470_vm4 = vweird.f32 %v464_v60 }
 0x273   : > { %v477_v6 = vor.u32 1.1754944e-38, %v476_v1  ;;  %vm475_vm6 = vcmp.eq.f32.partialorder %v474_v3, 8.507059e+37 }
 0x277   : > { %v647_v61 = vpop.eup %646  ;;  %v428_v62 = vpop.f32.mrf.mxu3 }
 0x278   : > { %433 = vrot.lane.b32.xlu0 %v428_v62, %s678_s28  ;;  %v466_v63 = vmul.f32 %v647_v61, %v464_v60  ;;  %vm471_vm3 = vweird.f32 %v647_v61 }
 0x279   : > { %vm472_vm5 = vmor %vm470_vm4, %vm471_vm3 }
 0x27a   : > { %v467_v0 = vsub.f32 1.0, %v466_v63 }
 0x27c   : > { %v468_v2 = vmul.f32 %v647_v61, %v467_v0 }
 0x27e   : > { %v469_v4 = vadd.f32 %v647_v61, %v468_v2 }
 0x27f   : > { %v430_v5 = vpop.f32.mrf.mxu3 }
 0x280   : > { %v473_v7 = vsel %vm472_vm5, %v647_v61, %v469_v4 }
 0x281   : > { %v478_v8 = vsel %vm475_vm6, %v477_v6, %v473_v7 }
 0x282   : > { %482 = vperm.xlu1 %637, %v478_v8  }
 0x286   : > { %v317_v11 = vpop.xlane.xlu1 %316 }
 0x287   : > { %v318_v12 = vadd.f32 %v317_v11, %v314_v10 }
 0x289   : > { %320 = vst.msk [vmem:[#allocation3] sm:$0xff] %vm255_vm1, %v318_v12 }
 0x290   : > { %v443_v13 = vld [vmem:[#allocation3] sm:$0xff] }
 0x291   : > { %v347_v14 = vpop.f32.mrf.mxu1  ;;  %648 = vrcp.f32 %v443_v13  ;;  %v455_v19 = vand.u32 2147483648, %v443_v13  ;;  %v453_v22 = vand.u32 2147483647, %v443_v13  ;;  %vm449_vm8 = vweird.f32 %v443_v13 }
 0x293   : > { %v456_v26 = vor.u32 1.1754944e-38, %v455_v19  ;;  %vm454_vm10 = vcmp.eq.f32.partialorder %v453_v22, 8.507059e+37 }
 0x297   : > { %v649_v15 = vpop.eup %648 }
 0x298   : > { %v445_v16 = vmul.f32 %v649_v15, %v443_v13  ;;  %vm450_vm7 = vweird.f32 %v649_v15 }
 0x299   : > { %v349_v17 = vpop.f32.mrf.mxu1  ;;  %vm451_vm9 = vmor %vm449_vm8, %vm450_vm7 }
 0x29a   : > { %v446_v18 = vsub.f32 1.0, %v445_v16 }
 0x29c   : > { %v447_v21 = vmul.f32 %v649_v15, %v446_v18 }
 0x29e   : > { %v325_v23 = vpop.permute.xlu1 %324  ;;  %v448_v24 = vadd.f32 %v649_v15, %v447_v21 }
 0x29f   : > { %v327_v25 = vmul.f32 %v325_v23, %v321_v20 }
 0x2a0   : > { %v452_v27 = vsel %vm451_vm9, %v649_v15, %v448_v24 }
 0x2a1   : > { %v351_v28 = vadd.f32 %v347_v14, %v327_v25  ;;  %v457_v29 = vsel %vm454_vm10, %v456_v26, %v452_v27 }
 0x2a2   : > { %461 = vperm.xlu0 %636, %v457_v29  }
 0x2a3   : > { %352 = vst.msk [vmem:[#allocation4] sm:$0xff] %vm277_vm0, %v351_v28 }
 0x2aa   : > { %v405_v31 = vld [vmem:[#allocation4] sm:$0xff] }
 0x2ab   : > { %v411_v32 = vmul.f32 %v409_v30, %v405_v31 }
 0x2ea   : > { %v434_v33 = vpop.permute.xlu0 %433 }
 0x2eb   : > { %v436_v34 = vadd.f32 %v434_v33, %v411_v32 }
 0x2ed   : > { %438 = vst.msk [vmem:[#allocation4] sm:$0xff] %vm437_vm11, %v436_v34 }
 0x2f4   : > { %v483_v35 = vpop.permute.xlu1 %482  ;;  %v486_v37 = vld [vmem:[#allocation4] sm:$0xff] }
 0x314   : > { %v462_v36 = vpop.permute.xlu0 %461 }
 0x315   : > { %v485_v38 = vsel %vm277_vm0, %v462_v36, %v483_v35 }
 0x316   : > { %v487_v39 = vmul.f32 %v486_v37, %v485_v38 }
 0x318   : > { %489 = vst.msk [vmem:[%s249_s4] sm:$0xff] %vm260_vm2, %v487_v39 }
 0x319 PF: > { %s13_s14 = sadd.s32 1, %s672_s14   ;;  %s779_s12 = smov %s668_s13 }
 0x31a   : > { %p10_p5 = scmp.ge.s32.totalorder %s13_s14, 4   ;;  %s780_s13 = smov %s782_s15 }
 0x31c   :  { %12 = sbr.rel (!%p10_p5) target bundleno = 2 (0x2), region = 78 }

// kernel: point_encoder_fwd.19
= control target key start
LH: loop header
LB: loop body
LE: loop exit
PB: predicated region body
PF: predicated region fallthrough
CT: control target
= control target key end

     0   :  { %vm41_vm0 = vcmask 261120   ;;  %s133_s2 = inlined_call_operand.vmem [shape: bf16[32,32], index: 2, kind: input, shape index: {}]   ;;  %s134_s0 = inlined_call_operand.vmem [shape: f32[16,32], index: 0, kind: input, shape index: {}]   ;;  %s135_s3 = inlined_call_operand.vmem [shape: f32[1,32], index: 3, kind: input, shape index: {}]   ;;  %s136_s1 = inlined_call_operand.vmem [shape: f32[16,32], index: 1, kind: input, shape index: {}]   ;;  %s137_s4 = inlined_call_operand.vmem [shape: f32[16,32], index: 4, kind: output, shape index: {}]  }
   0x1   :  { %v79_v0 = vld [vmem:[%s133_s2 + $0x8] sm:$0xff]  ;;  %v78_v1 = vld [vmem:[%s133_s2] sm:$0xff] }
   0x2   :  { %51 = vmatpush.bf16.msra.mxu0 %v79_v0  ;;  %v18_v2 = vld [vmem:[%s134_s0] sm:$0xff]  ;;  %v19_v3 = vld [vmem:[%s134_s0 + $0x8] sm:$0xff] }
   0x3   :  { %v20_v4 = vpack.c.bf16 %v19_v3, %v18_v2  ;;  %v80_v5 = vld [vmem:[%s135_s3] ss:$0 sm:$0xff]  ;;  %v60_v11 = vld [vmem:[%s136_s1 + $0x8] sm:$0xff] }
   0x4   :  { %v59_v7 = vld [vmem:[%s136_s1] sm:$0xff] }
   0x6   :  { %52 = vmatpush.bf16.msra.mxu0 %v78_v1 }
   0x9   :  { %77 = vmatmul.msk.bf16.vlgmr.msra.gmra.mxu0 %vm41_vm0, %v20_v4 }
  0x86   :  { %v54_v6 = vpop.f32.mrf.mxu0 }
  0x87   :  { %v55_v8 = vadd.f32 %v80_v5, %v54_v6 }
  0x89   :  { %v61_v9 = vadd.f32 %v59_v7, %v55_v8 }
  0x8b   :  { %63 = vst.msk [vmem:[%s137_s4] sm:$0xff] %vm41_vm0, %v61_v9 }
  0x8e   :  { %v56_v10 = vpop.f32.mrf.mxu0 }
  0x8f   :  { %v57_v12 = vadd.f32 %v80_v5, %v56_v10 }
  0x91   :  { %v62_v13 = vadd.f32 %v60_v11, %v57_v12 }
  0x93   :  { %64 = vst.msk [vmem:[%s137_s4 + $0x8] sm:$0xff] %vm41_vm0, %v62_v13 }

// kernel: point_encoder_fwd.21
= control target key start
LH: loop header
LB: loop body
LE: loop exit
PB: predicated region body
PF: predicated region fallthrough
CT: control target
= control target key end

     0   :  { %vm25_vm0 = vcmask 261120   ;;  %v175_v4 = vmov 32.0   ;;  %s176_s8 = smov 64   ;;  %s177_s9 = smov 96   ;;  %s260_s0 = inlined_call_operand.vmem [shape: f32[16,32], index: 0, kind: input, shape index: {}]   ;;  %s261_s1 = inlined_call_operand.vmem [shape: f32[1,32], index: 1, kind: input, shape index: {}]   ;;  %s262_s2 = inlined_call_operand.vmem [shape: f32[1,32], index: 2, kind: input, shape index: {}]   ;;  %s263_s3 = inlined_call_operand.vmem [shape: bf16[32,96], index: 3, kind: input, shape index: {}]   ;;  %s264_s4 = inlined_call_operand.vmem [shape: f32[16,32], index: 4, kind: output, shape index: {0}]   ;;  %s265_s5 = inlined_call_operand.vmem [shape: f32[16,32], index: 5, kind: output, shape index: {1}]   ;;  %s266_s6 = inlined_call_operand.vmem [shape: f32[16,32], index: 6, kind: output, shape index: {2}]  }
   0x1   :  { %v21_v0 = vld [vmem:[%s260_s0] sm:$0xff]  ;;  %v22_v2 = vld [vmem:[%s260_s0 + $0x8] sm:$0xff]  ;;  %169 = vrcp.f32 %v175_v4 }
   0x2   :  { %v26_v1 = vsel %vm25_vm0, %v21_v0, 0.0  ;;  %v29_v3 = vsel %vm25_vm0, %v22_v2, 0.0  ;;  %v163_v21 = vld [vmem:[%s263_s3 + $0x8] sm:$0xff]  ;;  %v162_v23 = vld [vmem:[%s263_s3] sm:$0xff] }
   0x3   :  { %27 = vadd.xlane.f32.xlu0 %v26_v1  ;;  %113 = vmatpush.bf16.msra.mxu0 %v163_v21  ;;  %v167_v42 = vld [vmem:[%s261_s1] ss:$0 sm:$0xff] }
   0x4   :  { %v168_v47 = vld [vmem:[%s262_s2] ss:$0 sm:$0xff] }
   0x7   :  { %v170_v5 = vpop.eup %169  ;;  %114 = vmatpush.bf16.msra.mxu0 %v162_v23 }
   0x8   :  { %v33_v6 = vmul.f32 32.0, %v170_v5  ;;  %vm37_vm1 = vweird.f32 %v170_v5 }
   0xa   :  { %v34_v7 = vsub.f32 1.0, %v33_v6 }
   0xb   :  { %30 = vadd.xlane.f32.xlu0 %v29_v3 }
   0xc   :  { %v35_v8 = vmul.f32 %v170_v5, %v34_v7 }
   0xe   :  { %v36_v9 = vadd.f32 %v170_v5, %v35_v8 }
  0x10   :  { %v38_v10 = vsel %vm37_vm1, %v170_v5, %v36_v9 }
  0x76   :  { %v28_v11 = vpop.xlane.xlu0 %27 }
  0x77   :  { %v39_v12 = vmul.f32 %v38_v10, %v28_v11 }
  0x79   :  { %v41_v13 = vsub.f32 %v21_v0, %v39_v12 }
  0x7b   :  { %v43_v14 = vmul.f32 %v41_v13, %v41_v13 }
  0x7d   :  { %v45_v15 = vsel %vm25_vm0, %v43_v14, 0.0 }
  0x7e   :  { %46 = vadd.xlane.f32.xlu1 %v45_v15  ;;  %v31_v16 = vpop.xlane.xlu0 %30 }
  0x7f   :  { %v40_v17 = vmul.f32 %v38_v10, %v31_v16 }
  0x81   :  { %v42_v18 = vsub.f32 %v22_v2, %v40_v17 }
  0x83   :  { %v44_v19 = vmul.f32 %v42_v18, %v42_v18 }
  0x85   :  { %v48_v20 = vsel %vm25_vm0, %v44_v19, 0.0 }
  0x86   :  { %49 = vadd.xlane.f32.xlu1 %v48_v20 }
  0xf1   :  { %v47_v22 = vpop.xlane.xlu1 %46 }
  0xf2   :  { %v51_v24 = vmul.f32 %v47_v22, %v38_v10 }
  0xf4   :  { %v53_v25 = vadd.f32 1e-05, %v51_v24 }
  0xf6   :  { %171 = vrsqrt.f32 %v53_v25  ;;  %vm61_vm3 = vweird.f32 %v53_v25 }
  0xf9   :  { %v50_v26 = vpop.xlane.xlu1 %49 }
  0xfa   :  { %v52_v27 = vmul.f32 %v50_v26, %v38_v10 }
  0xfc   :  { %v172_v28 = vpop.eup %171  ;;  %v54_v29 = vadd.f32 1e-05, %v52_v27 }
  0xfd   :  { %v56_v30 = vmul.f32 %v172_v28, %v53_v25  ;;  %vm62_vm2 = vweird.f32 %v172_v28 }
  0xfe   :  { %173 = vrsqrt.f32 %v54_v29  ;;  %vm63_vm4 = vmor %vm61_vm3, %vm62_vm2  ;;  %vm71_vm6 = vweird.f32 %v54_v29 }
  0xff   :  { %v57_v31 = vmul.f32 %v172_v28, %v56_v30 }
 0x101   :  { %v58_v32 = vmul.f32 0.5, %v57_v31 }
 0x103   :  { %v59_v33 = vsub.f32 1.5, %v58_v32 }
 0x104   :  { %v174_v34 = vpop.eup %173 }
 0x105   :  { %v60_v35 = vmul.f32 %v172_v28, %v59_v33  ;;  %v66_v36 = vmul.f32 %v174_v34, %v54_v29  ;;  %vm72_vm5 = vweird.f32 %v174_v34 }
 0x106   :  { %vm73_vm7 = vmor %vm71_vm6, %vm72_vm5 }
 0x107   :  { %v67_v37 = vmul.f32 %v174_v34, %v66_v36  ;;  %v64_v38 = vsel %vm63_vm4, %v172_v28, %v60_v35 }
 0x108   :  { %v75_v41 = vmul.f32 %v64_v38, %v41_v13 }
 0x109   :  { %v68_v39 = vmul.f32 0.5, %v67_v37 }
 0x10a   :  { %v80_v46 = vmul.f32 %v167_v42, %v75_v41 }
 0x10b   :  { %v69_v40 = vsub.f32 1.5, %v68_v39 }
 0x10c   :  { %v85_v49 = vadd.f32 %v168_v47, %v80_v46 }
 0x10d   :  { %v70_v43 = vmul.f32 %v174_v34, %v69_v40 }
 0x10f   :  { %v74_v44 = vsel %vm73_vm7, %v174_v34, %v70_v43 }
 0x110   :  { %v76_v45 = vmul.f32 %v74_v44, %v42_v18 }
 0x112   :  { %v81_v48 = vmul.f32 %v167_v42, %v76_v45 }
 0x114   :  { %v86_v50 = vadd.f32 %v168_v47, %v81_v48 }
 0x116   :  { %v87_v51 = vpack.c.bf16 %v86_v50, %v85_v49 }
 0x118   :  { %161 = vmatmul.msk.bf16.vlgmr.msra.gmra.mxu0 %vm25_vm0, %v87_v51 }
 0x195   :  { %v116_v52 = vpop.f32.mrf.mxu0 }
 0x196   :  { %121 = vst.msk [vmem:[%s264_s4] sm:$0xff] %vm25_vm0, %v116_v52  ;;  %133 = vrot.lane.b32.xlu0 %v116_v52, %s176_s8  ;;  %125 = vrot.lane.b32.xlu2 %v116_v52, %s177_s9 }
 0x19d   :  { %v118_v53 = vpop.f32.mrf.mxu0 }
 0x19e   :  { %122 = vst.msk [vmem:[%s264_s4 + $0x8] sm:$0xff] %vm25_vm0, %v118_v53  ;;  %135 = vrot.lane.b32.xlu1 %v118_v53, %s176_s8  ;;  %127 = vrot.lane.b32.xlu2 %v118_v53, %s177_s9 }
 0x1f0   :  { %v126_v54 = vpop.permute.xlu2 %125 }
 0x1f1   :  { %131 = vst.msk [vmem:[%s265_s5] sm:$0xff] %vm25_vm0, %v126_v54 }
 0x1f8   :  { %v128_v55 = vpop.permute.xlu2 %127 }
 0x1f9   :  { %132 = vst.msk [vmem:[%s265_s5 + $0x8] sm:$0xff] %vm25_vm0, %v128_v55 }
 0x208   :  { %v134_v56 = vpop.permute.xlu0 %133 }
 0x209   :  { %139 = vst.msk [vmem:[%s266_s6] sm:$0xff] %vm25_vm0, %v134_v56 }
 0x210   :  { %v136_v57 = vpop.permute.xlu1 %135 }
 0x211   :  { %140 = vst.msk [vmem:[%s266_s6 + $0x8] sm:$0xff] %vm25_vm0, %v136_v57 }

// kernel: point_encoder_fwd.20
= control target key start
LH: loop header
LB: loop body
LE: loop exit
PB: predicated region body
PF: predicated region fallthrough
CT: control target
= control target key end

     0   :  { %vm35_vm0 = vcmask 261120   ;;  %v405_v4 = vmov 32.0   ;;  %s542_s0 = inlined_call_operand.vmem [shape: f32[16,32], index: 0, kind: input, shape index: {}]   ;;  %s543_s1 = inlined_call_operand.vmem [shape: f32[1,32], index: 1, kind: input, shape index: {}]   ;;  %s544_s2 = inlined_call_operand.vmem [shape: f32[1,32], index: 2, kind: input, shape index: {}]   ;;  %s545_s4 = inlined_call_operand.vmem [shape: f32[1,128], index: 4, kind: input, shape index: {}]   ;;  %s546_s3 = inlined_call_operand.vmem [shape: bf16[32,128], index: 3, kind: input, shape index: {}]   ;;  %s547_s6 = inlined_call_operand.vmem [shape: f32[1,32], index: 6, kind: input, shape index: {}]   ;;  %s548_s5 = inlined_call_operand.vmem [shape: bf16[128,32], index: 5, kind: input, shape index: {}]   ;;  %s549_s7 = inlined_call_operand.vmem [shape: f32[16,32], index: 7, kind: output, shape index: {}]  }
   0x1   :  { %v450_v0 = vld [vmem:[%s542_s0] sm:$0xff]  ;;  %v457_v2 = vld [vmem:[%s542_s0 + $0x8] sm:$0xff]  ;;  %395 = vrcp.f32 %v405_v4  ;;  %v388_v55 = vld [vmem:[%s548_s5 + $0x38] sm:$0xff] }
   0x2   :  { %v36_v1 = vsel %vm35_vm0, %v450_v0, 0.0  ;;  %v39_v3 = vsel %vm35_vm0, %v457_v2, 0.0  ;;  %v380_v24 = vld [vmem:[%s546_s3 + $0x8] sm:$0xff]  ;;  %v379_v25 = vld [vmem:[%s546_s3] sm:$0xff]  ;;  %297 = vmatpush.bf16.msra.mxu1 %v388_v55  ;;  %v387_v59 = vld [vmem:[%s548_s5 + $0x30] sm:$0xff] }
   0x3   :  { %37 = vadd.xlane.f32.xlu0 %v36_v1  ;;  %134 = vmatpush.bf16.msra.mxu0 %v380_v24  ;;  %v391_v37 = vld [vmem:[%s543_s1] ss:$0 sm:$0xff]  ;;  %v386_v61 = vld [vmem:[%s548_s5 + $0x28] sm:$0xff] }
   0x4   :  { %v392_v40 = vld [vmem:[%s544_s2] ss:$0 sm:$0xff]  ;;  %v382_v24 = vld [vmem:[%s548_s5 + $0x8] sm:$0xff] }
   0x5   :  { %v393_v54 = vld [vmem:[%s545_s4] ss:$0 sm:$0xff] }
   0x6   :  { %298 = vmatpush.bf16.msra.mxu1 %v387_v59  ;;  %v385_v4 = vld [vmem:[%s548_s5 + $0x20] sm:$0xff] }
   0x7   :  { %v396_v5 = vpop.eup %395  ;;  %135 = vmatpush.bf16.msra.mxu0 %v379_v25 }
   0x8   :  { %v43_v6 = vmul.f32 32.0, %v396_v5  ;;  %vm47_vm1 = vweird.f32 %v396_v5 }
   0xa   :  { %v44_v7 = vsub.f32 1.0, %v43_v6  ;;  %299 = vmatpush.bf16.msra.mxu1 %v386_v61 }
   0xb   :  { %40 = vadd.xlane.f32.xlu0 %v39_v3 }
   0xc   :  { %v45_v8 = vmul.f32 %v396_v5, %v44_v7 }
   0xe   :  { %v46_v9 = vadd.f32 %v396_v5, %v45_v8  ;;  %300 = vmatpush.bf16.msra.mxu1 %v385_v4 }
  0x10   :  { %v48_v10 = vsel %vm47_vm1, %v396_v5, %v46_v9 }
  0x76   :  { %v38_v11 = vpop.xlane.xlu0 %37 }
  0x77   :  { %v49_v12 = vmul.f32 %v48_v10, %v38_v11 }
  0x79   :  { %v51_v13 = vsub.f32 %v450_v0, %v49_v12 }
  0x7b   :  { %v53_v14 = vmul.f32 %v51_v13, %v51_v13 }
  0x7d   :  { %v55_v15 = vsel %vm35_vm0, %v53_v14, 0.0 }
  0x7e   :  { %56 = vadd.xlane.f32.xlu1 %v55_v15  ;;  %v41_v16 = vpop.xlane.xlu0 %40 }
  0x7f   :  { %v50_v17 = vmul.f32 %v48_v10, %v41_v16  ;;  %v383_v16 = vld [vmem:[%s548_s5 + $0x10] sm:$0xff] }
  0x81   :  { %v52_v18 = vsub.f32 %v457_v2, %v50_v17 }
  0x83   :  { %v54_v19 = vmul.f32 %v52_v18, %v52_v18 }
  0x85   :  { %v58_v20 = vsel %vm35_vm0, %v54_v19, 0.0 }
  0x86   :  { %59 = vadd.xlane.f32.xlu1 %v58_v20 }
  0xf1   :  { %v57_v21 = vpop.xlane.xlu1 %56 }
  0xf2   :  { %v61_v22 = vmul.f32 %v57_v21, %v48_v10 }
  0xf4   :  { %v63_v23 = vadd.f32 1e-05, %v61_v22 }
  0xf6   :  { %397 = vrsqrt.f32 %v63_v23  ;;  %vm71_vm3 = vweird.f32 %v63_v23 }
  0xf9   :  { %v60_v26 = vpop.xlane.xlu1 %59 }
  0xfa   :  { %v62_v27 = vmul.f32 %v60_v26, %v48_v10  ;;  %v384_v10 = vld [vmem:[%s548_s5 + $0x18] sm:$0xff] }
  0xfb   :  { %301 = vmatpush.bf16.msra.mxu1 %v384_v10 }
  0xfc   :  { %v398_v28 = vpop.eup %397  ;;  %v64_v29 = vadd.f32 1e-05, %v62_v27 }
  0xfd   :  { %v66_v30 = vmul.f32 %v398_v28, %v63_v23  ;;  %vm72_vm2 = vweird.f32 %v398_v28 }
  0xfe   :  { %399 = vrsqrt.f32 %v64_v29  ;;  %vm73_vm4 = vmor %vm71_vm3, %vm72_vm2  ;;  %vm81_vm6 = vweird.f32 %v64_v29 }
  0xff   :  { %v67_v31 = vmul.f32 %v398_v28, %v66_v30  ;;  %302 = vmatpush.bf16.msra.mxu1 %v383_v16 }
 0x101   :  { %v68_v32 = vmul.f32 0.5, %v67_v31  ;;  %v381_v31 = vld [vmem:[%s548_s5] sm:$0xff] }
 0x103   :  { %v69_v33 = vsub.f32 1.5, %v68_v32  ;;  %303 = vmatpush.bf16.msra.mxu1 %v382_v24 }
 0x104   :  { %v400_v34 = vpop.eup %399 }
 0x105   :  { %v70_v35 = vmul.f32 %v398_v28, %v69_v33  ;;  %v76_v36 = vmul.f32 %v400_v34, %v64_v29  ;;  %vm82_vm5 = vweird.f32 %v400_v34 }
 0x106   :  { %vm83_vm7 = vmor %vm81_vm6, %vm82_vm5 }
 0x107   :  { %v74_v38 = vsel %vm73_vm4, %v398_v28, %v70_v35  ;;  %v77_v39 = vmul.f32 %v400_v34, %v76_v36  ;;  %304 = vmatpush.bf16.msra.mxu1 %v381_v31 }
 0x108   :  { %v85_v41 = vmul.f32 %v74_v38, %v51_v13 }
 0x109   :  { %v78_v42 = vmul.f32 0.5, %v77_v39 }
 0x10a   :  { %v90_v43 = vmul.f32 %v391_v37, %v85_v41 }
 0x10b   :  { %v79_v44 = vsub.f32 1.5, %v78_v42 }
 0x10c   :  { %v95_v45 = vadd.f32 %v392_v40, %v90_v43  ;;  %v406_v43 = vmov 0.0  }
 0x10d   :  { %v80_v46 = vmul.f32 %v400_v34, %v79_v44  ;;  %99 = vst.msk [vmem:[#allocation3] sm:$0xff] %vm35_vm0, %v406_v43 }
 0x10e   :  { %97 = vst.msk [vmem:[#allocation2] sm:$0xff] %vm35_vm0, %v95_v45 }
 0x10f   :  { %v84_v47 = vsel %vm83_vm7, %v400_v34, %v80_v46  ;;  %100 = vst.msk [vmem:[#allocation3 + $0x8] sm:$0xff] %vm35_vm0, %v406_v43 }
 0x110   :  { %v86_v48 = vmul.f32 %v84_v47, %v52_v18 }
 0x112   :  { %v91_v49 = vmul.f32 %v391_v37, %v86_v48 }
 0x114   :  { %v96_v50 = vadd.f32 %v392_v40, %v91_v49 }
 0x115   :  { %v101_v51 = vld [vmem:[#allocation2] sm:$0xff] }
 0x116   :  { %98 = vst.msk [vmem:[#allocation2 + $0x8] sm:$0xff] %vm35_vm0, %v96_v50 }
 0x11d   :  { %v102_v52 = vld [vmem:[#allocation2 + $0x8] sm:$0xff] }
 0x11e   :  { %v103_v53 = vpack.c.bf16 %v102_v52, %v101_v51 }
 0x120   :  { %344 = vmatmul.msk.bf16.vlgmr.msra.gmra.mxu0 %vm35_vm0, %v103_v53 }
 0x19d   :  { %v137_v56 = vpop.f32.mrf.mxu0 }
 0x19e   :  { %v486_v57 = vadd.f32 %v393_v54, %v137_v56 }
 0x1a0   :  { %v489_v58 = vmul.f32 0.70710677, %v486_v57 }
 0x1a2   :  { %v146_v60 = vmul.f32 %v489_v58, %v489_v58 }
 0x1a4   :  { %v147_v62 = vmin.f32 %v146_v60, 16.0 }
 0x1a5   :  { %v139_v63 = vpop.f32.mrf.mxu0 }
 0x1a6   :  { %v148_v1 = vmul.f32 2.1237322e-06, %v147_v62  ;;  %v499_v3 = vadd.f32 %v393_v54, %v139_v63  ;;  %v159_v5 = vmul.f32 3.8918573e-05, %v147_v62 }
 0x1a8   :  { %v149_v6 = vadd.f32 0.00028619796, %v148_v1  ;;  %v505_v7 = vmul.f32 0.70710677, %v499_v3  ;;  %v160_v8 = vadd.f32 0.001143296, %v159_v5 }
 0x1aa   :  { %v186_v9 = vmul.f32 %v505_v7, %v505_v7  ;;  %v150_v11 = vmul.f32 %v149_v6, %v147_v62  ;;  %v161_v12 = vmul.f32 %v160_v8, %v147_v62 }
 0x1ac   :  { %v187_v13 = vmin.f32 %v186_v9, 16.0  ;;  %v162_v14 = vadd.f32 0.014752088, %v161_v12  ;;  %v151_v18 = vadd.f32 0.0036580483, %v150_v11 }
 0x1ae   :  { %v188_v15 = vmul.f32 2.1237322e-06, %v187_v13  ;;  %v199_v17 = vmul.f32 3.8918573e-05, %v187_v13  ;;  %v163_v19 = vmul.f32 %v162_v14, %v147_v62  ;;  %v152_v26 = vmul.f32 %v151_v18, %v147_v62 }
 0x1b0   :  { %v189_v20 = vadd.f32 0.00028619796, %v188_v15  ;;  %v200_v21 = vadd.f32 0.001143296, %v199_v17  ;;  %v164_v22 = vadd.f32 0.112945676, %v163_v19 }
 0x1b1   :  { %v153_v33 = vadd.f32 0.05243302, %v152_v26  ;;  %v230_v26 = vld [vmem:[#allocation3] sm:$0xff] }
 0x1b2   :  { %v190_v23 = vmul.f32 %v189_v20, %v187_v13  ;;  %v201_v25 = vmul.f32 %v200_v21, %v187_v13  ;;  %v165_v27 = vmul.f32 %v164_v22, %v147_v62  ;;  %v142_v20 = vmul.f32 0.5, %v486_v57 }
 0x1b3   :  { %v154_v39 = vmul.f32 %v153_v33, %v147_v62  ;;  %v143_v21 = vmul.f32 0.5, %v499_v3 }
 0x1b4   :  { %v191_v28 = vadd.f32 0.0036580483, %v190_v23  ;;  %v202_v29 = vadd.f32 0.014752088, %v201_v25  ;;  %v166_v30 = vadd.f32 0.4994258, %v165_v27 }
 0x1b5   :  { %v155_v44 = vadd.f32 0.18741608, %v154_v39 }
 0x1b6   :  { %v203_v32 = vmul.f32 %v202_v29, %v187_v13  ;;  %v167_v34 = vmul.f32 %v166_v30, %v147_v62  ;;  %v192_v35 = vmul.f32 %v191_v28, %v187_v13  ;;  %v394_v30 = vld [vmem:[%s547_s6] ss:$0 sm:$0xff] }
 0x1b7   :  { %v156_v49 = vmul.f32 %v155_v44, %v147_v62 }
 0x1b8   :  { %v204_v36 = vadd.f32 0.112945676, %v203_v32  ;;  %v168_v37 = vadd.f32 1.0, %v167_v34  ;;  %v193_v40 = vadd.f32 0.05243302, %v192_v35 }
 0x1b9   :  { %v157_v55 = vadd.f32 1.1283791, %v156_v49 }
 0x1ba   :  { %v205_v38 = vmul.f32 %v204_v36, %v187_v13  ;;  %401 = vrcp.f32 %v168_v37  ;;  %v194_v45 = vmul.f32 %v193_v40, %v187_v13  ;;  %v180_v52 = vand.u32 2147483648, %v168_v37 }
 0x1bb   :  { %v178_v54 = vand.u32 2147483647, %v168_v37  ;;  %vm174_vm9 = vweird.f32 %v168_v37  ;;  %v158_v4 = vmul.f32 %v157_v55, %v489_v58 }
 0x1bc   :  { %v206_v41 = vadd.f32 0.4994258, %v205_v38  ;;  %v195_v50 = vadd.f32 0.18741608, %v194_v45  ;;  %v181_v61 = vor.u32 1.1754944e-38, %v180_v52 }
 0x1bd   :  { %vm179_vm11 = vcmp.eq.f32.partialorder %v178_v54, 8.507059e+37 }
 0x1be   :  { %v207_v42 = vmul.f32 %v206_v41, %v187_v13  ;;  %v196_v59 = vmul.f32 %v195_v50, %v187_v13 }
 0x1c0   :  { %v208_v46 = vadd.f32 1.0, %v207_v42  ;;  %v402_v47 = vpop.eup %401  ;;  %v197_v6 = vadd.f32 1.1283791, %v196_v59 }
 0x1c1   :  { %v170_v48 = vmul.f32 %v402_v47, %v168_v37  ;;  %vm175_vm8 = vweird.f32 %v402_v47 }
 0x1c2   :  { %403 = vrcp.f32 %v208_v46  ;;  %vm176_vm10 = vmor %vm174_vm9, %vm175_vm8  ;;  %v220_v8 = vand.u32 2147483648, %v208_v46  ;;  %v218_v11 = vand.u32 2147483647, %v208_v46  ;;  %vm214_vm13 = vweird.f32 %v208_v46 }
 0x1c3   :  { %v171_v51 = vsub.f32 1.0, %v170_v48  ;;  %v198_v14 = vmul.f32 %v197_v6, %v505_v7  ;;  %v231_v7 = vld [vmem:[#allocation3 + $0x8] sm:$0xff] }
 0x1c4   :  { %v221_v13 = vor.u32 1.1754944e-38, %v220_v8  ;;  %vm219_vm15 = vcmp.eq.f32.partialorder %v218_v11, 8.507059e+37 }
 0x1c5   :  { %v172_v53 = vmul.f32 %v402_v47, %v171_v51 }
 0x1c7   :  { %v173_v60 = vadd.f32 %v402_v47, %v172_v53 }
 0x1c8   :  { %v404_v56 = vpop.eup %403 }
 0x1c9   :  { %v210_v63 = vmul.f32 %v404_v56, %v208_v46  ;;  %v177_v1 = vsel %vm176_vm10, %v402_v47, %v173_v60  ;;  %vm215_vm12 = vweird.f32 %v404_v56 }
 0x1ca   :  { %v182_v5 = vsel %vm179_vm11, %v181_v61, %v177_v1  ;;  %vm216_vm14 = vmor %vm214_vm13, %vm215_vm12 }
 0x1cb   :  { %v211_v62 = vsub.f32 1.0, %v210_v63  ;;  %v183_v9 = vmul.f32 %v182_v5, %v158_v4 }
 0x1cd   :  { %v212_v10 = vmul.f32 %v404_v56, %v211_v62  ;;  %v345_v15 = vclamps-f32 %v183_v9, 1.0 }
 0x1cf   :  { %v213_v12 = vadd.f32 %v404_v56, %v212_v10  ;;  %v226_v19 = vadd.f32 1.0, %v345_v15 }
 0x1d1   :  { %v217_v16 = vsel %vm216_vm14, %v404_v56, %v213_v12  ;;  %v228_v23 = vmul.f32 %v226_v19, %v142_v20 }
 0x1d2   :  { %v222_v17 = vsel %vm219_vm15, %v221_v13, %v217_v16 }
 0x1d3   :  { %v223_v18 = vmul.f32 %v222_v17, %v198_v14 }
 0x1d5   :  { %v346_v58 = vclamps-f32 %v223_v18, 1.0 }
 0x1d7   :  { %v227_v22 = vadd.f32 1.0, %v346_v58 }
 0x1d9   :  { %v229_v24 = vmul.f32 %v227_v22, %v143_v21 }
 0x1db   :  { %v232_v25 = vpack.c.bf16 %v229_v24, %v228_v23 }
 0x1dd   :  { %305 = vmatmul.bf16.vlgmr.msra.gmra.mxu1 %v232_v25 }
 0x25a   :  { %v306_v27 = vpop.f32.mrf.mxu1 }
 0x25b   :  { %v311_v28 = vadd.f32 %v306_v27, %v230_v26 }
 0x25d   :  { %313 = vst.msk [vmem:[#allocation3] sm:$0xff] %vm35_vm0, %v311_v28 }
 0x262   :  { %v308_v29 = vpop.f32.mrf.mxu1 }
 0x263   :  { %v312_v31 = vadd.f32 %v308_v29, %v231_v7 }
 0x264   :  { %v320_v57 = vld [vmem:[#allocation3] sm:$0xff] }
 0x265   :  { %v322_v3 = vadd.f32 %v320_v57, %v450_v0  ;;  %314 = vst.msk [vmem:[#allocation3 + $0x8] sm:$0xff] %vm35_vm0, %v312_v31 }
 0x267   :  { %v328_v32 = vadd.f32 %v394_v30, %v322_v3 }
 0x269   :  { %330 = vst.msk [vmem:[%s549_s7] sm:$0xff] %vm35_vm0, %v328_v32 }
 0x26c   :  { %v321_v33 = vld [vmem:[#allocation3 + $0x8] sm:$0xff] }
 0x26d   :  { %v323_v34 = vadd.f32 %v321_v33, %v457_v2 }
 0x26f   :  { %v329_v35 = vadd.f32 %v394_v30, %v323_v34 }
 0x271   :  { %331 = vst.msk [vmem:[%s549_s7 + $0x8] sm:$0xff] %vm35_vm0, %v329_v35 }

// kernel: point_encoder_fwd.22
= control target key start
LH: loop header
LB: loop body
LE: loop exit
PB: predicated region body
PF: predicated region fallthrough
CT: control target
= control target key end

     0   :  { %s671_s12 = smov 0   ;;  %s673_s13 = smov 0   ;;  %s744_s0 = inlined_call_operand.vmem [shape: f32[2,8,32], index: 0, kind: input, shape index: {}]   ;;  %s745_s1 = inlined_call_operand.vmem [shape: f32[2,8,32], index: 1, kind: input, shape index: {}]   ;;  %s746_s2 = inlined_call_operand.vmem [shape: f32[2,8,32], index: 2, kind: input, shape index: {}]   ;;  %s747_s3 = inlined_call_operand.vmem [shape: f32[2,8,32], index: 3, kind: output, shape index: {}]  }
   0x1   :  { %s675_s14 = smov 0  }
   0x2 LB: > { %s25_s15 = sadd.s32 1, %s640_s13  ;;  %p567_p0 = scmp.ge.s32.totalorder %s644_s14, 1  ;;  %s644_s14 = sphi %s675_s14, %s13_s14   ;;  %s640_s13 = sphi %s673_s13, %s749_s13   ;;  %s636_s12 = sphi %s671_s12, %s748_s12  }
   0x3   : > { %p27_p1 = scmp.ge.s32.totalorder %s25_s15, 2  ;;  %p176_p2 = scmp.lt.s32.totalorder %s644_s14, 3 }
   0x5   : > { %s751_s15 = smov (%p27_p1, %s25_s15), 0  ;;  %p177_p3 = pnand %p567_p0, %p176_p2 }
   0x6   : > { %p212_p4 = scmp.lt.s32.totalorder (!%p177_p3), %s636_s12, 1  ;;  %s646_s23 = smov (!%p177_p3), 112  }
   0x7   : > { %180 = sbr.rel (%p177_p3) target bundleno = 793 (0x319), region = 32  ;;  %s650_s27 = smov (!%p177_p3), 16  }
   0xc   : > { %s753_s12 = smov (!%p212_p4, %s636_s12), 1  ;;  %vm252_vm0 = vcmask 130048   ;;  %vm239_vm1 = vcmask 7168   ;;  %v647_v14 = vmov -inf   ;;  %vm273_vm2 = vcmask 64512  }
   0xd   : > { %s689_s16 = sshll.u32 %s753_s12, 3  ;;  %241 = vst.msk [vmem:[#allocation2 + $0x8] sm:$0xff] %vm239_vm1, %v647_v14  ;;  %v648_v19 = vmov 0   ;;  %v649_v20 = vmov 0.0   ;;  %vm308_vm3 = vcmask 1043456   ;;  %vm244_vm4 = vcmask 261120  }
   0xe   : > { %s222_s19 = scalar_lea.vmem %s745_s1, %s689_s16  ;;  %s215_s22 = scalar_lea.vmem %s744_s0, %s689_s16  ;;  %240 = vst.msk [vmem:[#allocation2] sm:$0xff] %vm239_vm1, %v647_v14  ;;  %607 = vset.pattern.permute.xlu2 %v648_v19  ;;  %608 = vset.pattern.permute.xlu0 %v648_v19  ;;  %vm419_vm13 = vcmask 261248  }
   0xf   : > { %v248_v0 = vld [vmem:[%s222_s19] sm:$0xff]  ;;  %609 = vset.pattern.permute.xlu1 %v648_v19  ;;  %243 = vst.msk [vmem:[#allocation3 + $0x8] sm:$0xff] %vm239_vm1, %v649_v20  ;;  %s229_s26 = scalar_lea.vmem %s746_s2, %s689_s16  ;;  %s233_s30 = scalar_lea.vmem %s747_s3, %s689_s16 }
  0x10   : > { %v246_v1 = vld [vmem:[%s215_s22] sm:$0xff]  ;;  %v249_v2 = vpack.c.bf16 %v248_v0, %v248_v0  ;;  %242 = vst.msk [vmem:[#allocation3] sm:$0xff] %vm239_vm1, %v649_v20 }
  0x11   : > { %v247_v4 = vpack.c.bf16 %v246_v1, %v246_v1  ;;  %v250_v21 = vld [vmem:[%s229_s26] sm:$0xff]  ;;  %245 = vst.msk [vmem:[#allocation4] sm:$0xff] %vm244_vm4, %v649_v20 }
  0x12   : > { %v334_v3 = vunpack.c.l.b16 %v249_v2  ;;  %v257_v8 = vsel %vm252_vm0, %v249_v2, 0  ;;  %v251_v23 = vpack.c.bf16 %v250_v21, %v250_v21 }
  0x13   : > { %v329_v6 = vunpack.c.l.b16 %v247_v4  ;;  %266 = vmatpush.bf16.xpose.msra.mxu0 %v257_v8 }
  0x14   : > { %v335_v5 = vpack.c.b16 %v334_v3, %v334_v3  ;;  %v358_v22 = vld [vmem:[#allocation2 + $0x8] sm:$0xff]  ;;  %v391_v26 = vunpack.c.l.b16 %v251_v23  ;;  %v310_v39 = vsel %vm308_vm3, %v251_v23, 0 }
  0x15   : > { %v330_v7 = vpack.c.b16 %v329_v6, %v329_v6  ;;  %v272_v28 = vld [vmem:[#allocation2] sm:$0xff]  ;;  %319 = vmatpush.bf16.msra.mxu1 %v310_v39 }
  0x16   : > { %336 = vrot.lane.b32.xlu0 %v335_v5, %s646_s23  ;;  %v392_v29 = vpack.c.b16 %v391_v26, %v391_v26  ;;  %v375_v52 = vld [vmem:[#allocation3 + $0x8] sm:$0xff] }
  0x17   : > { %v289_v5 = vld [vmem:[#allocation3] sm:$0xff] }
  0x1a   : > { %572 = vmatmul.msk.bf16.vlgmr.msra.gmra.mxu0 %vm252_vm0, %v247_v4 }
  0x1e   : > { %331 = vrot.lane.b32.xlu0 %v330_v7, %s646_s23 }
  0x88   : > { %v337_v9 = vpop.permute.xlu0 %336 }
  0x89   : > { %v342_v10 = vsel %vm252_vm0, %v337_v9, 0 }
  0x8a   : > { %351 = vmatpush.bf16.xpose.msra.mxu2 %v342_v10 }
  0x90   : > { %v332_v11 = vpop.permute.xlu0 %331 }
  0x91   : > { %574 = vmatmul.msk.bf16.vlgmr.msra.gmra.mxu2 %vm252_vm0, %v332_v11 }
  0x97   : > { %v268_v12 = vpop.f32.mrf.mxu0 }
  0x98   : > { %v274_v17 = vsel %vm273_vm2, %v268_v12, -inf }
  0x9f   : > { %v270_v13 = vpop.f32.mrf.mxu0 }
 0x114   : > { %v353_v15 = vpop.f32.mrf.mxu2 }
 0x115   : > { %v359_v16 = vsel %vm273_vm2, %v353_v15, -inf }
 0x116   : > { %360 = vmax.xlane.f32.xlu1 %v359_v16  ;;  %v297_v16 = vld [vmem:[#allocation4] sm:$0xff] }
 0x11c   : > { %v355_v18 = vpop.f32.mrf.mxu2 }
 0x11e   : > { %275 = vmax.xlane.f32.xlu1 %v274_v17 }
 0x189   : > { %v361_v24 = vpop.xlane.xlu1 %360 }
 0x18a   : > { %v362_v25 = vmax.f32 %v358_v22, %v361_v24 }
 0x18c   : > { %421 = vst.msk [vmem:[#allocation2 + $0x8] sm:$0xff] %vm239_vm1, %v362_v25  ;;  %368 = vperm.xlu2 %607, %v362_v25   ;;  %v363_v27 = vsub.f32 %v358_v22, %v362_v25 }
 0x18e   : > { %v364_v30 = vmul.f32 1.442695, %v363_v27 }
 0x190   : > { %610 = vpow2.f32 %v364_v30 }
 0x191   : > { %v276_v31 = vpop.xlane.xlu1 %275 }
 0x192   : > { %v277_v32 = vmax.f32 %v272_v28, %v276_v31 }
 0x194   : > { %v278_v33 = vsub.f32 %v272_v28, %v277_v32  ;;  %327 = vst.msk [vmem:[#allocation2] sm:$0xff] %vm239_vm1, %v277_v32  ;;  %283 = vperm.xlu0 %608, %v277_v32   ;;  %393 = vrot.lane.b32.xlu2 %v392_v29, %s646_s23 }
 0x196   : > { %v611_v34 = vpop.eup %610  ;;  %v279_v50 = vmul.f32 1.442695, %v278_v33 }
 0x197   : > { %v376_v53 = vmul.f32 %v611_v34, %v375_v52 }
 0x19c   : > { %385 = vperm.xlu0 %608, %v611_v34  }
 0x1e6   : > { %v369_v35 = vpop.permute.xlu2 %368 }
 0x1e7   : > { %v371_v36 = vsub.f32 %v353_v15, %v369_v35 }
 0x1e9   : > { %v372_v37 = vmul.f32 1.442695, %v371_v36 }
 0x1eb   : > { %612 = vpow2.f32 %v372_v37 }
 0x1ee   : > { %v394_v38 = vpop.permute.xlu2 %393 }
 0x1ef   : > { %v399_v40 = vsel %vm308_vm3, %v394_v38, 0 }
 0x1f0   : > { %408 = vmatpush.bf16.msra.mxu3 %v399_v40 }
 0x1f1   : > { %v613_v41 = vpop.eup %612 }
 0x1f2   : > { %v377_v42 = vsel %vm273_vm2, %v613_v41, 0.0  ;;  %v389_v43 = vpack.c.bf16 %v613_v41, %v613_v41 }
 0x1f3   : > { %378 = vadd.xlane.f32.xlu2 %v377_v42 }
 0x1f4   : > { %575 = vmatmul.msk.bf16.vlgmr.msra.gmra.mxu3 %vm273_vm2, %v389_v43 }
 0x206   : > { %v284_v44 = vpop.permute.xlu0 %283 }
 0x207   : > { %v286_v45 = vsub.f32 %v268_v12, %v284_v44 }
 0x209   : > { %v287_v46 = vmul.f32 1.442695, %v286_v45 }
 0x20b   : > { %614 = vpow2.f32 %v287_v46 }
 0x20c   : > { %616 = vpow2.f32 %v279_v50 }
 0x20e   : > { %v386_v26 = vpop.permute.xlu0 %385 }
 0x211   : > { %v615_v47 = vpop.eup %614 }
 0x212   : > { %v291_v48 = vsel %vm273_vm2, %v615_v47, 0.0  ;;  %v304_v49 = vpack.c.bf16 %v615_v47, %v615_v47  ;;  %v617_v51 = vpop.eup %616 }
 0x213   : > { %292 = vadd.xlane.f32.xlu1 %v291_v48  ;;  %v290_v6 = vmul.f32 %v617_v51, %v289_v5 }
 0x214   : > { %573 = vmatmul.msk.bf16.vlgmr.msra.gmra.mxu1 %vm273_vm2, %v304_v49 }
 0x22c   : > { %300 = vperm.xlu1 %609, %v617_v51  }
 0x266   : > { %v379_v54 = vpop.xlane.xlu2 %378 }
 0x267   : > { %v380_v55 = vadd.f32 %v379_v54, %v376_v53 }
 0x269   : > { %381 = vst.msk [vmem:[#allocation3 + $0x8] sm:$0xff] %vm239_vm1, %v380_v55 }
 0x270   : > { %v446_v56 = vld [vmem:[#allocation3 + $0x8] sm:$0xff] }
 0x271   : > { %618 = vrcp.f32 %v446_v56  ;;  %v458_v61 = vand.u32 2147483648, %v446_v56  ;;  %v456_v63 = vand.u32 2147483647, %v446_v56  ;;  %vm452_vm6 = vweird.f32 %v446_v56 }
 0x273   : > { %v459_v2 = vor.u32 1.1754944e-38, %v458_v61  ;;  %vm457_vm8 = vcmp.eq.f32.partialorder %v456_v63, 8.507059e+37 }
 0x277   : > { %v619_v57 = vpop.eup %618  ;;  %v410_v58 = vpop.f32.mrf.mxu3 }
 0x278   : > { %415 = vrot.lane.b32.xlu0 %v410_v58, %s650_s27  ;;  %v448_v59 = vmul.f32 %v619_v57, %v446_v56  ;;  %vm453_vm5 = vweird.f32 %v619_v57 }
 0x279   : > { %vm454_vm7 = vmor %vm452_vm6, %vm453_vm5 }
 0x27a   : > { %v449_v60 = vsub.f32 1.0, %v448_v59 }
 0x27c   : > { %v450_v62 = vmul.f32 %v619_v57, %v449_v60 }
 0x27e   : > { %v451_v0 = vadd.f32 %v619_v57, %v450_v62 }
 0x27f   : > { %v412_v1 = vpop.f32.mrf.mxu3 }
 0x280   : > { %v455_v3 = vsel %vm454_vm7, %v619_v57, %v451_v0 }
 0x281   : > { %v460_v4 = vsel %vm457_vm8, %v459_v2, %v455_v3 }
 0x282   : > { %464 = vperm.xlu1 %609, %v460_v4  }
 0x286   : > { %v293_v7 = vpop.xlane.xlu1 %292 }
 0x287   : > { %v294_v8 = vadd.f32 %v293_v7, %v290_v6 }
 0x289   : > { %296 = vst.msk [vmem:[#allocation3] sm:$0xff] %vm239_vm1, %v294_v8 }
 0x290   : > { %v425_v9 = vld [vmem:[#allocation3] sm:$0xff] }
 0x291   : > { %v321_v10 = vpop.f32.mrf.mxu1  ;;  %620 = vrcp.f32 %v425_v9  ;;  %v437_v15 = vand.u32 2147483648, %v425_v9  ;;  %v435_v18 = vand.u32 2147483647, %v425_v9  ;;  %vm431_vm10 = vweird.f32 %v425_v9 }
 0x293   : > { %v438_v22 = vor.u32 1.1754944e-38, %v437_v15  ;;  %vm436_vm12 = vcmp.eq.f32.partialorder %v435_v18, 8.507059e+37 }
 0x297   : > { %v621_v11 = vpop.eup %620 }
 0x298   : > { %v427_v12 = vmul.f32 %v621_v11, %v425_v9  ;;  %vm432_vm9 = vweird.f32 %v621_v11 }
 0x299   : > { %v323_v13 = vpop.f32.mrf.mxu1  ;;  %vm433_vm11 = vmor %vm431_vm10, %vm432_vm9 }
 0x29a   : > { %v428_v14 = vsub.f32 1.0, %v427_v12 }
 0x29c   : > { %v429_v17 = vmul.f32 %v621_v11, %v428_v14 }
 0x29e   : > { %v301_v19 = vpop.permute.xlu1 %300  ;;  %v430_v20 = vadd.f32 %v621_v11, %v429_v17 }
 0x29f   : > { %v303_v21 = vmul.f32 %v301_v19, %v297_v16 }
 0x2a0   : > { %v434_v23 = vsel %vm433_vm11, %v621_v11, %v430_v20 }
 0x2a1   : > { %v325_v24 = vadd.f32 %v321_v10, %v303_v21  ;;  %v439_v25 = vsel %vm436_vm12, %v438_v22, %v434_v23 }
 0x2a2   : > { %443 = vperm.xlu0 %608, %v439_v25  }
 0x2a3   : > { %326 = vst.msk [vmem:[#allocation4] sm:$0xff] %vm252_vm0, %v325_v24 }
 0x2aa   : > { %v382_v27 = vld [vmem:[#allocation4] sm:$0xff] }
 0x2ab   : > { %v388_v28 = vmul.f32 %v386_v26, %v382_v27 }
 0x2ea   : > { %v416_v29 = vpop.permute.xlu0 %415 }
 0x2eb   : > { %v418_v30 = vadd.f32 %v416_v29, %v388_v28 }
 0x2ed   : > { %420 = vst.msk [vmem:[#allocation4] sm:$0xff] %vm419_vm13, %v418_v30 }
 0x2f4   : > { %v465_v31 = vpop.permute.xlu1 %464  ;;  %v468_v33 = vld [vmem:[#allocation4] sm:$0xff] }
 0x314   : > { %v444_v32 = vpop.permute.xlu0 %443 }
 0x315   : > { %v467_v34 = vsel %vm252_vm0, %v444_v32, %v465_v31 }
 0x316   : > { %v469_v35 = vmul.f32 %v468_v33, %v467_v34 }
 0x318   : > { %471 = vst.msk [vmem:[%s233_s30] sm:$0xff] %vm244_vm4, %v469_v35 }
 0x319 PF: > { %s13_s14 = sadd.s32 1, %s644_s14   ;;  %s748_s12 = smov %s640_s13 }
 0x31a   : > { %p10_p5 = scmp.ge.s32.totalorder %s13_s14, 4   ;;  %s749_s13 = smov %s751_s15 }
 0x31c   :  { %12 = sbr.rel (!%p10_p5) target bundleno = 2 (0x2), region = 78 }

// kernel: point_encoder_fwd.29
= control target key start
LH: loop header
LB: loop body
LE: loop exit
PB: predicated region body
PF: predicated region fallthrough
CT: control target
= control target key end

     0   :  { %vm19_vm0 = vcmask 261120   ;;  %s184_s0 = inlined_call_operand.vmem [shape: f32[16,32], index: 0, kind: input, shape index: {}]   ;;  %s185_s1 = inlined_call_operand.vmem [shape: f32[1,32], index: 1, kind: input, shape index: {}]   ;;  %s186_s2 = inlined_call_operand.vmem [shape: f32[1,32], index: 2, kind: input, shape index: {}]   ;;  %s187_s3 = inlined_call_operand.hbm [shape: f32[16,32], index: 3, kind: output, shape index: {}]  }
   0x1   :  { %v15_v0 = vld [vmem:[%s184_s0] sm:$0xff] }
   0x2   :  { %v20_v1 = vsel %vm19_vm0, %v15_v0, 0.0 }
   0x3   :  { %8 = vsyncpa [#allocation3], 0  ;;  %21 = vadd.xlane.f32.xlu0 %v20_v1  ;;  %v16_v2 = vld [vmem:[%s184_s0 + $0x8] sm:$0xff]  ;;  %v139_v4 = vmov 32.0   ;;  %v105_v35 = vld [vmem:[%s185_s1] ss:$0 sm:$0xff] }
   0x4   :  { %v23_v3 = vsel %vm19_vm0, %v16_v2, 0.0  ;;  %107 = vrcp.f32 %v139_v4  ;;  %v106_v39 = vld [vmem:[%s186_s2] ss:$0 sm:$0xff]  ;;  %s140_s1 = smov [#allocation2]   ;;  %s89_s22 = sshll.u32 %s187_s3, 4  ;;  %s90_s22 = int_to_ptr.hbm [resolvable:$true] %s89_s22 }
   0x5   :  { %s87_s19 = sshll.u32 %s140_s1, 4  ;;  %s141_s2 = smov 128   ;;  %s88_s19 = int_to_ptr.vmem [resolvable:$true] %s87_s19 }
   0x6   :  { %s142_s23 = smov 8  }
   0xa   :  { %v108_v5 = vpop.eup %107 }
   0xb   :  { %24 = vadd.xlane.f32.xlu0 %v23_v3  ;;  %v27_v6 = vmul.f32 32.0, %v108_v5  ;;  %vm31_vm1 = vweird.f32 %v108_v5 }
   0xd   :  { %v28_v7 = vsub.f32 1.0, %v27_v6 }
   0xf   :  { %v29_v8 = vmul.f32 %v108_v5, %v28_v7 }
  0x11   :  { %v30_v9 = vadd.f32 %v108_v5, %v29_v8 }
  0x13   :  { %v32_v10 = vsel %vm31_vm1, %v108_v5, %v30_v9 }
  0x76   :  { %v22_v11 = vpop.xlane.xlu0 %21 }
  0x77   :  { %v33_v12 = vmul.f32 %v32_v10, %v22_v11 }
  0x79   :  { %v35_v13 = vsub.f32 %v15_v0, %v33_v12 }
  0x7b   :  { %v37_v14 = vmul.f32 %v35_v13, %v35_v13 }
  0x7d   :  { %v39_v15 = vsel %vm19_vm0, %v37_v14, 0.0 }
  0x7e   :  { %40 = vadd.xlane.f32.xlu1 %v39_v15  ;;  %v25_v16 = vpop.xlane.xlu0 %24 }
  0x7f   :  { %v34_v17 = vmul.f32 %v32_v10, %v25_v16 }
  0x81   :  { %v36_v18 = vsub.f32 %v16_v2, %v34_v17 }
  0x83   :  { %v38_v19 = vmul.f32 %v36_v18, %v36_v18 }
  0x85   :  { %v42_v20 = vsel %vm19_vm0, %v38_v19, 0.0 }
  0x86   :  { %43 = vadd.xlane.f32.xlu1 %v42_v20 }
  0xf1   :  { %v41_v21 = vpop.xlane.xlu1 %40 }
  0xf2   :  { %v45_v22 = vmul.f32 %v41_v21, %v32_v10 }
  0xf4   :  { %v47_v23 = vadd.f32 1e-05, %v45_v22 }
  0xf6   :  { %109 = vrsqrt.f32 %v47_v23  ;;  %vm55_vm3 = vweird.f32 %v47_v23 }
  0xf9   :  { %v44_v24 = vpop.xlane.xlu1 %43 }
  0xfa   :  { %v46_v25 = vmul.f32 %v44_v24, %v32_v10 }
  0xfc   :  { %v110_v26 = vpop.eup %109  ;;  %v48_v27 = vadd.f32 1e-05, %v46_v25 }
  0xfd   :  { %v50_v28 = vmul.f32 %v110_v26, %v47_v23  ;;  %vm56_vm2 = vweird.f32 %v110_v26 }
  0xfe   :  { %111 = vrsqrt.f32 %v48_v27  ;;  %vm57_vm4 = vmor %vm55_vm3, %vm56_vm2  ;;  %vm65_vm6 = vweird.f32 %v48_v27 }
  0xff   :  { %v51_v29 = vmul.f32 %v110_v26, %v50_v28 }
 0x101   :  { %v52_v30 = vmul.f32 0.5, %v51_v29 }
 0x103   :  { %v53_v31 = vsub.f32 1.5, %v52_v30 }
 0x104   :  { %v112_v32 = vpop.eup %111 }
 0x105   :  { %v54_v33 = vmul.f32 %v110_v26, %v53_v31  ;;  %v60_v34 = vmul.f32 %v112_v32, %v48_v27  ;;  %vm66_vm5 = vweird.f32 %v112_v32 }
 0x106   :  { %vm67_vm7 = vmor %vm65_vm6, %vm66_vm5 }
 0x107   :  { %v58_v36 = vsel %vm57_vm4, %v110_v26, %v54_v33  ;;  %v61_v37 = vmul.f32 %v112_v32, %v60_v34 }
 0x108   :  { %v69_v38 = vmul.f32 %v58_v36, %v35_v13 }
 0x109   :  { %v62_v40 = vmul.f32 0.5, %v61_v37 }
 0x10a   :  { %v74_v41 = vmul.f32 %v105_v35, %v69_v38 }
 0x10b   :  { %v63_v42 = vsub.f32 1.5, %v62_v40 }
 0x10c   :  { %v79_v43 = vadd.f32 %v106_v39, %v74_v41 }
 0x10d   :  { %v64_v44 = vmul.f32 %v112_v32, %v63_v42 }
 0x10e   :  { %81 = vst.msk [vmem:[#allocation2] sm:$0xff] %vm19_vm0, %v79_v43 }
 0x10f   :  { %v68_v45 = vsel %vm67_vm7, %v112_v32, %v64_v44 }
 0x110   :  { %v70_v46 = vmul.f32 %v68_v45, %v36_v18 }
 0x112   :  { %v75_v47 = vmul.f32 %v105_v35, %v70_v46 }
 0x114   :  { %v80_v48 = vadd.f32 %v106_v39, %v75_v47 }
 0x116   :  { %82 = vst.msk [vmem:[#allocation2 + $0x8] sm:$0xff] %vm19_vm0, %v80_v48 }
 0x117   :  { %95 = dma.vmem_to_hbm [thread:$0]  %s88_s19, 256, %s90_s22, [#allocation3], %s141_s2, %s141_s2, %s142_s23  }
 0x118   :  { %137 = dma.done.wait [#allocation3], 256  }
 0x119   :  { %138 = vsyncadd [#allocation3], 4294967040 }
 0x11a   :  { %100 = vsyncpa [#allocation3], 1 }

</bundles_post_ra>
